<compile_context>
chip_gen: v7x
topology: tpu7x:2x2x1
jax: 0.10.0
libtpu: 0.0.40
codegen_flags: <defaults>
</compile_context>

<pallas_src>
import functools
from itertools import accumulate

import numpy as np
import jax
import jax.numpy as jnp
from jax import lax
from jax.experimental import pallas as pl
from jax.experimental.pallas import tpu as pltpu

# ----------------------------- small config ---------------------------------
B = 2              # batch (dialogues)
S = 8              # seq_len
HIDDEN = 32        # bert hidden_size
HEADS = 4          # num_attention_heads
HEAD_DIM = HIDDEN // HEADS
INNER = 256        # self.inner_dim (hard-coded in the module)
VOCAB = 100
NUM_ENT, NUM_REL, NUM_POL = 6, 3, 4
NUM_CLASSES_TOTAL = NUM_ENT + NUM_REL + NUM_POL   # 13
LOSS_WEIGHT = {'ent': 2.0, 'rel': 2.0, 'pol': 2.0}

# ----------------------------- Pallas kernel ---------------------------------

def _fused_model_kernel(seq_ref, mrg_ref, dw_ref, db_ref, wqkv_ref, wo_ref,
                        lng_ref, lnb_ref, m_ref, wq_ref, wk_ref, bq_ref, bk_ref,
                        o_ref, *, heads, head_dim, hidden, inner, num_classes,
                        scale, eps):
    """Per-batch fused trunk: dense+LeakyReLU -> residual add -> 3x attention
    (+residual+LayerNorm) -> 3-way max -> q/k class projections -> pairwise
    bilinear logits for all 13 classes."""
    # ---- dense(merged) + LeakyReLU + residual add -------------------------
    mrg = mrg_ref[0].astype(jnp.bfloat16)                         # (S, H)
    y = jnp.dot(mrg, dw_ref[...], preferred_element_type=jnp.float32) + db_ref[...]
    y = jnp.where(y > 0, y, 0.01 * y)                             # LeakyReLU(0.01)
    x_f32 = seq_ref[0] + y                                        # (S, H) f32 residual
    x = x_f32.astype(jnp.bfloat16)

    # ---- fused QKV projection for all three branches: (S, 9*H) -------------
    qkv = jnp.dot(x, wqkv_ref[...], preferred_element_type=jnp.float32)
    lng = lng_ref[...]                                            # (3, H)
    lnb = lnb_ref[...]                                            # (3, H)

    branch_out = []
    for br in range(3):                                           # reply/thread/speaker
        base = br * 3 * hidden
        q = qkv[:, base:base + hidden]
        k = qkv[:, base + hidden:base + 2 * hidden]
        v = qkv[:, base + 2 * hidden:base + 3 * hidden]
        mask = m_ref[0, br]                                       # (S, S) f32

        ctx_heads = []
        for h in range(heads):
            sl = slice(h * head_dim, (h + 1) * head_dim)
            qh = q[:, sl].astype(jnp.bfloat16)
            kh = k[:, sl].astype(jnp.bfloat16)
            vh = v[:, sl].astype(jnp.bfloat16)
            s = lax.dot_general(qh, kh, (((1,), (1,)), ((), ())),
                                preferred_element_type=jnp.float32) * scale
            s = jnp.where(mask > 0, s, jnp.float32(-1e9))
            s = s - jnp.max(s, axis=-1, keepdims=True)
            p = jnp.exp(s)
            p = p * pl.reciprocal(jnp.sum(p, axis=-1, keepdims=True), approx=True)
            ctx_heads.append(jnp.dot(p.astype(jnp.bfloat16), vh,
                                     preferred_element_type=jnp.float32))
        ctx = jnp.concatenate(ctx_heads, axis=-1)                 # (S, H)
        o = jnp.dot(ctx.astype(jnp.bfloat16), wo_ref[br],
                    preferred_element_type=jnp.float32)
        o = o + x_f32                                             # residual (f32)
        mu = jnp.mean(o, axis=-1, keepdims=True)
        var = jnp.mean((o - mu) ** 2, axis=-1, keepdims=True)
        o = (o - mu) * lax.rsqrt(var + eps)
        o = o * lng[br:br + 1] + lnb[br:br + 1]
        branch_out.append(o)

    h_out = jnp.maximum(jnp.maximum(branch_out[0], branch_out[1]), branch_out[2])
    hb = h_out.astype(jnp.bfloat16)                               # (S, H)

    # ---- classification: q/k projections (pre-sliced columns only) ---------
    qcls = jnp.dot(hb, wq_ref[...], preferred_element_type=jnp.float32) + bq_ref[...]
    kcls = jnp.dot(hb, wk_ref[...], preferred_element_type=jnp.float32) + bk_ref[...]
    for c in range(num_classes):
        sl = slice(c * inner, (c + 1) * inner)
        qc = qcls[:, sl].astype(jnp.bfloat16)
        kc = kcls[:, sl].astype(jnp.bfloat16)
        o_ref[0, c] = lax.dot_general(qc, kc, (((1,), (1,)), ((), ())),
                                      preferred_element_type=jnp.float32)


def fused_forward(seq, merged, dense_w, dense_b, wqkv, wo, ln_g, ln_b, masks,
                  wq, wk, bq, bk):
    """seq/merged:(B,S,H) f32, dense_w:(H,H) bf16, dense_b:(1,H) f32,
    wqkv:(H,9H) bf16, wo:(3,H,H) bf16, ln_*:(3,H) f32, masks:(B,3,S,S) f32,
    wq/wk:(H,13*INNER) bf16, bq/bk:(1,13*INNER) f32 -> (B,13,S,S) f32 logits."""
    Bq, Sq, Hd = seq.shape
    Ntot = wq.shape[1]
    kernel = functools.partial(
        _fused_model_kernel, heads=HEADS, head_dim=HEAD_DIM, hidden=Hd,
        inner=INNER, num_classes=NUM_CLASSES_TOTAL,
        scale=1.0 / float(np.sqrt(HEAD_DIM)), eps=1e-6)
    return pl.pallas_call(
        kernel,
        out_shape=jax.ShapeDtypeStruct((Bq, NUM_CLASSES_TOTAL, Sq, Sq), jnp.float32),
        grid_spec=pltpu.PrefetchScalarGridSpec(
            num_scalar_prefetch=0,
            grid=(Bq,),
            in_specs=[
                pl.BlockSpec((1, Sq, Hd), lambda b: (b, 0, 0)),      # seq
                pl.BlockSpec((1, Sq, Hd), lambda b: (b, 0, 0)),      # merged
                pl.BlockSpec((Hd, Hd), lambda b: (0, 0)),            # dense_w
                pl.BlockSpec((1, Hd), lambda b: (0, 0)),             # dense_b
                pl.BlockSpec((Hd, 9 * Hd), lambda b: (0, 0)),        # wqkv
                pl.BlockSpec((3, Hd, Hd), lambda b: (0, 0, 0)),      # wo
                pl.BlockSpec((3, Hd), lambda b: (0, 0)),             # ln gamma
                pl.BlockSpec((3, Hd), lambda b: (0, 0)),             # ln beta
                pl.BlockSpec((1, 3, Sq, Sq), lambda b: (b, 0, 0, 0)),# masks
                pl.BlockSpec((Hd, Ntot), lambda b: (0, 0)),          # wq (13*INNER)
                pl.BlockSpec((Hd, Ntot), lambda b: (0, 0)),          # wk (13*INNER)
                pl.BlockSpec((1, Ntot), lambda b: (0, 0)),           # bq
                pl.BlockSpec((1, Ntot), lambda b: (0, 0)),           # bk
            ],
            out_specs=pl.BlockSpec((1, NUM_CLASSES_TOTAL, Sq, Sq),
                                   lambda b: (b, 0, 0, 0)),
        ),
        compiler_params=pltpu.CompilerParams(dimension_semantics=("parallel",)),
    )(seq, merged, dense_w, dense_b, wqkv, wo, ln_g, ln_b, masks, wq, wk, bq, bk)

# ----------------------------- model pieces (glue) ---------------------------

def init_params(key):
    keys = jax.random.split(key, 24)
    it = iter(keys)

    def w(shape):
        return jax.random.normal(next(it), shape, jnp.float32) * 0.02

    p = {}
    p['word_emb'] = w((VOCAB, HIDDEN))
    p['seg_emb'] = w((2, HIDDEN))
    p['dense_w'] = w((HIDDEN, HIDDEN)); p['dense_b'] = jnp.zeros((HIDDEN,), jnp.float32)
    p['dense0_w'] = w((HIDDEN, INNER * 4 * NUM_ENT)); p['dense0_b'] = jnp.zeros((INNER * 4 * NUM_ENT,), jnp.float32)
    p['dense1_w'] = w((HIDDEN, INNER * 4 * NUM_REL)); p['dense1_b'] = jnp.zeros((INNER * 4 * NUM_REL,), jnp.float32)
    p['dense2_w'] = w((HIDDEN, INNER * 4 * NUM_POL)); p['dense2_b'] = jnp.zeros((INNER * 4 * NUM_POL,), jnp.float32)
    for name in ['reply', 'thread', 'speaker']:
        p[f'{name}_wq'] = w((HIDDEN, HIDDEN))
        p[f'{name}_wk'] = w((HIDDEN, HIDDEN))
        p[f'{name}_wv'] = w((HIDDEN, HIDDEN))
        p[f'{name}_wo'] = w((HIDDEN, HIDDEN))
        p[f'{name}_ln_g'] = jnp.ones((HIDDEN,), jnp.float32)
        p[f'{name}_ln_b'] = jnp.zeros((HIDDEN,), jnp.float32)
    return p


def build_attn_weights(p):
    """Concatenate the 9 QKV projections into one (H, 9H) bf16 matrix, stack Wo/LN."""
    wqkv = jnp.concatenate(
        [jnp.concatenate([p[f'{n}_wq'], p[f'{n}_wk'], p[f'{n}_wv']], axis=1)
         for n in ('reply', 'thread', 'speaker')], axis=1).astype(jnp.bfloat16)
    wo = jnp.stack([p[f'{n}_wo'] for n in ('reply', 'thread', 'speaker')]).astype(jnp.bfloat16)
    ln_g = jnp.stack([p[f'{n}_ln_g'] for n in ('reply', 'thread', 'speaker')])
    ln_b = jnp.stack([p[f'{n}_ln_b'] for n in ('reply', 'thread', 'speaker')])
    return wqkv, wo, ln_g, ln_b


def build_qk_weights(p):
    """Pre-slice the q_token (0:INNER) and k_token (2I:3I) columns of dense0/1/2 per
    class and concat across heads -> (H, 13*INNER). The unused half is never computed."""
    wq_parts, wk_parts, bq_parts, bk_parts = [], [], [], []
    for name, C in [('dense0', NUM_ENT), ('dense1', NUM_REL), ('dense2', NUM_POL)]:
        wmat, bvec = p[f'{name}_w'], p[f'{name}_b']
        for c in range(C):
            base = c * 4 * INNER
            wq_parts.append(wmat[:, base:base + INNER])
            wk_parts.append(wmat[:, base + 2 * INNER:base + 3 * INNER])
            bq_parts.append(bvec[base:base + INNER])
            bk_parts.append(bvec[base + 2 * INNER:base + 3 * INNER])
    wq = jnp.concatenate(wq_parts, axis=1).astype(jnp.bfloat16)
    wk = jnp.concatenate(wk_parts, axis=1).astype(jnp.bfloat16)
    bq = jnp.concatenate(bq_parts).reshape(1, -1)
    bk = jnp.concatenate(bk_parts).reshape(1, -1)
    return wq, wk, bq, bk


def fake_bert(ids, segments, p):
    # TODO(synk): pretrained HuggingFace BERT encoder replaced by a deterministic
    #             synthetic embedding lookup (no checkpoint loading).
    return p['word_emb'][ids] + p['seg_emb'][segments]


def merge_sentence(seq_out, input_masks_np, dialogue_length, target_len):
    """Host-side glue: concat per-sentence valid tokens per dialogue, pad to max."""
    ends = list(accumulate(dialogue_length))
    starts = [e - l for e, l in zip(ends, dialogue_length)]
    res = []
    for s, e in zip(starts, ends):
        pieces = [seq_out[j, :int(input_masks_np[j].sum())] for j in range(s, e)]
        res.append(jnp.concatenate(pieces, axis=0))
    maxlen = max(int(r.shape[0]) for r in res)
    maxlen = max(maxlen, target_len)
    out = jnp.zeros((len(res), maxlen, seq_out.shape[-1]), seq_out.dtype)
    for i, r in enumerate(res):
        out = out.at[i, :r.shape[0]].set(r)
    return out


def weighted_ce(pred_logits, labels, masks, num_classes, lw):
    weight = jnp.array([1.0] + [lw] * (num_classes - 1), jnp.float32)
    flat_logits = pred_logits.reshape(-1, num_classes)
    flat_labels = labels.reshape(-1)
    flat_mask = masks.reshape(-1).astype(jnp.float32)
    logp = jax.nn.log_softmax(flat_logits, axis=-1)
    nll = -jnp.take_along_axis(logp, flat_labels[:, None], axis=-1)[:, 0]
    wvec = weight[flat_labels] * flat_mask
    return jnp.sum(wvec * nll) / jnp.sum(wvec)


def forward(p, data):
    seq = fake_bert(data['input_ids'], data['input_segments'], p)
    multi_seq = fake_bert(data['multi_input_ids'], data['multi_input_segments'], p)
    merged = merge_sentence(multi_seq, data['multi_input_masks_np'],
                            data['multi_dialogue_length'], S)
    merged = merged[:, :S]            # the original add requires matching lengths
    # dropout: eval mode -> identity

    wqkv, wo, ln_g, ln_b = build_attn_weights(p)
    wq, wk, bq, bk = build_qk_weights(p)
    masks3 = jnp.stack([data['reply_masks'], data['thread_masks'],
                        data['speaker_masks']], axis=1).astype(jnp.float32)

    # One fused per-batch kernel: dense + residual + 3x attention + LN + max +
    # class q/k projections + pairwise bilinear logits for all 13 classes.
    all_logits = fused_forward(
        seq, merged, p['dense_w'].astype(jnp.bfloat16),
        p['dense_b'].reshape(1, HIDDEN), wqkv, wo, ln_g, ln_b, masks3,
        wq, wk, bq, bk)                                                 # (B,13,S,S)

    tags0 = jnp.transpose(all_logits[:, :NUM_ENT], (0, 2, 3, 1))                   # (B,S,S,6)
    tags1 = jnp.transpose(all_logits[:, NUM_ENT:NUM_ENT + NUM_REL], (0, 2, 3, 1))  # (B,S,S,3)
    tags2 = jnp.transpose(all_logits[:, NUM_ENT + NUM_REL:], (0, 2, 3, 1))         # (B,S,S,4)

    loss0 = weighted_ce(tags0, data['ent_matrix'], data['sentence_masks'], NUM_ENT, LOSS_WEIGHT['ent'])
    loss1 = weighted_ce(tags1, data['rel_matrix'], data['full_masks'], NUM_REL, LOSS_WEIGHT['rel'])
    loss2 = weighted_ce(tags2, data['pol_matrix'], data['full_masks'], NUM_POL, LOSS_WEIGHT['pol'])
    return (loss0, loss1, loss2), (tags0, tags1, tags2)


# ----------------------------- main ------------------------------------------
if __name__ == "__main__":
    key = jax.random.PRNGKey(0)
    pkey, dkey = jax.random.split(key)
    params = init_params(pkey)
    ks = jax.random.split(dkey, 16)

    input_ids = jax.random.randint(ks[0], (B, S), 0, VOCAB)
    input_segments = jnp.zeros((B, S), jnp.int32)
    input_masks = jnp.ones((B, S), jnp.int32)

    # multi-view: 2 sentences per dialogue, each with 4 valid tokens -> merged len == S
    n_multi, S_multi = B * 2, 4
    multi_input_ids = jax.random.randint(ks[1], (n_multi, S_multi), 0, VOCAB)
    multi_input_segments = jnp.zeros((n_multi, S_multi), jnp.int32)
    multi_input_masks_np = np.ones((n_multi, S_multi), np.int32)
    multi_dialogue_length = [2, 2]

    eye = jnp.eye(S, dtype=jnp.int32)[None]
    reply_masks = jnp.maximum(jax.random.randint(ks[2], (B, S, S), 0, 2), eye)
    speaker_masks = jnp.maximum(jax.random.randint(ks[3], (B, S, S), 0, 2), eye)
    thread_masks = jnp.maximum(jax.random.randint(ks[4], (B, S, S), 0, 2), eye)

    ent_matrix = jax.random.randint(ks[5], (B, S, S), 0, NUM_ENT)
    rel_matrix = jax.random.randint(ks[6], (B, S, S), 0, NUM_REL)
    pol_matrix = jax.random.randint(ks[7], (B, S, S), 0, NUM_POL)
    sentence_masks = jnp.ones((B, S, S), jnp.int32)
    full_masks = jnp.ones((B, S, S), jnp.int32)

    data = dict(
        input_ids=input_ids, input_segments=input_segments, input_masks=input_masks,
        multi_input_ids=multi_input_ids, multi_input_segments=multi_input_segments,
        multi_input_masks_np=multi_input_masks_np,
        multi_dialogue_length=multi_dialogue_length,
        reply_masks=reply_masks, speaker_masks=speaker_masks, thread_masks=thread_masks,
        ent_matrix=ent_matrix, rel_matrix=rel_matrix, pol_matrix=pol_matrix,
        sentence_masks=sentence_masks, full_masks=full_masks,
    )

    losses, tags = forward(params, data)
    jax.block_until_ready(losses)
    jax.block_until_ready(tags)
    assert tags[0].shape == (B, S, S, NUM_ENT)
    assert tags[1].shape == (B, S, S, NUM_REL)
    assert tags[2].shape == (B, S, S, NUM_POL)
    assert all(bool(jnp.isfinite(l)) for l in losses)
    print("KERNEL_OK")
</pallas_src>

<mosaic_0001>
module attributes {stable_mosaic.version = 11 : i64} {
  func.func @_fused_model_kernel(%arg0: i32, %arg1: memref<1x8x32xf32, #tpu.memory_space<vmem>>, %arg2: memref<1x8x32xf32, #tpu.memory_space<vmem>>, %arg3: memref<32x32xbf16, #tpu.memory_space<vmem>>, %arg4: memref<1x32xf32, #tpu.memory_space<vmem>>, %arg5: memref<32x288xbf16, #tpu.memory_space<vmem>>, %arg6: memref<3x32x32xbf16, #tpu.memory_space<vmem>>, %arg7: memref<3x32xf32, #tpu.memory_space<vmem>>, %arg8: memref<3x32xf32, #tpu.memory_space<vmem>>, %arg9: memref<1x3x8x8xf32, #tpu.memory_space<vmem>>, %arg10: memref<32x3328xbf16, #tpu.memory_space<vmem>>, %arg11: memref<32x3328xbf16, #tpu.memory_space<vmem>>, %arg12: memref<1x3328xf32, #tpu.memory_space<vmem>>, %arg13: memref<1x3328xf32, #tpu.memory_space<vmem>>, %arg14: memref<1x13x8x8xf32, #tpu.memory_space<vmem>>) attributes {dimension_semantics = [#tpu.dimension_semantics<parallel>], iteration_bounds = array<i64: 2>, scalar_prefetch = 0 : i64, scratch_operands = 0 : i64, tpu.core_type = #tpu.core_type<tc>, window_params = [{transform_indices = @transform_0, window_bounds = array<i64: 1, 8, 32>}, {transform_indices = @transform_1, window_bounds = array<i64: 1, 8, 32>}, {pipeline_mode = #tpu.pipeline_mode<synchronous>, transform_indices = @transform_2, window_bounds = array<i64: 32, 32>}, {pipeline_mode = #tpu.pipeline_mode<synchronous>, transform_indices = @transform_3, window_bounds = array<i64: 1, 32>}, {pipeline_mode = #tpu.pipeline_mode<synchronous>, transform_indices = @transform_4, window_bounds = array<i64: 32, 288>}, {pipeline_mode = #tpu.pipeline_mode<synchronous>, transform_indices = @transform_5, window_bounds = array<i64: 3, 32, 32>}, {pipeline_mode = #tpu.pipeline_mode<synchronous>, transform_indices = @transform_6, window_bounds = array<i64: 3, 32>}, {pipeline_mode = #tpu.pipeline_mode<synchronous>, transform_indices = @transform_7, window_bounds = array<i64: 3, 32>}, {transform_indices = @transform_8, window_bounds = array<i64: 1, 3, 8, 8>}, {pipeline_mode = #tpu.pipeline_mode<synchronous>, transform_indices = @transform_9, window_bounds = array<i64: 32, 3328>}, {pipeline_mode = #tpu.pipeline_mode<synchronous>, transform_indices = @transform_10, window_bounds = array<i64: 32, 3328>}, {pipeline_mode = #tpu.pipeline_mode<synchronous>, transform_indices = @transform_11, window_bounds = array<i64: 1, 3328>}, {pipeline_mode = #tpu.pipeline_mode<synchronous>, transform_indices = @transform_12, window_bounds = array<i64: 1, 3328>}, {transform_indices = @transform_13, window_bounds = array<i64: 1, 13, 8, 8>}]} {
    %c0 = arith.constant 0 : index
    %c0_0 = arith.constant 0 : index
    %c0_1 = arith.constant 0 : index
    %0 = vector.load %arg2[%c0, %c0_0, %c0_1] : memref<1x8x32xf32, #tpu.memory_space<vmem>>, vector<1x8x32xf32>
    %1 = vector.shape_cast %0 : vector<1x8x32xf32> to vector<8x32xf32>
    %2 = arith.truncf %1 : vector<8x32xf32> to vector<8x32xbf16>
    %c0_2 = arith.constant 0 : index
    %c0_3 = arith.constant 0 : index
    %3 = vector.load %arg3[%c0_2, %c0_3] : memref<32x32xbf16, #tpu.memory_space<vmem>>, vector<32x32xbf16>
    %cst = arith.constant dense<0.000000e+00> : vector<8x32xf32>
    %4 = tpu.matmul %2, %3, %cst {dimension_numbers = #tpu.dot_dimension_numbers<[1], [0], [0], [1], [0, 0, 1, 1], [], []>} : vector<8x32xbf16>, vector<32x32xbf16>, vector<8x32xf32> -> vector<8x32xf32>
    %c0_4 = arith.constant 0 : index
    %c0_5 = arith.constant 0 : index
    %5 = vector.load %arg4[%c0_4, %c0_5] : memref<1x32xf32, #tpu.memory_space<vmem>>, vector<1x32xf32>
    %6 = vector.broadcast %5 : vector<1x32xf32> to vector<8x32xf32>
    %7 = arith.addf %4, %6 : vector<8x32xf32>
    %cst_6 = arith.constant 0.000000e+00 : f32
    %8 = vector.broadcast %cst_6 : f32 to vector<8x32xf32>
    %9 = arith.cmpf ogt, %7, %8 : vector<8x32xf32>
    %cst_7 = arith.constant 0.00999999977 : f32
    %10 = vector.broadcast %cst_7 : f32 to vector<8x32xf32>
    %11 = arith.mulf %10, %7 : vector<8x32xf32>
    %12 = arith.select %9, %7, %11 : vector<8x32xi1>, vector<8x32xf32>
    %c0_8 = arith.constant 0 : index
    %c0_9 = arith.constant 0 : index
    %c0_10 = arith.constant 0 : index
    %13 = vector.load %arg1[%c0_8, %c0_9, %c0_10] : memref<1x8x32xf32, #tpu.memory_space<vmem>>, vector<1x8x32xf32>
    %14 = vector.shape_cast %13 : vector<1x8x32xf32> to vector<8x32xf32>
    %15 = arith.addf %14, %12 : vector<8x32xf32>
    %16 = arith.truncf %15 : vector<8x32xf32> to vector<8x32xbf16>
    %c0_11 = arith.constant 0 : index
    %c0_12 = arith.constant 0 : index
    %17 = vector.load %arg5[%c0_11, %c0_12] : memref<32x288xbf16, #tpu.memory_space<vmem>>, vector<32x288xbf16>
    %cst_13 = arith.constant dense<0.000000e+00> : vector<8x288xf32>
    %18 = tpu.matmul %16, %17, %cst_13 {dimension_numbers = #tpu.dot_dimension_numbers<[1], [0], [0], [1], [0, 0, 1, 1], [], []>} : vector<8x32xbf16>, vector<32x288xbf16>, vector<8x288xf32> -> vector<8x288xf32>
    %c0_14 = arith.constant 0 : index
    %c0_15 = arith.constant 0 : index
    %19 = vector.load %arg7[%c0_14, %c0_15] : memref<3x32xf32, #tpu.memory_space<vmem>>, vector<3x32xf32>
    %c0_16 = arith.constant 0 : index
    %c0_17 = arith.constant 0 : index
    %20 = vector.load %arg8[%c0_16, %c0_17] : memref<3x32xf32, #tpu.memory_space<vmem>>, vector<3x32xf32>
    %21 = vector.extract_strided_slice %18 {offsets = [0, 0], sizes = [8, 32], strides = [1, 1]} : vector<8x288xf32> to vector<8x32xf32>
    %22 = vector.extract_strided_slice %18 {offsets = [0, 32], sizes = [8, 32], strides = [1, 1]} : vector<8x288xf32> to vector<8x32xf32>
    %23 = vector.extract_strided_slice %18 {offsets = [0, 64], sizes = [8, 32], strides = [1, 1]} : vector<8x288xf32> to vector<8x32xf32>
    %c0_18 = arith.constant 0 : index
    %c0_19 = arith.constant 0 : index
    %c0_20 = arith.constant 0 : index
    %c0_21 = arith.constant 0 : index
    %24 = vector.load %arg9[%c0_18, %c0_19, %c0_20, %c0_21] : memref<1x3x8x8xf32, #tpu.memory_space<vmem>>, vector<1x1x8x8xf32>
    %25 = vector.shape_cast %24 : vector<1x1x8x8xf32> to vector<8x8xf32>
    %26 = vector.extract_strided_slice %21 {offsets = [0, 0], sizes = [8, 8], strides = [1, 1]} : vector<8x32xf32> to vector<8x8xf32>
    %27 = arith.truncf %26 : vector<8x8xf32> to vector<8x8xbf16>
    %28 = vector.extract_strided_slice %22 {offsets = [0, 0], sizes = [8, 8], strides = [1, 1]} : vector<8x32xf32> to vector<8x8xf32>
    %29 = arith.truncf %28 : vector<8x8xf32> to vector<8x8xbf16>
    %30 = vector.extract_strided_slice %23 {offsets = [0, 0], sizes = [8, 8], strides = [1, 1]} : vector<8x32xf32> to vector<8x8xf32>
    %31 = arith.truncf %30 : vector<8x8xf32> to vector<8x8xbf16>
    %cst_22 = arith.constant dense<0.000000e+00> : vector<8x8xf32>
    %32 = tpu.matmul %27, %29, %cst_22 {dimension_numbers = #tpu.dot_dimension_numbers<[1], [1], [0], [0], [0, 0, 1, 0], [], []>} : vector<8x8xbf16>, vector<8x8xbf16>, vector<8x8xf32> -> vector<8x8xf32>
    %cst_23 = arith.constant 0.353553385 : f32
    %33 = vector.broadcast %cst_23 : f32 to vector<8x8xf32>
    %34 = arith.mulf %32, %33 : vector<8x8xf32>
    %cst_24 = arith.constant 0.000000e+00 : f32
    %35 = vector.broadcast %cst_24 : f32 to vector<8x8xf32>
    %36 = arith.cmpf ogt, %25, %35 : vector<8x8xf32>
    %cst_25 = arith.constant -1.000000e+09 : f32
    %37 = vector.broadcast %cst_25 : f32 to vector<8x8xf32>
    %38 = arith.select %36, %34, %37 : vector<8x8xi1>, vector<8x8xf32>
    %cst_26 = arith.constant dense<0xFF800000> : vector<8xf32>
    %39 = vector.multi_reduction <maximumf>, %38, %cst_26 [1] : vector<8x8xf32> to vector<8xf32>
    %40 = vector.shape_cast %39 : vector<8xf32> to vector<8x1xf32>
    %41 = vector.broadcast %40 : vector<8x1xf32> to vector<8x8xf32>
    %42 = arith.subf %38, %41 : vector<8x8xf32>
    %43 = math.exp %42 : vector<8x8xf32>
    %cst_27 = arith.constant dense<0.000000e+00> : vector<8xf32>
    %44 = vector.multi_reduction <add>, %43, %cst_27 [1] : vector<8x8xf32> to vector<8xf32>
    %45 = vector.shape_cast %44 : vector<8xf32> to vector<8x1xf32>
    %46 = tpu.reciprocal %45 {approx = true} : vector<8x1xf32> -> vector<8x1xf32>
    %47 = vector.broadcast %46 : vector<8x1xf32> to vector<8x8xf32>
    %48 = arith.mulf %43, %47 : vector<8x8xf32>
    %49 = arith.truncf %48 : vector<8x8xf32> to vector<8x8xbf16>
    %cst_28 = arith.constant dense<0.000000e+00> : vector<8x8xf32>
    %50 = tpu.matmul %49, %31, %cst_28 {dimension_numbers = #tpu.dot_dimension_numbers<[1], [0], [0], [1], [0, 0, 1, 1], [], []>} : vector<8x8xbf16>, vector<8x8xbf16>, vector<8x8xf32> -> vector<8x8xf32>
    %51 = vector.extract_strided_slice %21 {offsets = [0, 8], sizes = [8, 8], strides = [1, 1]} : vector<8x32xf32> to vector<8x8xf32>
    %52 = arith.truncf %51 : vector<8x8xf32> to vector<8x8xbf16>
    %53 = vector.extract_strided_slice %22 {offsets = [0, 8], sizes = [8, 8], strides = [1, 1]} : vector<8x32xf32> to vector<8x8xf32>
    %54 = arith.truncf %53 : vector<8x8xf32> to vector<8x8xbf16>
    %55 = vector.extract_strided_slice %23 {offsets = [0, 8], sizes = [8, 8], strides = [1, 1]} : vector<8x32xf32> to vector<8x8xf32>
    %56 = arith.truncf %55 : vector<8x8xf32> to vector<8x8xbf16>
    %cst_29 = arith.constant dense<0.000000e+00> : vector<8x8xf32>
    %57 = tpu.matmul %52, %54, %cst_29 {dimension_numbers = #tpu.dot_dimension_numbers<[1], [1], [0], [0], [0, 0, 1, 0], [], []>} : vector<8x8xbf16>, vector<8x8xbf16>, vector<8x8xf32> -> vector<8x8xf32>
    %cst_30 = arith.constant 0.353553385 : f32
    %58 = vector.broadcast %cst_30 : f32 to vector<8x8xf32>
    %59 = arith.mulf %57, %58 : vector<8x8xf32>
    %cst_31 = arith.constant 0.000000e+00 : f32
    %60 = vector.broadcast %cst_31 : f32 to vector<8x8xf32>
    %61 = arith.cmpf ogt, %25, %60 : vector<8x8xf32>
    %cst_32 = arith.constant -1.000000e+09 : f32
    %62 = vector.broadcast %cst_32 : f32 to vector<8x8xf32>
    %63 = arith.select %61, %59, %62 : vector<8x8xi1>, vector<8x8xf32>
    %cst_33 = arith.constant dense<0xFF800000> : vector<8xf32>
    %64 = vector.multi_reduction <maximumf>, %63, %cst_33 [1] : vector<8x8xf32> to vector<8xf32>
    %65 = vector.shape_cast %64 : vector<8xf32> to vector<8x1xf32>
    %66 = vector.broadcast %65 : vector<8x1xf32> to vector<8x8xf32>
    %67 = arith.subf %63, %66 : vector<8x8xf32>
    %68 = math.exp %67 : vector<8x8xf32>
    %cst_34 = arith.constant dense<0.000000e+00> : vector<8xf32>
    %69 = vector.multi_reduction <add>, %68, %cst_34 [1] : vector<8x8xf32> to vector<8xf32>
    %70 = vector.shape_cast %69 : vector<8xf32> to vector<8x1xf32>
    %71 = tpu.reciprocal %70 {approx = true} : vector<8x1xf32> -> vector<8x1xf32>
    %72 = vector.broadcast %71 : vector<8x1xf32> to vector<8x8xf32>
    %73 = arith.mulf %68, %72 : vector<8x8xf32>
    %74 = arith.truncf %73 : vector<8x8xf32> to vector<8x8xbf16>
    %cst_35 = arith.constant dense<0.000000e+00> : vector<8x8xf32>
    %75 = tpu.matmul %74, %56, %cst_35 {dimension_numbers = #tpu.dot_dimension_numbers<[1], [0], [0], [1], [0, 0, 1, 1], [], []>} : vector<8x8xbf16>, vector<8x8xbf16>, vector<8x8xf32> -> vector<8x8xf32>
    %76 = vector.extract_strided_slice %21 {offsets = [0, 16], sizes = [8, 8], strides = [1, 1]} : vector<8x32xf32> to vector<8x8xf32>
    %77 = arith.truncf %76 : vector<8x8xf32> to vector<8x8xbf16>
    %78 = vector.extract_strided_slice %22 {offsets = [0, 16], sizes = [8, 8], strides = [1, 1]} : vector<8x32xf32> to vector<8x8xf32>
    %79 = arith.truncf %78 : vector<8x8xf32> to vector<8x8xbf16>
    %80 = vector.extract_strided_slice %23 {offsets = [0, 16], sizes = [8, 8], strides = [1, 1]} : vector<8x32xf32> to vector<8x8xf32>
    %81 = arith.truncf %80 : vector<8x8xf32> to vector<8x8xbf16>
    %cst_36 = arith.constant dense<0.000000e+00> : vector<8x8xf32>
    %82 = tpu.matmul %77, %79, %cst_36 {dimension_numbers = #tpu.dot_dimension_numbers<[1], [1], [0], [0], [0, 0, 1, 0], [], []>} : vector<8x8xbf16>, vector<8x8xbf16>, vector<8x8xf32> -> vector<8x8xf32>
    %cst_37 = arith.constant 0.353553385 : f32
    %83 = vector.broadcast %cst_37 : f32 to vector<8x8xf32>
    %84 = arith.mulf %82, %83 : vector<8x8xf32>
    %cst_38 = arith.constant 0.000000e+00 : f32
    %85 = vector.broadcast %cst_38 : f32 to vector<8x8xf32>
    %86 = arith.cmpf ogt, %25, %85 : vector<8x8xf32>
    %cst_39 = arith.constant -1.000000e+09 : f32
    %87 = vector.broadcast %cst_39 : f32 to vector<8x8xf32>
    %88 = arith.select %86, %84, %87 : vector<8x8xi1>, vector<8x8xf32>
    %cst_40 = arith.constant dense<0xFF800000> : vector<8xf32>
    %89 = vector.multi_reduction <maximumf>, %88, %cst_40 [1] : vector<8x8xf32> to vector<8xf32>
    %90 = vector.shape_cast %89 : vector<8xf32> to vector<8x1xf32>
    %91 = vector.broadcast %90 : vector<8x1xf32> to vector<8x8xf32>
    %92 = arith.subf %88, %91 : vector<8x8xf32>
    %93 = math.exp %92 : vector<8x8xf32>
    %cst_41 = arith.constant dense<0.000000e+00> : vector<8xf32>
    %94 = vector.multi_reduction <add>, %93, %cst_41 [1] : vector<8x8xf32> to vector<8xf32>
    %95 = vector.shape_cast %94 : vector<8xf32> to vector<8x1xf32>
    %96 = tpu.reciprocal %95 {approx = true} : vector<8x1xf32> -> vector<8x1xf32>
    %97 = vector.broadcast %96 : vector<8x1xf32> to vector<8x8xf32>
    %98 = arith.mulf %93, %97 : vector<8x8xf32>
    %99 = arith.truncf %98 : vector<8x8xf32> to vector<8x8xbf16>
    %cst_42 = arith.constant dense<0.000000e+00> : vector<8x8xf32>
    %100 = tpu.matmul %99, %81, %cst_42 {dimension_numbers = #tpu.dot_dimension_numbers<[1], [0], [0], [1], [0, 0, 1, 1], [], []>} : vector<8x8xbf16>, vector<8x8xbf16>, vector<8x8xf32> -> vector<8x8xf32>
    %101 = vector.extract_strided_slice %21 {offsets = [0, 24], sizes = [8, 8], strides = [1, 1]} : vector<8x32xf32> to vector<8x8xf32>
    %102 = arith.truncf %101 : vector<8x8xf32> to vector<8x8xbf16>
    %103 = vector.extract_strided_slice %22 {offsets = [0, 24], sizes = [8, 8], strides = [1, 1]} : vector<8x32xf32> to vector<8x8xf32>
    %104 = arith.truncf %103 : vector<8x8xf32> to vector<8x8xbf16>
    %105 = vector.extract_strided_slice %23 {offsets = [0, 24], sizes = [8, 8], strides = [1, 1]} : vector<8x32xf32> to vector<8x8xf32>
    %106 = arith.truncf %105 : vector<8x8xf32> to vector<8x8xbf16>
    %cst_43 = arith.constant dense<0.000000e+00> : vector<8x8xf32>
    %107 = tpu.matmul %102, %104, %cst_43 {dimension_numbers = #tpu.dot_dimension_numbers<[1], [1], [0], [0], [0, 0, 1, 0], [], []>} : vector<8x8xbf16>, vector<8x8xbf16>, vector<8x8xf32> -> vector<8x8xf32>
    %cst_44 = arith.constant 0.353553385 : f32
    %108 = vector.broadcast %cst_44 : f32 to vector<8x8xf32>
    %109 = arith.mulf %107, %108 : vector<8x8xf32>
    %cst_45 = arith.constant 0.000000e+00 : f32
    %110 = vector.broadcast %cst_45 : f32 to vector<8x8xf32>
    %111 = arith.cmpf ogt, %25, %110 : vector<8x8xf32>
    %cst_46 = arith.constant -1.000000e+09 : f32
    %112 = vector.broadcast %cst_46 : f32 to vector<8x8xf32>
    %113 = arith.select %111, %109, %112 : vector<8x8xi1>, vector<8x8xf32>
    %cst_47 = arith.constant dense<0xFF800000> : vector<8xf32>
    %114 = vector.multi_reduction <maximumf>, %113, %cst_47 [1] : vector<8x8xf32> to vector<8xf32>
    %115 = vector.shape_cast %114 : vector<8xf32> to vector<8x1xf32>
    %116 = vector.broadcast %115 : vector<8x1xf32> to vector<8x8xf32>
    %117 = arith.subf %113, %116 : vector<8x8xf32>
    %118 = math.exp %117 : vector<8x8xf32>
    %cst_48 = arith.constant dense<0.000000e+00> : vector<8xf32>
    %119 = vector.multi_reduction <add>, %118, %cst_48 [1] : vector<8x8xf32> to vector<8xf32>
    %120 = vector.shape_cast %119 : vector<8xf32> to vector<8x1xf32>
    %121 = tpu.reciprocal %120 {approx = true} : vector<8x1xf32> -> vector<8x1xf32>
    %122 = vector.broadcast %121 : vector<8x1xf32> to vector<8x8xf32>
    %123 = arith.mulf %118, %122 : vector<8x8xf32>
    %124 = arith.truncf %123 : vector<8x8xf32> to vector<8x8xbf16>
    %cst_49 = arith.constant dense<0.000000e+00> : vector<8x8xf32>
    %125 = tpu.matmul %124, %106, %cst_49 {dimension_numbers = #tpu.dot_dimension_numbers<[1], [0], [0], [1], [0, 0, 1, 1], [], []>} : vector<8x8xbf16>, vector<8x8xbf16>, vector<8x8xf32> -> vector<8x8xf32>
    %126 = tpu.concatenate %50, %75, %100, %125 in 1 : vector<8x8xf32>, vector<8x8xf32>, vector<8x8xf32>, vector<8x8xf32> -> vector<8x32xf32>
    %127 = arith.truncf %126 : vector<8x32xf32> to vector<8x32xbf16>
    %c0_50 = arith.constant 0 : index
    %c0_51 = arith.constant 0 : index
    %c0_52 = arith.constant 0 : index
    %128 = vector.load %arg6[%c0_50, %c0_51, %c0_52] : memref<3x32x32xbf16, #tpu.memory_space<vmem>>, vector<1x32x32xbf16>
    %129 = vector.shape_cast %128 : vector<1x32x32xbf16> to vector<32x32xbf16>
    %cst_53 = arith.constant dense<0.000000e+00> : vector<8x32xf32>
    %130 = tpu.matmul %127, %129, %cst_53 {dimension_numbers = #tpu.dot_dimension_numbers<[1], [0], [0], [1], [0, 0, 1, 1], [], []>} : vector<8x32xbf16>, vector<32x32xbf16>, vector<8x32xf32> -> vector<8x32xf32>
    %131 = arith.addf %130, %15 : vector<8x32xf32>
    %cst_54 = arith.constant dense<0.000000e+00> : vector<8xf32>
    %132 = vector.multi_reduction <add>, %131, %cst_54 [1] : vector<8x32xf32> to vector<8xf32>
    %133 = vector.shape_cast %132 : vector<8xf32> to vector<8x1xf32>
    %cst_55 = arith.constant 3.200000e+01 : f32
    %134 = vector.broadcast %cst_55 : f32 to vector<8x1xf32>
    %135 = arith.divf %133, %134 : vector<8x1xf32>
    %136 = vector.broadcast %135 : vector<8x1xf32> to vector<8x32xf32>
    %137 = arith.subf %131, %136 : vector<8x32xf32>
    %138 = arith.mulf %137, %137 : vector<8x32xf32>
    %cst_56 = arith.constant dense<0.000000e+00> : vector<8xf32>
    %139 = vector.multi_reduction <add>, %138, %cst_56 [1] : vector<8x32xf32> to vector<8xf32>
    %140 = vector.shape_cast %139 : vector<8xf32> to vector<8x1xf32>
    %cst_57 = arith.constant 3.200000e+01 : f32
    %141 = vector.broadcast %cst_57 : f32 to vector<8x1xf32>
    %142 = arith.divf %140, %141 : vector<8x1xf32>
    %143 = vector.broadcast %135 : vector<8x1xf32> to vector<8x32xf32>
    %144 = arith.subf %131, %143 : vector<8x32xf32>
    %cst_58 = arith.constant 9.99999997E-7 : f32
    %145 = vector.broadcast %cst_58 : f32 to vector<8x1xf32>
    %146 = arith.addf %142, %145 : vector<8x1xf32>
    %147 = math.rsqrt %146 : vector<8x1xf32>
    %148 = vector.broadcast %147 : vector<8x1xf32> to vector<8x32xf32>
    %149 = arith.mulf %144, %148 : vector<8x32xf32>
    %150 = vector.extract_strided_slice %19 {offsets = [0, 0], sizes = [1, 32], strides = [1, 1]} : vector<3x32xf32> to vector<1x32xf32>
    %151 = vector.broadcast %150 : vector<1x32xf32> to vector<8x32xf32>
    %152 = arith.mulf %149, %151 : vector<8x32xf32>
    %153 = vector.extract_strided_slice %20 {offsets = [0, 0], sizes = [1, 32], strides = [1, 1]} : vector<3x32xf32> to vector<1x32xf32>
    %154 = vector.broadcast %153 : vector<1x32xf32> to vector<8x32xf32>
    %155 = arith.addf %152, %154 : vector<8x32xf32>
    %156 = vector.extract_strided_slice %18 {offsets = [0, 96], sizes = [8, 32], strides = [1, 1]} : vector<8x288xf32> to vector<8x32xf32>
    %157 = vector.extract_strided_slice %18 {offsets = [0, 128], sizes = [8, 32], strides = [1, 1]} : vector<8x288xf32> to vector<8x32xf32>
    %158 = vector.extract_strided_slice %18 {offsets = [0, 160], sizes = [8, 32], strides = [1, 1]} : vector<8x288xf32> to vector<8x32xf32>
    %c0_59 = arith.constant 0 : index
    %c1 = arith.constant 1 : index
    %c0_60 = arith.constant 0 : index
    %c0_61 = arith.constant 0 : index
    %159 = vector.load %arg9[%c0_59, %c1, %c0_60, %c0_61] : memref<1x3x8x8xf32, #tpu.memory_space<vmem>>, vector<1x1x8x8xf32>
    %160 = vector.shape_cast %159 : vector<1x1x8x8xf32> to vector<8x8xf32>
    %161 = vector.extract_strided_slice %156 {offsets = [0, 0], sizes = [8, 8], strides = [1, 1]} : vector<8x32xf32> to vector<8x8xf32>
    %162 = arith.truncf %161 : vector<8x8xf32> to vector<8x8xbf16>
    %163 = vector.extract_strided_slice %157 {offsets = [0, 0], sizes = [8, 8], strides = [1, 1]} : vector<8x32xf32> to vector<8x8xf32>
    %164 = arith.truncf %163 : vector<8x8xf32> to vector<8x8xbf16>
    %165 = vector.extract_strided_slice %158 {offsets = [0, 0], sizes = [8, 8], strides = [1, 1]} : vector<8x32xf32> to vector<8x8xf32>
    %166 = arith.truncf %165 : vector<8x8xf32> to vector<8x8xbf16>
    %cst_62 = arith.constant dense<0.000000e+00> : vector<8x8xf32>
    %167 = tpu.matmul %162, %164, %cst_62 {dimension_numbers = #tpu.dot_dimension_numbers<[1], [1], [0], [0], [0, 0, 1, 0], [], []>} : vector<8x8xbf16>, vector<8x8xbf16>, vector<8x8xf32> -> vector<8x8xf32>
    %cst_63 = arith.constant 0.353553385 : f32
    %168 = vector.broadcast %cst_63 : f32 to vector<8x8xf32>
    %169 = arith.mulf %167, %168 : vector<8x8xf32>
    %cst_64 = arith.constant 0.000000e+00 : f32
    %170 = vector.broadcast %cst_64 : f32 to vector<8x8xf32>
    %171 = arith.cmpf ogt, %160, %170 : vector<8x8xf32>
    %cst_65 = arith.constant -1.000000e+09 : f32
    %172 = vector.broadcast %cst_65 : f32 to vector<8x8xf32>
    %173 = arith.select %171, %169, %172 : vector<8x8xi1>, vector<8x8xf32>
    %cst_66 = arith.constant dense<0xFF800000> : vector<8xf32>
    %174 = vector.multi_reduction <maximumf>, %173, %cst_66 [1] : vector<8x8xf32> to vector<8xf32>
    %175 = vector.shape_cast %174 : vector<8xf32> to vector<8x1xf32>
    %176 = vector.broadcast %175 : vector<8x1xf32> to vector<8x8xf32>
    %177 = arith.subf %173, %176 : vector<8x8xf32>
    %178 = math.exp %177 : vector<8x8xf32>
    %cst_67 = arith.constant dense<0.000000e+00> : vector<8xf32>
    %179 = vector.multi_reduction <add>, %178, %cst_67 [1] : vector<8x8xf32> to vector<8xf32>
    %180 = vector.shape_cast %179 : vector<8xf32> to vector<8x1xf32>
    %181 = tpu.reciprocal %180 {approx = true} : vector<8x1xf32> -> vector<8x1xf32>
    %182 = vector.broadcast %181 : vector<8x1xf32> to vector<8x8xf32>
    %183 = arith.mulf %178, %182 : vector<8x8xf32>
    %184 = arith.truncf %183 : vector<8x8xf32> to vector<8x8xbf16>
    %cst_68 = arith.constant dense<0.000000e+00> : vector<8x8xf32>
    %185 = tpu.matmul %184, %166, %cst_68 {dimension_numbers = #tpu.dot_dimension_numbers<[1], [0], [0], [1], [0, 0, 1, 1], [], []>} : vector<8x8xbf16>, vector<8x8xbf16>, vector<8x8xf32> -> vector<8x8xf32>
    %186 = vector.extract_strided_slice %156 {offsets = [0, 8], sizes = [8, 8], strides = [1, 1]} : vector<8x32xf32> to vector<8x8xf32>
    %187 = arith.truncf %186 : vector<8x8xf32> to vector<8x8xbf16>
    %188 = vector.extract_strided_slice %157 {offsets = [0, 8], sizes = [8, 8], strides = [1, 1]} : vector<8x32xf32> to vector<8x8xf32>
    %189 = arith.truncf %188 : vector<8x8xf32> to vector<8x8xbf16>
    %190 = vector.extract_strided_slice %158 {offsets = [0, 8], sizes = [8, 8], strides = [1, 1]} : vector<8x32xf32> to vector<8x8xf32>
    %191 = arith.truncf %190 : vector<8x8xf32> to vector<8x8xbf16>
    %cst_69 = arith.constant dense<0.000000e+00> : vector<8x8xf32>
    %192 = tpu.matmul %187, %189, %cst_69 {dimension_numbers = #tpu.dot_dimension_numbers<[1], [1], [0], [0], [0, 0, 1, 0], [], []>} : vector<8x8xbf16>, vector<8x8xbf16>, vector<8x8xf32> -> vector<8x8xf32>
    %cst_70 = arith.constant 0.353553385 : f32
    %193 = vector.broadcast %cst_70 : f32 to vector<8x8xf32>
    %194 = arith.mulf %192, %193 : vector<8x8xf32>
    %cst_71 = arith.constant 0.000000e+00 : f32
    %195 = vector.broadcast %cst_71 : f32 to vector<8x8xf32>
    %196 = arith.cmpf ogt, %160, %195 : vector<8x8xf32>
    %cst_72 = arith.constant -1.000000e+09 : f32
    %197 = vector.broadcast %cst_72 : f32 to vector<8x8xf32>
    %198 = arith.select %196, %194, %197 : vector<8x8xi1>, vector<8x8xf32>
    %cst_73 = arith.constant dense<0xFF800000> : vector<8xf32>
    %199 = vector.multi_reduction <maximumf>, %198, %cst_73 [1] : vector<8x8xf32> to vector<8xf32>
    %200 = vector.shape_cast %199 : vector<8xf32> to vector<8x1xf32>
    %201 = vector.broadcast %200 : vector<8x1xf32> to vector<8x8xf32>
    %202 = arith.subf %198, %201 : vector<8x8xf32>
    %203 = math.exp %202 : vector<8x8xf32>
    %cst_74 = arith.constant dense<0.000000e+00> : vector<8xf32>
    %204 = vector.multi_reduction <add>, %203, %cst_74 [1] : vector<8x8xf32> to vector<8xf32>
    %205 = vector.shape_cast %204 : vector<8xf32> to vector<8x1xf32>
    %206 = tpu.reciprocal %205 {approx = true} : vector<8x1xf32> -> vector<8x1xf32>
    %207 = vector.broadcast %206 : vector<8x1xf32> to vector<8x8xf32>
    %208 = arith.mulf %203, %207 : vector<8x8xf32>
    %209 = arith.truncf %208 : vector<8x8xf32> to vector<8x8xbf16>
    %cst_75 = arith.constant dense<0.000000e+00> : vector<8x8xf32>
    %210 = tpu.matmul %209, %191, %cst_75 {dimension_numbers = #tpu.dot_dimension_numbers<[1], [0], [0], [1], [0, 0, 1, 1], [], []>} : vector<8x8xbf16>, vector<8x8xbf16>, vector<8x8xf32> -> vector<8x8xf32>
    %211 = vector.extract_strided_slice %156 {offsets = [0, 16], sizes = [8, 8], strides = [1, 1]} : vector<8x32xf32> to vector<8x8xf32>
    %212 = arith.truncf %211 : vector<8x8xf32> to vector<8x8xbf16>
    %213 = vector.extract_strided_slice %157 {offsets = [0, 16], sizes = [8, 8], strides = [1, 1]} : vector<8x32xf32> to vector<8x8xf32>
    %214 = arith.truncf %213 : vector<8x8xf32> to vector<8x8xbf16>
    %215 = vector.extract_strided_slice %158 {offsets = [0, 16], sizes = [8, 8], strides = [1, 1]} : vector<8x32xf32> to vector<8x8xf32>
    %216 = arith.truncf %215 : vector<8x8xf32> to vector<8x8xbf16>
    %cst_76 = arith.constant dense<0.000000e+00> : vector<8x8xf32>
    %217 = tpu.matmul %212, %214, %cst_76 {dimension_numbers = #tpu.dot_dimension_numbers<[1], [1], [0], [0], [0, 0, 1, 0], [], []>} : vector<8x8xbf16>, vector<8x8xbf16>, vector<8x8xf32> -> vector<8x8xf32>
    %cst_77 = arith.constant 0.353553385 : f32
    %218 = vector.broadcast %cst_77 : f32 to vector<8x8xf32>
    %219 = arith.mulf %217, %218 : vector<8x8xf32>
    %cst_78 = arith.constant 0.000000e+00 : f32
    %220 = vector.broadcast %cst_78 : f32 to vector<8x8xf32>
    %221 = arith.cmpf ogt, %160, %220 : vector<8x8xf32>
    %cst_79 = arith.constant -1.000000e+09 : f32
    %222 = vector.broadcast %cst_79 : f32 to vector<8x8xf32>
    %223 = arith.select %221, %219, %222 : vector<8x8xi1>, vector<8x8xf32>
    %cst_80 = arith.constant dense<0xFF800000> : vector<8xf32>
    %224 = vector.multi_reduction <maximumf>, %223, %cst_80 [1] : vector<8x8xf32> to vector<8xf32>
    %225 = vector.shape_cast %224 : vector<8xf32> to vector<8x1xf32>
    %226 = vector.broadcast %225 : vector<8x1xf32> to vector<8x8xf32>
    %227 = arith.subf %223, %226 : vector<8x8xf32>
    %228 = math.exp %227 : vector<8x8xf32>
    %cst_81 = arith.constant dense<0.000000e+00> : vector<8xf32>
    %229 = vector.multi_reduction <add>, %228, %cst_81 [1] : vector<8x8xf32> to vector<8xf32>
    %230 = vector.shape_cast %229 : vector<8xf32> to vector<8x1xf32>
    %231 = tpu.reciprocal %230 {approx = true} : vector<8x1xf32> -> vector<8x1xf32>
    %232 = vector.broadcast %231 : vector<8x1xf32> to vector<8x8xf32>
    %233 = arith.mulf %228, %232 : vector<8x8xf32>
    %234 = arith.truncf %233 : vector<8x8xf32> to vector<8x8xbf16>
    %cst_82 = arith.constant dense<0.000000e+00> : vector<8x8xf32>
    %235 = tpu.matmul %234, %216, %cst_82 {dimension_numbers = #tpu.dot_dimension_numbers<[1], [0], [0], [1], [0, 0, 1, 1], [], []>} : vector<8x8xbf16>, vector<8x8xbf16>, vector<8x8xf32> -> vector<8x8xf32>
    %236 = vector.extract_strided_slice %156 {offsets = [0, 24], sizes = [8, 8], strides = [1, 1]} : vector<8x32xf32> to vector<8x8xf32>
    %237 = arith.truncf %236 : vector<8x8xf32> to vector<8x8xbf16>
    %238 = vector.extract_strided_slice %157 {offsets = [0, 24], sizes = [8, 8], strides = [1, 1]} : vector<8x32xf32> to vector<8x8xf32>
    %239 = arith.truncf %238 : vector<8x8xf32> to vector<8x8xbf16>
    %240 = vector.extract_strided_slice %158 {offsets = [0, 24], sizes = [8, 8], strides = [1, 1]} : vector<8x32xf32> to vector<8x8xf32>
    %241 = arith.truncf %240 : vector<8x8xf32> to vector<8x8xbf16>
    %cst_83 = arith.constant dense<0.000000e+00> : vector<8x8xf32>
    %242 = tpu.matmul %237, %239, %cst_83 {dimension_numbers = #tpu.dot_dimension_numbers<[1], [1], [0], [0], [0, 0, 1, 0], [], []>} : vector<8x8xbf16>, vector<8x8xbf16>, vector<8x8xf32> -> vector<8x8xf32>
    %cst_84 = arith.constant 0.353553385 : f32
    %243 = vector.broadcast %cst_84 : f32 to vector<8x8xf32>
    %244 = arith.mulf %242, %243 : vector<8x8xf32>
    %cst_85 = arith.constant 0.000000e+00 : f32
    %245 = vector.broadcast %cst_85 : f32 to vector<8x8xf32>
    %246 = arith.cmpf ogt, %160, %245 : vector<8x8xf32>
    %cst_86 = arith.constant -1.000000e+09 : f32
    %247 = vector.broadcast %cst_86 : f32 to vector<8x8xf32>
    %248 = arith.select %246, %244, %247 : vector<8x8xi1>, vector<8x8xf32>
    %cst_87 = arith.constant dense<0xFF800000> : vector<8xf32>
    %249 = vector.multi_reduction <maximumf>, %248, %cst_87 [1] : vector<8x8xf32> to vector<8xf32>
    %250 = vector.shape_cast %249 : vector<8xf32> to vector<8x1xf32>
    %251 = vector.broadcast %250 : vector<8x1xf32> to vector<8x8xf32>
    %252 = arith.subf %248, %251 : vector<8x8xf32>
    %253 = math.exp %252 : vector<8x8xf32>
    %cst_88 = arith.constant dense<0.000000e+00> : vector<8xf32>
    %254 = vector.multi_reduction <add>, %253, %cst_88 [1] : vector<8x8xf32> to vector<8xf32>
    %255 = vector.shape_cast %254 : vector<8xf32> to vector<8x1xf32>
    %256 = tpu.reciprocal %255 {approx = true} : vector<8x1xf32> -> vector<8x1xf32>
    %257 = vector.broadcast %256 : vector<8x1xf32> to vector<8x8xf32>
    %258 = arith.mulf %253, %257 : vector<8x8xf32>
    %259 = arith.truncf %258 : vector<8x8xf32> to vector<8x8xbf16>
    %cst_89 = arith.constant dense<0.000000e+00> : vector<8x8xf32>
    %260 = tpu.matmul %259, %241, %cst_89 {dimension_numbers = #tpu.dot_dimension_numbers<[1], [0], [0], [1], [0, 0, 1, 1], [], []>} : vector<8x8xbf16>, vector<8x8xbf16>, vector<8x8xf32> -> vector<8x8xf32>
    %261 = tpu.concatenate %185, %210, %235, %260 in 1 : vector<8x8xf32>, vector<8x8xf32>, vector<8x8xf32>, vector<8x8xf32> -> vector<8x32xf32>
    %262 = arith.truncf %261 : vector<8x32xf32> to vector<8x32xbf16>
    %c1_90 = arith.constant 1 : index
    %c0_91 = arith.constant 0 : index
    %c0_92 = arith.constant 0 : index
    %263 = vector.load %arg6[%c1_90, %c0_91, %c0_92] : memref<3x32x32xbf16, #tpu.memory_space<vmem>>, vector<1x32x32xbf16>
    %264 = vector.shape_cast %263 : vector<1x32x32xbf16> to vector<32x32xbf16>
    %cst_93 = arith.constant dense<0.000000e+00> : vector<8x32xf32>
    %265 = tpu.matmul %262, %264, %cst_93 {dimension_numbers = #tpu.dot_dimension_numbers<[1], [0], [0], [1], [0, 0, 1, 1], [], []>} : vector<8x32xbf16>, vector<32x32xbf16>, vector<8x32xf32> -> vector<8x32xf32>
    %266 = arith.addf %265, %15 : vector<8x32xf32>
    %cst_94 = arith.constant dense<0.000000e+00> : vector<8xf32>
    %267 = vector.multi_reduction <add>, %266, %cst_94 [1] : vector<8x32xf32> to vector<8xf32>
    %268 = vector.shape_cast %267 : vector<8xf32> to vector<8x1xf32>
    %cst_95 = arith.constant 3.200000e+01 : f32
    %269 = vector.broadcast %cst_95 : f32 to vector<8x1xf32>
    %270 = arith.divf %268, %269 : vector<8x1xf32>
    %271 = vector.broadcast %270 : vector<8x1xf32> to vector<8x32xf32>
    %272 = arith.subf %266, %271 : vector<8x32xf32>
    %273 = arith.mulf %272, %272 : vector<8x32xf32>
    %cst_96 = arith.constant dense<0.000000e+00> : vector<8xf32>
    %274 = vector.multi_reduction <add>, %273, %cst_96 [1] : vector<8x32xf32> to vector<8xf32>
    %275 = vector.shape_cast %274 : vector<8xf32> to vector<8x1xf32>
    %cst_97 = arith.constant 3.200000e+01 : f32
    %276 = vector.broadcast %cst_97 : f32 to vector<8x1xf32>
    %277 = arith.divf %275, %276 : vector<8x1xf32>
    %278 = vector.broadcast %270 : vector<8x1xf32> to vector<8x32xf32>
    %279 = arith.subf %266, %278 : vector<8x32xf32>
    %cst_98 = arith.constant 9.99999997E-7 : f32
    %280 = vector.broadcast %cst_98 : f32 to vector<8x1xf32>
    %281 = arith.addf %277, %280 : vector<8x1xf32>
    %282 = math.rsqrt %281 : vector<8x1xf32>
    %283 = vector.broadcast %282 : vector<8x1xf32> to vector<8x32xf32>
    %284 = arith.mulf %279, %283 : vector<8x32xf32>
    %285 = vector.extract_strided_slice %19 {offsets = [1, 0], sizes = [1, 32], strides = [1, 1]} : vector<3x32xf32> to vector<1x32xf32>
    %286 = vector.broadcast %285 : vector<1x32xf32> to vector<8x32xf32>
    %287 = arith.mulf %284, %286 : vector<8x32xf32>
    %288 = vector.extract_strided_slice %20 {offsets = [1, 0], sizes = [1, 32], strides = [1, 1]} : vector<3x32xf32> to vector<1x32xf32>
    %289 = vector.broadcast %288 : vector<1x32xf32> to vector<8x32xf32>
    %290 = arith.addf %287, %289 : vector<8x32xf32>
    %291 = vector.extract_strided_slice %18 {offsets = [0, 192], sizes = [8, 32], strides = [1, 1]} : vector<8x288xf32> to vector<8x32xf32>
    %292 = vector.extract_strided_slice %18 {offsets = [0, 224], sizes = [8, 32], strides = [1, 1]} : vector<8x288xf32> to vector<8x32xf32>
    %293 = vector.extract_strided_slice %18 {offsets = [0, 256], sizes = [8, 32], strides = [1, 1]} : vector<8x288xf32> to vector<8x32xf32>
    %c0_99 = arith.constant 0 : index
    %c2 = arith.constant 2 : index
    %c0_100 = arith.constant 0 : index
    %c0_101 = arith.constant 0 : index
    %294 = vector.load %arg9[%c0_99, %c2, %c0_100, %c0_101] : memref<1x3x8x8xf32, #tpu.memory_space<vmem>>, vector<1x1x8x8xf32>
    %295 = vector.shape_cast %294 : vector<1x1x8x8xf32> to vector<8x8xf32>
    %296 = vector.extract_strided_slice %291 {offsets = [0, 0], sizes = [8, 8], strides = [1, 1]} : vector<8x32xf32> to vector<8x8xf32>
    %297 = arith.truncf %296 : vector<8x8xf32> to vector<8x8xbf16>
    %298 = vector.extract_strided_slice %292 {offsets = [0, 0], sizes = [8, 8], strides = [1, 1]} : vector<8x32xf32> to vector<8x8xf32>
    %299 = arith.truncf %298 : vector<8x8xf32> to vector<8x8xbf16>
    %300 = vector.extract_strided_slice %293 {offsets = [0, 0], sizes = [8, 8], strides = [1, 1]} : vector<8x32xf32> to vector<8x8xf32>
    %301 = arith.truncf %300 : vector<8x8xf32> to vector<8x8xbf16>
    %cst_102 = arith.constant dense<0.000000e+00> : vector<8x8xf32>
    %302 = tpu.matmul %297, %299, %cst_102 {dimension_numbers = #tpu.dot_dimension_numbers<[1], [1], [0], [0], [0, 0, 1, 0], [], []>} : vector<8x8xbf16>, vector<8x8xbf16>, vector<8x8xf32> -> vector<8x8xf32>
    %cst_103 = arith.constant 0.353553385 : f32
    %303 = vector.broadcast %cst_103 : f32 to vector<8x8xf32>
    %304 = arith.mulf %302, %303 : vector<8x8xf32>
    %cst_104 = arith.constant 0.000000e+00 : f32
    %305 = vector.broadcast %cst_104 : f32 to vector<8x8xf32>
    %306 = arith.cmpf ogt, %295, %305 : vector<8x8xf32>
    %cst_105 = arith.constant -1.000000e+09 : f32
    %307 = vector.broadcast %cst_105 : f32 to vector<8x8xf32>
    %308 = arith.select %306, %304, %307 : vector<8x8xi1>, vector<8x8xf32>
    %cst_106 = arith.constant dense<0xFF800000> : vector<8xf32>
    %309 = vector.multi_reduction <maximumf>, %308, %cst_106 [1] : vector<8x8xf32> to vector<8xf32>
    %310 = vector.shape_cast %309 : vector<8xf32> to vector<8x1xf32>
    %311 = vector.broadcast %310 : vector<8x1xf32> to vector<8x8xf32>
    %312 = arith.subf %308, %311 : vector<8x8xf32>
    %313 = math.exp %312 : vector<8x8xf32>
    %cst_107 = arith.constant dense<0.000000e+00> : vector<8xf32>
    %314 = vector.multi_reduction <add>, %313, %cst_107 [1] : vector<8x8xf32> to vector<8xf32>
    %315 = vector.shape_cast %314 : vector<8xf32> to vector<8x1xf32>
    %316 = tpu.reciprocal %315 {approx = true} : vector<8x1xf32> -> vector<8x1xf32>
    %317 = vector.broadcast %316 : vector<8x1xf32> to vector<8x8xf32>
    %318 = arith.mulf %313, %317 : vector<8x8xf32>
    %319 = arith.truncf %318 : vector<8x8xf32> to vector<8x8xbf16>
    %cst_108 = arith.constant dense<0.000000e+00> : vector<8x8xf32>
    %320 = tpu.matmul %319, %301, %cst_108 {dimension_numbers = #tpu.dot_dimension_numbers<[1], [0], [0], [1], [0, 0, 1, 1], [], []>} : vector<8x8xbf16>, vector<8x8xbf16>, vector<8x8xf32> -> vector<8x8xf32>
    %321 = vector.extract_strided_slice %291 {offsets = [0, 8], sizes = [8, 8], strides = [1, 1]} : vector<8x32xf32> to vector<8x8xf32>
    %322 = arith.truncf %321 : vector<8x8xf32> to vector<8x8xbf16>
    %323 = vector.extract_strided_slice %292 {offsets = [0, 8], sizes = [8, 8], strides = [1, 1]} : vector<8x32xf32> to vector<8x8xf32>
    %324 = arith.truncf %323 : vector<8x8xf32> to vector<8x8xbf16>
    %325 = vector.extract_strided_slice %293 {offsets = [0, 8], sizes = [8, 8], strides = [1, 1]} : vector<8x32xf32> to vector<8x8xf32>
    %326 = arith.truncf %325 : vector<8x8xf32> to vector<8x8xbf16>
    %cst_109 = arith.constant dense<0.000000e+00> : vector<8x8xf32>
    %327 = tpu.matmul %322, %324, %cst_109 {dimension_numbers = #tpu.dot_dimension_numbers<[1], [1], [0], [0], [0, 0, 1, 0], [], []>} : vector<8x8xbf16>, vector<8x8xbf16>, vector<8x8xf32> -> vector<8x8xf32>
    %cst_110 = arith.constant 0.353553385 : f32
    %328 = vector.broadcast %cst_110 : f32 to vector<8x8xf32>
    %329 = arith.mulf %327, %328 : vector<8x8xf32>
    %cst_111 = arith.constant 0.000000e+00 : f32
    %330 = vector.broadcast %cst_111 : f32 to vector<8x8xf32>
    %331 = arith.cmpf ogt, %295, %330 : vector<8x8xf32>
    %cst_112 = arith.constant -1.000000e+09 : f32
    %332 = vector.broadcast %cst_112 : f32 to vector<8x8xf32>
    %333 = arith.select %331, %329, %332 : vector<8x8xi1>, vector<8x8xf32>
    %cst_113 = arith.constant dense<0xFF800000> : vector<8xf32>
    %334 = vector.multi_reduction <maximumf>, %333, %cst_113 [1] : vector<8x8xf32> to vector<8xf32>
    %335 = vector.shape_cast %334 : vector<8xf32> to vector<8x1xf32>
    %336 = vector.broadcast %335 : vector<8x1xf32> to vector<8x8xf32>
    %337 = arith.subf %333, %336 : vector<8x8xf32>
    %338 = math.exp %337 : vector<8x8xf32>
    %cst_114 = arith.constant dense<0.000000e+00> : vector<8xf32>
    %339 = vector.multi_reduction <add>, %338, %cst_114 [1] : vector<8x8xf32> to vector<8xf32>
    %340 = vector.shape_cast %339 : vector<8xf32> to vector<8x1xf32>
    %341 = tpu.reciprocal %340 {approx = true} : vector<8x1xf32> -> vector<8x1xf32>
    %342 = vector.broadcast %341 : vector<8x1xf32> to vector<8x8xf32>
    %343 = arith.mulf %338, %342 : vector<8x8xf32>
    %344 = arith.truncf %343 : vector<8x8xf32> to vector<8x8xbf16>
    %cst_115 = arith.constant dense<0.000000e+00> : vector<8x8xf32>
    %345 = tpu.matmul %344, %326, %cst_115 {dimension_numbers = #tpu.dot_dimension_numbers<[1], [0], [0], [1], [0, 0, 1, 1], [], []>} : vector<8x8xbf16>, vector<8x8xbf16>, vector<8x8xf32> -> vector<8x8xf32>
    %346 = vector.extract_strided_slice %291 {offsets = [0, 16], sizes = [8, 8], strides = [1, 1]} : vector<8x32xf32> to vector<8x8xf32>
    %347 = arith.truncf %346 : vector<8x8xf32> to vector<8x8xbf16>
    %348 = vector.extract_strided_slice %292 {offsets = [0, 16], sizes = [8, 8], strides = [1, 1]} : vector<8x32xf32> to vector<8x8xf32>
    %349 = arith.truncf %348 : vector<8x8xf32> to vector<8x8xbf16>
    %350 = vector.extract_strided_slice %293 {offsets = [0, 16], sizes = [8, 8], strides = [1, 1]} : vector<8x32xf32> to vector<8x8xf32>
    %351 = arith.truncf %350 : vector<8x8xf32> to vector<8x8xbf16>
    %cst_116 = arith.constant dense<0.000000e+00> : vector<8x8xf32>
    %352 = tpu.matmul %347, %349, %cst_116 {dimension_numbers = #tpu.dot_dimension_numbers<[1], [1], [0], [0], [0, 0, 1, 0], [], []>} : vector<8x8xbf16>, vector<8x8xbf16>, vector<8x8xf32> -> vector<8x8xf32>
    %cst_117 = arith.constant 0.353553385 : f32
    %353 = vector.broadcast %cst_117 : f32 to vector<8x8xf32>
    %354 = arith.mulf %352, %353 : vector<8x8xf32>
    %cst_118 = arith.constant 0.000000e+00 : f32
    %355 = vector.broadcast %cst_118 : f32 to vector<8x8xf32>
    %356 = arith.cmpf ogt, %295, %355 : vector<8x8xf32>
    %cst_119 = arith.constant -1.000000e+09 : f32
    %357 = vector.broadcast %cst_119 : f32 to vector<8x8xf32>
    %358 = arith.select %356, %354, %357 : vector<8x8xi1>, vector<8x8xf32>
    %cst_120 = arith.constant dense<0xFF800000> : vector<8xf32>
    %359 = vector.multi_reduction <maximumf>, %358, %cst_120 [1] : vector<8x8xf32> to vector<8xf32>
    %360 = vector.shape_cast %359 : vector<8xf32> to vector<8x1xf32>
    %361 = vector.broadcast %360 : vector<8x1xf32> to vector<8x8xf32>
    %362 = arith.subf %358, %361 : vector<8x8xf32>
    %363 = math.exp %362 : vector<8x8xf32>
    %cst_121 = arith.constant dense<0.000000e+00> : vector<8xf32>
    %364 = vector.multi_reduction <add>, %363, %cst_121 [1] : vector<8x8xf32> to vector<8xf32>
    %365 = vector.shape_cast %364 : vector<8xf32> to vector<8x1xf32>
    %366 = tpu.reciprocal %365 {approx = true} : vector<8x1xf32> -> vector<8x1xf32>
    %367 = vector.broadcast %366 : vector<8x1xf32> to vector<8x8xf32>
    %368 = arith.mulf %363, %367 : vector<8x8xf32>
    %369 = arith.truncf %368 : vector<8x8xf32> to vector<8x8xbf16>
    %cst_122 = arith.constant dense<0.000000e+00> : vector<8x8xf32>
    %370 = tpu.matmul %369, %351, %cst_122 {dimension_numbers = #tpu.dot_dimension_numbers<[1], [0], [0], [1], [0, 0, 1, 1], [], []>} : vector<8x8xbf16>, vector<8x8xbf16>, vector<8x8xf32> -> vector<8x8xf32>
    %371 = vector.extract_strided_slice %291 {offsets = [0, 24], sizes = [8, 8], strides = [1, 1]} : vector<8x32xf32> to vector<8x8xf32>
    %372 = arith.truncf %371 : vector<8x8xf32> to vector<8x8xbf16>
    %373 = vector.extract_strided_slice %292 {offsets = [0, 24], sizes = [8, 8], strides = [1, 1]} : vector<8x32xf32> to vector<8x8xf32>
    %374 = arith.truncf %373 : vector<8x8xf32> to vector<8x8xbf16>
    %375 = vector.extract_strided_slice %293 {offsets = [0, 24], sizes = [8, 8], strides = [1, 1]} : vector<8x32xf32> to vector<8x8xf32>
    %376 = arith.truncf %375 : vector<8x8xf32> to vector<8x8xbf16>
    %cst_123 = arith.constant dense<0.000000e+00> : vector<8x8xf32>
    %377 = tpu.matmul %372, %374, %cst_123 {dimension_numbers = #tpu.dot_dimension_numbers<[1], [1], [0], [0], [0, 0, 1, 0], [], []>} : vector<8x8xbf16>, vector<8x8xbf16>, vector<8x8xf32> -> vector<8x8xf32>
    %cst_124 = arith.constant 0.353553385 : f32
    %378 = vector.broadcast %cst_124 : f32 to vector<8x8xf32>
    %379 = arith.mulf %377, %378 : vector<8x8xf32>
    %cst_125 = arith.constant 0.000000e+00 : f32
    %380 = vector.broadcast %cst_125 : f32 to vector<8x8xf32>
    %381 = arith.cmpf ogt, %295, %380 : vector<8x8xf32>
    %cst_126 = arith.constant -1.000000e+09 : f32
    %382 = vector.broadcast %cst_126 : f32 to vector<8x8xf32>
    %383 = arith.select %381, %379, %382 : vector<8x8xi1>, vector<8x8xf32>
    %cst_127 = arith.constant dense<0xFF800000> : vector<8xf32>
    %384 = vector.multi_reduction <maximumf>, %383, %cst_127 [1] : vector<8x8xf32> to vector<8xf32>
    %385 = vector.shape_cast %384 : vector<8xf32> to vector<8x1xf32>
    %386 = vector.broadcast %385 : vector<8x1xf32> to vector<8x8xf32>
    %387 = arith.subf %383, %386 : vector<8x8xf32>
    %388 = math.exp %387 : vector<8x8xf32>
    %cst_128 = arith.constant dense<0.000000e+00> : vector<8xf32>
    %389 = vector.multi_reduction <add>, %388, %cst_128 [1] : vector<8x8xf32> to vector<8xf32>
    %390 = vector.shape_cast %389 : vector<8xf32> to vector<8x1xf32>
    %391 = tpu.reciprocal %390 {approx = true} : vector<8x1xf32> -> vector<8x1xf32>
    %392 = vector.broadcast %391 : vector<8x1xf32> to vector<8x8xf32>
    %393 = arith.mulf %388, %392 : vector<8x8xf32>
    %394 = arith.truncf %393 : vector<8x8xf32> to vector<8x8xbf16>
    %cst_129 = arith.constant dense<0.000000e+00> : vector<8x8xf32>
    %395 = tpu.matmul %394, %376, %cst_129 {dimension_numbers = #tpu.dot_dimension_numbers<[1], [0], [0], [1], [0, 0, 1, 1], [], []>} : vector<8x8xbf16>, vector<8x8xbf16>, vector<8x8xf32> -> vector<8x8xf32>
    %396 = tpu.concatenate %320, %345, %370, %395 in 1 : vector<8x8xf32>, vector<8x8xf32>, vector<8x8xf32>, vector<8x8xf32> -> vector<8x32xf32>
    %397 = arith.truncf %396 : vector<8x32xf32> to vector<8x32xbf16>
    %c2_130 = arith.constant 2 : index
    %c0_131 = arith.constant 0 : index
    %c0_132 = arith.constant 0 : index
    %398 = vector.load %arg6[%c2_130, %c0_131, %c0_132] : memref<3x32x32xbf16, #tpu.memory_space<vmem>>, vector<1x32x32xbf16>
    %399 = vector.shape_cast %398 : vector<1x32x32xbf16> to vector<32x32xbf16>
    %cst_133 = arith.constant dense<0.000000e+00> : vector<8x32xf32>
    %400 = tpu.matmul %397, %399, %cst_133 {dimension_numbers = #tpu.dot_dimension_numbers<[1], [0], [0], [1], [0, 0, 1, 1], [], []>} : vector<8x32xbf16>, vector<32x32xbf16>, vector<8x32xf32> -> vector<8x32xf32>
    %401 = arith.addf %400, %15 : vector<8x32xf32>
    %cst_134 = arith.constant dense<0.000000e+00> : vector<8xf32>
    %402 = vector.multi_reduction <add>, %401, %cst_134 [1] : vector<8x32xf32> to vector<8xf32>
    %403 = vector.shape_cast %402 : vector<8xf32> to vector<8x1xf32>
    %cst_135 = arith.constant 3.200000e+01 : f32
    %404 = vector.broadcast %cst_135 : f32 to vector<8x1xf32>
    %405 = arith.divf %403, %404 : vector<8x1xf32>
    %406 = vector.broadcast %405 : vector<8x1xf32> to vector<8x32xf32>
    %407 = arith.subf %401, %406 : vector<8x32xf32>
    %408 = arith.mulf %407, %407 : vector<8x32xf32>
    %cst_136 = arith.constant dense<0.000000e+00> : vector<8xf32>
    %409 = vector.multi_reduction <add>, %408, %cst_136 [1] : vector<8x32xf32> to vector<8xf32>
    %410 = vector.shape_cast %409 : vector<8xf32> to vector<8x1xf32>
    %cst_137 = arith.constant 3.200000e+01 : f32
    %411 = vector.broadcast %cst_137 : f32 to vector<8x1xf32>
    %412 = arith.divf %410, %411 : vector<8x1xf32>
    %413 = vector.broadcast %405 : vector<8x1xf32> to vector<8x32xf32>
    %414 = arith.subf %401, %413 : vector<8x32xf32>
    %cst_138 = arith.constant 9.99999997E-7 : f32
    %415 = vector.broadcast %cst_138 : f32 to vector<8x1xf32>
    %416 = arith.addf %412, %415 : vector<8x1xf32>
    %417 = math.rsqrt %416 : vector<8x1xf32>
    %418 = vector.broadcast %417 : vector<8x1xf32> to vector<8x32xf32>
    %419 = arith.mulf %414, %418 : vector<8x32xf32>
    %420 = vector.extract_strided_slice %19 {offsets = [2, 0], sizes = [1, 32], strides = [1, 1]} : vector<3x32xf32> to vector<1x32xf32>
    %421 = vector.broadcast %420 : vector<1x32xf32> to vector<8x32xf32>
    %422 = arith.mulf %419, %421 : vector<8x32xf32>
    %423 = vector.extract_strided_slice %20 {offsets = [2, 0], sizes = [1, 32], strides = [1, 1]} : vector<3x32xf32> to vector<1x32xf32>
    %424 = vector.broadcast %423 : vector<1x32xf32> to vector<8x32xf32>
    %425 = arith.addf %422, %424 : vector<8x32xf32>
    %426 = arith.maximumf %155, %290 : vector<8x32xf32>
    %427 = arith.maximumf %426, %425 : vector<8x32xf32>
    %428 = arith.truncf %427 : vector<8x32xf32> to vector<8x32xbf16>
    %c0_139 = arith.constant 0 : index
    %c0_140 = arith.constant 0 : index
    %429 = vector.load %arg10[%c0_139, %c0_140] : memref<32x3328xbf16, #tpu.memory_space<vmem>>, vector<32x3328xbf16>
    %cst_141 = arith.constant dense<0.000000e+00> : vector<8x3328xf32>
    %430 = tpu.matmul %428, %429, %cst_141 {dimension_numbers = #tpu.dot_dimension_numbers<[1], [0], [0], [1], [0, 0, 1, 1], [], []>} : vector<8x32xbf16>, vector<32x3328xbf16>, vector<8x3328xf32> -> vector<8x3328xf32>
    %c0_142 = arith.constant 0 : index
    %c0_143 = arith.constant 0 : index
    %431 = vector.load %arg12[%c0_142, %c0_143] : memref<1x3328xf32, #tpu.memory_space<vmem>>, vector<1x3328xf32>
    %432 = vector.broadcast %431 : vector<1x3328xf32> to vector<8x3328xf32>
    %433 = arith.addf %430, %432 : vector<8x3328xf32>
    %c0_144 = arith.constant 0 : index
    %c0_145 = arith.constant 0 : index
    %434 = vector.load %arg11[%c0_144, %c0_145] : memref<32x3328xbf16, #tpu.memory_space<vmem>>, vector<32x3328xbf16>
    %cst_146 = arith.constant dense<0.000000e+00> : vector<8x3328xf32>
    %435 = tpu.matmul %428, %434, %cst_146 {dimension_numbers = #tpu.dot_dimension_numbers<[1], [0], [0], [1], [0, 0, 1, 1], [], []>} : vector<8x32xbf16>, vector<32x3328xbf16>, vector<8x3328xf32> -> vector<8x3328xf32>
    %c0_147 = arith.constant 0 : index
    %c0_148 = arith.constant 0 : index
    %436 = vector.load %arg13[%c0_147, %c0_148] : memref<1x3328xf32, #tpu.memory_space<vmem>>, vector<1x3328xf32>
    %437 = vector.broadcast %436 : vector<1x3328xf32> to vector<8x3328xf32>
    %438 = arith.addf %435, %437 : vector<8x3328xf32>
    %439 = vector.extract_strided_slice %433 {offsets = [0, 0], sizes = [8, 256], strides = [1, 1]} : vector<8x3328xf32> to vector<8x256xf32>
    %440 = arith.truncf %439 : vector<8x256xf32> to vector<8x256xbf16>
    %441 = vector.extract_strided_slice %438 {offsets = [0, 0], sizes = [8, 256], strides = [1, 1]} : vector<8x3328xf32> to vector<8x256xf32>
    %442 = arith.truncf %441 : vector<8x256xf32> to vector<8x256xbf16>
    %cst_149 = arith.constant dense<0.000000e+00> : vector<8x8xf32>
    %443 = tpu.matmul %440, %442, %cst_149 {dimension_numbers = #tpu.dot_dimension_numbers<[1], [1], [0], [0], [0, 0, 1, 0], [], []>} : vector<8x256xbf16>, vector<8x256xbf16>, vector<8x8xf32> -> vector<8x8xf32>
    %c0_150 = arith.constant 0 : index
    %c0_151 = arith.constant 0 : index
    %c0_152 = arith.constant 0 : index
    %c0_153 = arith.constant 0 : index
    %444 = vector.load %arg14[%c0_150, %c0_151, %c0_152, %c0_153] : memref<1x13x8x8xf32, #tpu.memory_space<vmem>>, vector<1x1x8x8xf32>
    %445 = vector.shape_cast %444 : vector<1x1x8x8xf32> to vector<8x8xf32>
    %446 = vector.shape_cast %443 : vector<8x8xf32> to vector<1x1x8x8xf32>
    tpu.vector_store %arg14[%c0_150, %c0_151, %c0_152, %c0_153], %446 {strides = array<i32>} : memref<1x13x8x8xf32, #tpu.memory_space<vmem>>, vector<1x1x8x8xf32>,
    %447 = vector.extract_strided_slice %433 {offsets = [0, 256], sizes = [8, 256], strides = [1, 1]} : vector<8x3328xf32> to vector<8x256xf32>
    %448 = arith.truncf %447 : vector<8x256xf32> to vector<8x256xbf16>
    %449 = vector.extract_strided_slice %438 {offsets = [0, 256], sizes = [8, 256], strides = [1, 1]} : vector<8x3328xf32> to vector<8x256xf32>
    %450 = arith.truncf %449 : vector<8x256xf32> to vector<8x256xbf16>
    %cst_154 = arith.constant dense<0.000000e+00> : vector<8x8xf32>
    %451 = tpu.matmul %448, %450, %cst_154 {dimension_numbers = #tpu.dot_dimension_numbers<[1], [1], [0], [0], [0, 0, 1, 0], [], []>} : vector<8x256xbf16>, vector<8x256xbf16>, vector<8x8xf32> -> vector<8x8xf32>
    %c0_155 = arith.constant 0 : index
    %c1_156 = arith.constant 1 : index
    %c0_157 = arith.constant 0 : index
    %c0_158 = arith.constant 0 : index
    %452 = vector.load %arg14[%c0_155, %c1_156, %c0_157, %c0_158] : memref<1x13x8x8xf32, #tpu.memory_space<vmem>>, vector<1x1x8x8xf32>
    %453 = vector.shape_cast %452 : vector<1x1x8x8xf32> to vector<8x8xf32>
    %454 = vector.shape_cast %451 : vector<8x8xf32> to vector<1x1x8x8xf32>
    tpu.vector_store %arg14[%c0_155, %c1_156, %c0_157, %c0_158], %454 {strides = array<i32>} : memref<1x13x8x8xf32, #tpu.memory_space<vmem>>, vector<1x1x8x8xf32>,
    %455 = vector.extract_strided_slice %433 {offsets = [0, 512], sizes = [8, 256], strides = [1, 1]} : vector<8x3328xf32> to vector<8x256xf32>
    %456 = arith.truncf %455 : vector<8x256xf32> to vector<8x256xbf16>
    %457 = vector.extract_strided_slice %438 {offsets = [0, 512], sizes = [8, 256], strides = [1, 1]} : vector<8x3328xf32> to vector<8x256xf32>
    %458 = arith.truncf %457 : vector<8x256xf32> to vector<8x256xbf16>
    %cst_159 = arith.constant dense<0.000000e+00> : vector<8x8xf32>
    %459 = tpu.matmul %456, %458, %cst_159 {dimension_numbers = #tpu.dot_dimension_numbers<[1], [1], [0], [0], [0, 0, 1, 0], [], []>} : vector<8x256xbf16>, vector<8x256xbf16>, vector<8x8xf32> -> vector<8x8xf32>
    %c0_160 = arith.constant 0 : index
    %c2_161 = arith.constant 2 : index
    %c0_162 = arith.constant 0 : index
    %c0_163 = arith.constant 0 : index
    %460 = vector.load %arg14[%c0_160, %c2_161, %c0_162, %c0_163] : memref<1x13x8x8xf32, #tpu.memory_space<vmem>>, vector<1x1x8x8xf32>
    %461 = vector.shape_cast %460 : vector<1x1x8x8xf32> to vector<8x8xf32>
    %462 = vector.shape_cast %459 : vector<8x8xf32> to vector<1x1x8x8xf32>
    tpu.vector_store %arg14[%c0_160, %c2_161, %c0_162, %c0_163], %462 {strides = array<i32>} : memref<1x13x8x8xf32, #tpu.memory_space<vmem>>, vector<1x1x8x8xf32>,
    %463 = vector.extract_strided_slice %433 {offsets = [0, 768], sizes = [8, 256], strides = [1, 1]} : vector<8x3328xf32> to vector<8x256xf32>
    %464 = arith.truncf %463 : vector<8x256xf32> to vector<8x256xbf16>
    %465 = vector.extract_strided_slice %438 {offsets = [0, 768], sizes = [8, 256], strides = [1, 1]} : vector<8x3328xf32> to vector<8x256xf32>
    %466 = arith.truncf %465 : vector<8x256xf32> to vector<8x256xbf16>
    %cst_164 = arith.constant dense<0.000000e+00> : vector<8x8xf32>
    %467 = tpu.matmul %464, %466, %cst_164 {dimension_numbers = #tpu.dot_dimension_numbers<[1], [1], [0], [0], [0, 0, 1, 0], [], []>} : vector<8x256xbf16>, vector<8x256xbf16>, vector<8x8xf32> -> vector<8x8xf32>
    %c0_165 = arith.constant 0 : index
    %c3 = arith.constant 3 : index
    %c0_166 = arith.constant 0 : index
    %c0_167 = arith.constant 0 : index
    %468 = vector.load %arg14[%c0_165, %c3, %c0_166, %c0_167] : memref<1x13x8x8xf32, #tpu.memory_space<vmem>>, vector<1x1x8x8xf32>
    %469 = vector.shape_cast %468 : vector<1x1x8x8xf32> to vector<8x8xf32>
    %470 = vector.shape_cast %467 : vector<8x8xf32> to vector<1x1x8x8xf32>
    tpu.vector_store %arg14[%c0_165, %c3, %c0_166, %c0_167], %470 {strides = array<i32>} : memref<1x13x8x8xf32, #tpu.memory_space<vmem>>, vector<1x1x8x8xf32>,
    %471 = vector.extract_strided_slice %433 {offsets = [0, 1024], sizes = [8, 256], strides = [1, 1]} : vector<8x3328xf32> to vector<8x256xf32>
    %472 = arith.truncf %471 : vector<8x256xf32> to vector<8x256xbf16>
    %473 = vector.extract_strided_slice %438 {offsets = [0, 1024], sizes = [8, 256], strides = [1, 1]} : vector<8x3328xf32> to vector<8x256xf32>
    %474 = arith.truncf %473 : vector<8x256xf32> to vector<8x256xbf16>
    %cst_168 = arith.constant dense<0.000000e+00> : vector<8x8xf32>
    %475 = tpu.matmul %472, %474, %cst_168 {dimension_numbers = #tpu.dot_dimension_numbers<[1], [1], [0], [0], [0, 0, 1, 0], [], []>} : vector<8x256xbf16>, vector<8x256xbf16>, vector<8x8xf32> -> vector<8x8xf32>
    %c0_169 = arith.constant 0 : index
    %c4 = arith.constant 4 : index
    %c0_170 = arith.constant 0 : index
    %c0_171 = arith.constant 0 : index
    %476 = vector.load %arg14[%c0_169, %c4, %c0_170, %c0_171] : memref<1x13x8x8xf32, #tpu.memory_space<vmem>>, vector<1x1x8x8xf32>
    %477 = vector.shape_cast %476 : vector<1x1x8x8xf32> to vector<8x8xf32>
    %478 = vector.shape_cast %475 : vector<8x8xf32> to vector<1x1x8x8xf32>
    tpu.vector_store %arg14[%c0_169, %c4, %c0_170, %c0_171], %478 {strides = array<i32>} : memref<1x13x8x8xf32, #tpu.memory_space<vmem>>, vector<1x1x8x8xf32>,
    %479 = vector.extract_strided_slice %433 {offsets = [0, 1280], sizes = [8, 256], strides = [1, 1]} : vector<8x3328xf32> to vector<8x256xf32>
    %480 = arith.truncf %479 : vector<8x256xf32> to vector<8x256xbf16>
    %481 = vector.extract_strided_slice %438 {offsets = [0, 1280], sizes = [8, 256], strides = [1, 1]} : vector<8x3328xf32> to vector<8x256xf32>
    %482 = arith.truncf %481 : vector<8x256xf32> to vector<8x256xbf16>
    %cst_172 = arith.constant dense<0.000000e+00> : vector<8x8xf32>
    %483 = tpu.matmul %480, %482, %cst_172 {dimension_numbers = #tpu.dot_dimension_numbers<[1], [1], [0], [0], [0, 0, 1, 0], [], []>} : vector<8x256xbf16>, vector<8x256xbf16>, vector<8x8xf32> -> vector<8x8xf32>
    %c0_173 = arith.constant 0 : index
    %c5 = arith.constant 5 : index
    %c0_174 = arith.constant 0 : index
    %c0_175 = arith.constant 0 : index
    %484 = vector.load %arg14[%c0_173, %c5, %c0_174, %c0_175] : memref<1x13x8x8xf32, #tpu.memory_space<vmem>>, vector<1x1x8x8xf32>
    %485 = vector.shape_cast %484 : vector<1x1x8x8xf32> to vector<8x8xf32>
    %486 = vector.shape_cast %483 : vector<8x8xf32> to vector<1x1x8x8xf32>
    tpu.vector_store %arg14[%c0_173, %c5, %c0_174, %c0_175], %486 {strides = array<i32>} : memref<1x13x8x8xf32, #tpu.memory_space<vmem>>, vector<1x1x8x8xf32>,
    %487 = vector.extract_strided_slice %433 {offsets = [0, 1536], sizes = [8, 256], strides = [1, 1]} : vector<8x3328xf32> to vector<8x256xf32>
    %488 = arith.truncf %487 : vector<8x256xf32> to vector<8x256xbf16>
    %489 = vector.extract_strided_slice %438 {offsets = [0, 1536], sizes = [8, 256], strides = [1, 1]} : vector<8x3328xf32> to vector<8x256xf32>
    %490 = arith.truncf %489 : vector<8x256xf32> to vector<8x256xbf16>
    %cst_176 = arith.constant dense<0.000000e+00> : vector<8x8xf32>
    %491 = tpu.matmul %488, %490, %cst_176 {dimension_numbers = #tpu.dot_dimension_numbers<[1], [1], [0], [0], [0, 0, 1, 0], [], []>} : vector<8x256xbf16>, vector<8x256xbf16>, vector<8x8xf32> -> vector<8x8xf32>
    %c0_177 = arith.constant 0 : index
    %c6 = arith.constant 6 : index
    %c0_178 = arith.constant 0 : index
    %c0_179 = arith.constant 0 : index
    %492 = vector.load %arg14[%c0_177, %c6, %c0_178, %c0_179] : memref<1x13x8x8xf32, #tpu.memory_space<vmem>>, vector<1x1x8x8xf32>
    %493 = vector.shape_cast %492 : vector<1x1x8x8xf32> to vector<8x8xf32>
    %494 = vector.shape_cast %491 : vector<8x8xf32> to vector<1x1x8x8xf32>
    tpu.vector_store %arg14[%c0_177, %c6, %c0_178, %c0_179], %494 {strides = array<i32>} : memref<1x13x8x8xf32, #tpu.memory_space<vmem>>, vector<1x1x8x8xf32>,
    %495 = vector.extract_strided_slice %433 {offsets = [0, 1792], sizes = [8, 256], strides = [1, 1]} : vector<8x3328xf32> to vector<8x256xf32>
    %496 = arith.truncf %495 : vector<8x256xf32> to vector<8x256xbf16>
    %497 = vector.extract_strided_slice %438 {offsets = [0, 1792], sizes = [8, 256], strides = [1, 1]} : vector<8x3328xf32> to vector<8x256xf32>
    %498 = arith.truncf %497 : vector<8x256xf32> to vector<8x256xbf16>
    %cst_180 = arith.constant dense<0.000000e+00> : vector<8x8xf32>
    %499 = tpu.matmul %496, %498, %cst_180 {dimension_numbers = #tpu.dot_dimension_numbers<[1], [1], [0], [0], [0, 0, 1, 0], [], []>} : vector<8x256xbf16>, vector<8x256xbf16>, vector<8x8xf32> -> vector<8x8xf32>
    %c0_181 = arith.constant 0 : index
    %c7 = arith.constant 7 : index
    %c0_182 = arith.constant 0 : index
    %c0_183 = arith.constant 0 : index
    %500 = vector.load %arg14[%c0_181, %c7, %c0_182, %c0_183] : memref<1x13x8x8xf32, #tpu.memory_space<vmem>>, vector<1x1x8x8xf32>
    %501 = vector.shape_cast %500 : vector<1x1x8x8xf32> to vector<8x8xf32>
    %502 = vector.shape_cast %499 : vector<8x8xf32> to vector<1x1x8x8xf32>
    tpu.vector_store %arg14[%c0_181, %c7, %c0_182, %c0_183], %502 {strides = array<i32>} : memref<1x13x8x8xf32, #tpu.memory_space<vmem>>, vector<1x1x8x8xf32>,
    %503 = vector.extract_strided_slice %433 {offsets = [0, 2048], sizes = [8, 256], strides = [1, 1]} : vector<8x3328xf32> to vector<8x256xf32>
    %504 = arith.truncf %503 : vector<8x256xf32> to vector<8x256xbf16>
    %505 = vector.extract_strided_slice %438 {offsets = [0, 2048], sizes = [8, 256], strides = [1, 1]} : vector<8x3328xf32> to vector<8x256xf32>
    %506 = arith.truncf %505 : vector<8x256xf32> to vector<8x256xbf16>
    %cst_184 = arith.constant dense<0.000000e+00> : vector<8x8xf32>
    %507 = tpu.matmul %504, %506, %cst_184 {dimension_numbers = #tpu.dot_dimension_numbers<[1], [1], [0], [0], [0, 0, 1, 0], [], []>} : vector<8x256xbf16>, vector<8x256xbf16>, vector<8x8xf32> -> vector<8x8xf32>
    %c0_185 = arith.constant 0 : index
    %c8 = arith.constant 8 : index
    %c0_186 = arith.constant 0 : index
    %c0_187 = arith.constant 0 : index
    %508 = vector.load %arg14[%c0_185, %c8, %c0_186, %c0_187] : memref<1x13x8x8xf32, #tpu.memory_space<vmem>>, vector<1x1x8x8xf32>
    %509 = vector.shape_cast %508 : vector<1x1x8x8xf32> to vector<8x8xf32>
    %510 = vector.shape_cast %507 : vector<8x8xf32> to vector<1x1x8x8xf32>
    tpu.vector_store %arg14[%c0_185, %c8, %c0_186, %c0_187], %510 {strides = array<i32>} : memref<1x13x8x8xf32, #tpu.memory_space<vmem>>, vector<1x1x8x8xf32>,
    %511 = vector.extract_strided_slice %433 {offsets = [0, 2304], sizes = [8, 256], strides = [1, 1]} : vector<8x3328xf32> to vector<8x256xf32>
    %512 = arith.truncf %511 : vector<8x256xf32> to vector<8x256xbf16>
    %513 = vector.extract_strided_slice %438 {offsets = [0, 2304], sizes = [8, 256], strides = [1, 1]} : vector<8x3328xf32> to vector<8x256xf32>
    %514 = arith.truncf %513 : vector<8x256xf32> to vector<8x256xbf16>
    %cst_188 = arith.constant dense<0.000000e+00> : vector<8x8xf32>
    %515 = tpu.matmul %512, %514, %cst_188 {dimension_numbers = #tpu.dot_dimension_numbers<[1], [1], [0], [0], [0, 0, 1, 0], [], []>} : vector<8x256xbf16>, vector<8x256xbf16>, vector<8x8xf32> -> vector<8x8xf32>
    %c0_189 = arith.constant 0 : index
    %c9 = arith.constant 9 : index
    %c0_190 = arith.constant 0 : index
    %c0_191 = arith.constant 0 : index
    %516 = vector.load %arg14[%c0_189, %c9, %c0_190, %c0_191] : memref<1x13x8x8xf32, #tpu.memory_space<vmem>>, vector<1x1x8x8xf32>
    %517 = vector.shape_cast %516 : vector<1x1x8x8xf32> to vector<8x8xf32>
    %518 = vector.shape_cast %515 : vector<8x8xf32> to vector<1x1x8x8xf32>
    tpu.vector_store %arg14[%c0_189, %c9, %c0_190, %c0_191], %518 {strides = array<i32>} : memref<1x13x8x8xf32, #tpu.memory_space<vmem>>, vector<1x1x8x8xf32>,
    %519 = vector.extract_strided_slice %433 {offsets = [0, 2560], sizes = [8, 256], strides = [1, 1]} : vector<8x3328xf32> to vector<8x256xf32>
    %520 = arith.truncf %519 : vector<8x256xf32> to vector<8x256xbf16>
    %521 = vector.extract_strided_slice %438 {offsets = [0, 2560], sizes = [8, 256], strides = [1, 1]} : vector<8x3328xf32> to vector<8x256xf32>
    %522 = arith.truncf %521 : vector<8x256xf32> to vector<8x256xbf16>
    %cst_192 = arith.constant dense<0.000000e+00> : vector<8x8xf32>
    %523 = tpu.matmul %520, %522, %cst_192 {dimension_numbers = #tpu.dot_dimension_numbers<[1], [1], [0], [0], [0, 0, 1, 0], [], []>} : vector<8x256xbf16>, vector<8x256xbf16>, vector<8x8xf32> -> vector<8x8xf32>
    %c0_193 = arith.constant 0 : index
    %c10 = arith.constant 10 : index
    %c0_194 = arith.constant 0 : index
    %c0_195 = arith.constant 0 : index
    %524 = vector.load %arg14[%c0_193, %c10, %c0_194, %c0_195] : memref<1x13x8x8xf32, #tpu.memory_space<vmem>>, vector<1x1x8x8xf32>
    %525 = vector.shape_cast %524 : vector<1x1x8x8xf32> to vector<8x8xf32>
    %526 = vector.shape_cast %523 : vector<8x8xf32> to vector<1x1x8x8xf32>
    tpu.vector_store %arg14[%c0_193, %c10, %c0_194, %c0_195], %526 {strides = array<i32>} : memref<1x13x8x8xf32, #tpu.memory_space<vmem>>, vector<1x1x8x8xf32>,
    %527 = vector.extract_strided_slice %433 {offsets = [0, 2816], sizes = [8, 256], strides = [1, 1]} : vector<8x3328xf32> to vector<8x256xf32>
    %528 = arith.truncf %527 : vector<8x256xf32> to vector<8x256xbf16>
    %529 = vector.extract_strided_slice %438 {offsets = [0, 2816], sizes = [8, 256], strides = [1, 1]} : vector<8x3328xf32> to vector<8x256xf32>
    %530 = arith.truncf %529 : vector<8x256xf32> to vector<8x256xbf16>
    %cst_196 = arith.constant dense<0.000000e+00> : vector<8x8xf32>
    %531 = tpu.matmul %528, %530, %cst_196 {dimension_numbers = #tpu.dot_dimension_numbers<[1], [1], [0], [0], [0, 0, 1, 0], [], []>} : vector<8x256xbf16>, vector<8x256xbf16>, vector<8x8xf32> -> vector<8x8xf32>
    %c0_197 = arith.constant 0 : index
    %c11 = arith.constant 11 : index
    %c0_198 = arith.constant 0 : index
    %c0_199 = arith.constant 0 : index
    %532 = vector.load %arg14[%c0_197, %c11, %c0_198, %c0_199] : memref<1x13x8x8xf32, #tpu.memory_space<vmem>>, vector<1x1x8x8xf32>
    %533 = vector.shape_cast %532 : vector<1x1x8x8xf32> to vector<8x8xf32>
    %534 = vector.shape_cast %531 : vector<8x8xf32> to vector<1x1x8x8xf32>
    tpu.vector_store %arg14[%c0_197, %c11, %c0_198, %c0_199], %534 {strides = array<i32>} : memref<1x13x8x8xf32, #tpu.memory_space<vmem>>, vector<1x1x8x8xf32>,
    %535 = vector.extract_strided_slice %433 {offsets = [0, 3072], sizes = [8, 256], strides = [1, 1]} : vector<8x3328xf32> to vector<8x256xf32>
    %536 = arith.truncf %535 : vector<8x256xf32> to vector<8x256xbf16>
    %537 = vector.extract_strided_slice %438 {offsets = [0, 3072], sizes = [8, 256], strides = [1, 1]} : vector<8x3328xf32> to vector<8x256xf32>
    %538 = arith.truncf %537 : vector<8x256xf32> to vector<8x256xbf16>
    %cst_200 = arith.constant dense<0.000000e+00> : vector<8x8xf32>
    %539 = tpu.matmul %536, %538, %cst_200 {dimension_numbers = #tpu.dot_dimension_numbers<[1], [1], [0], [0], [0, 0, 1, 0], [], []>} : vector<8x256xbf16>, vector<8x256xbf16>, vector<8x8xf32> -> vector<8x8xf32>
    %c0_201 = arith.constant 0 : index
    %c12 = arith.constant 12 : index
    %c0_202 = arith.constant 0 : index
    %c0_203 = arith.constant 0 : index
    %540 = vector.load %arg14[%c0_201, %c12, %c0_202, %c0_203] : memref<1x13x8x8xf32, #tpu.memory_space<vmem>>, vector<1x1x8x8xf32>
    %541 = vector.shape_cast %540 : vector<1x1x8x8xf32> to vector<8x8xf32>
    %542 = vector.shape_cast %539 : vector<8x8xf32> to vector<1x1x8x8xf32>
    tpu.vector_store %arg14[%c0_201, %c12, %c0_202, %c0_203], %542 {strides = array<i32>} : memref<1x13x8x8xf32, #tpu.memory_space<vmem>>, vector<1x1x8x8xf32>,
    return
  }
  func.func @transform_0(%arg0: i32) -> (i32, i32, i32) {
    %c0_i32 = arith.constant 0 : i32
    %c0_i32_0 = arith.constant 0 : i32
    %c0_i32_1 = arith.constant 0 : i32
    return %arg0, %c0_i32, %c0_i32_0 : i32, i32, i32
  }
  func.func @transform_1(%arg0: i32) -> (i32, i32, i32) {
    %c0_i32 = arith.constant 0 : i32
    %c0_i32_0 = arith.constant 0 : i32
    %c0_i32_1 = arith.constant 0 : i32
    return %arg0, %c0_i32, %c0_i32_0 : i32, i32, i32
  }
  func.func @transform_2(%arg0: i32) -> (i32, i32) {
    %c0_i32 = arith.constant 0 : i32
    %c0_i32_0 = arith.constant 0 : i32
    %c0_i32_1 = arith.constant 0 : i32
    return %c0_i32, %c0_i32_0 : i32, i32
  }
  func.func @transform_3(%arg0: i32) -> (i32, i32) {
    %c0_i32 = arith.constant 0 : i32
    %c0_i32_0 = arith.constant 0 : i32
    %c0_i32_1 = arith.constant 0 : i32
    return %c0_i32, %c0_i32_0 : i32, i32
  }
  func.func @transform_4(%arg0: i32) -> (i32, i32) {
    %c0_i32 = arith.constant 0 : i32
    %c0_i32_0 = arith.constant 0 : i32
    %c0_i32_1 = arith.constant 0 : i32
    return %c0_i32, %c0_i32_0 : i32, i32
  }
  func.func @transform_5(%arg0: i32) -> (i32, i32, i32) {
    %c0_i32 = arith.constant 0 : i32
    %c0_i32_0 = arith.constant 0 : i32
    %c0_i32_1 = arith.constant 0 : i32
    %c0_i32_2 = arith.constant 0 : i32
    return %c0_i32, %c0_i32_0, %c0_i32_1 : i32, i32, i32
  }
  func.func @transform_6(%arg0: i32) -> (i32, i32) {
    %c0_i32 = arith.constant 0 : i32
    %c0_i32_0 = arith.constant 0 : i32
    %c0_i32_1 = arith.constant 0 : i32
    return %c0_i32, %c0_i32_0 : i32, i32
  }
  func.func @transform_7(%arg0: i32) -> (i32, i32) {
    %c0_i32 = arith.constant 0 : i32
    %c0_i32_0 = arith.constant 0 : i32
    %c0_i32_1 = arith.constant 0 : i32
    return %c0_i32, %c0_i32_0 : i32, i32
  }
  func.func @transform_8(%arg0: i32) -> (i32, i32, i32, i32) {
    %c0_i32 = arith.constant 0 : i32
    %c0_i32_0 = arith.constant 0 : i32
    %c0_i32_1 = arith.constant 0 : i32
    %c0_i32_2 = arith.constant 0 : i32
    return %arg0, %c0_i32, %c0_i32_0, %c0_i32_1 : i32, i32, i32, i32
  }
  func.func @transform_9(%arg0: i32) -> (i32, i32) {
    %c0_i32 = arith.constant 0 : i32
    %c0_i32_0 = arith.constant 0 : i32
    %c0_i32_1 = arith.constant 0 : i32
    return %c0_i32, %c0_i32_0 : i32, i32
  }
  func.func @transform_10(%arg0: i32) -> (i32, i32) {
    %c0_i32 = arith.constant 0 : i32
    %c0_i32_0 = arith.constant 0 : i32
    %c0_i32_1 = arith.constant 0 : i32
    return %c0_i32, %c0_i32_0 : i32, i32
  }
  func.func @transform_11(%arg0: i32) -> (i32, i32) {
    %c0_i32 = arith.constant 0 : i32
    %c0_i32_0 = arith.constant 0 : i32
    %c0_i32_1 = arith.constant 0 : i32
    return %c0_i32, %c0_i32_0 : i32, i32
  }
  func.func @transform_12(%arg0: i32) -> (i32, i32) {
    %c0_i32 = arith.constant 0 : i32
    %c0_i32_0 = arith.constant 0 : i32
    %c0_i32_1 = arith.constant 0 : i32
    return %c0_i32, %c0_i32_0 : i32, i32
  }
  func.func @transform_13(%arg0: i32) -> (i32, i32, i32, i32) {
    %c0_i32 = arith.constant 0 : i32
    %c0_i32_0 = arith.constant 0 : i32
    %c0_i32_1 = arith.constant 0 : i32
    %c0_i32_2 = arith.constant 0 : i32
    return %arg0, %c0_i32, %c0_i32_0, %c0_i32_1 : i32, i32, i32, i32
  }
}

</mosaic_0001>

<bundles_post_ra>
// kernel: tpu_custom_call.1
= control target key start
LH: loop header
LB: loop body
LE: loop exit
PB: predicated region body
PF: predicated region fallthrough
CT: control target
= control target key end

     0   :  { %s7501_s0 = inlined_call_operand.hbm [shape: f32[2,8,32], index: 0, kind: input, shape index: {}]   ;;  %s7502_s1 = inlined_call_operand.hbm [shape: f32[2,8,32], index: 1, kind: input, shape index: {}]   ;;  %s7503_s2 = inlined_call_operand.hbm [shape: bf16[32,32], index: 2, kind: input, shape index: {}]   ;;  %s7504_s3 = inlined_call_operand.vmem [shape: f32[1,32], index: 3, kind: input, shape index: {}]   ;;  %s7505_s4 = inlined_call_operand.hbm [shape: bf16[32,288], index: 4, kind: input, shape index: {}]   ;;  %s7506_s5 = inlined_call_operand.hbm [shape: bf16[3,32,32], index: 5, kind: input, shape index: {}]   ;;  %s7507_s6 = inlined_call_operand.vmem [shape: f32[3,32], index: 6, kind: input, shape index: {}]   ;;  %s7508_s7 = inlined_call_operand.vmem [shape: f32[3,32], index: 7, kind: input, shape index: {}]   ;;  %s7509_s8 = inlined_call_operand.hbm [shape: f32[2,3,8,8], index: 8, kind: input, shape index: {}]   ;;  %s7510_s9 = inlined_call_operand.hbm [shape: bf16[32,3328], index: 9, kind: input, shape index: {}]   ;;  %s7511_s10 = inlined_call_operand.hbm [shape: bf16[32,3328], index: 10, kind: input, shape index: {}]   ;;  %s7512_s11 = inlined_call_operand.vmem [shape: f32[1,3328], index: 11, kind: input, shape index: {}]   ;;  %s7513_s12 = inlined_call_operand.hbm [shape: f32[1,3328], index: 12, kind: input, shape index: {}]   ;;  %s7514_s13 = inlined_call_operand.vmem [shape: f32[2,13,8,8], index: 13, kind: output, shape index: {}]  }
   0x1   :  { %7521 = sst [smem:[#allocation23_spill]] %s7501_s0 }
   0x2   :  { %7522 = sst [smem:[#allocation24_spill]] %s7503_s2 }
   0x3   :  { %7523 = sst [smem:[#allocation25_spill]] %s7504_s3 }
   0x4   :  { %7524 = sst [smem:[#allocation26_spill]] %s7505_s4 }
   0x5   :  { %7525 = sst [smem:[#allocation27_spill]] %s7507_s6 }
   0x6   :  { %7526 = sst [smem:[#allocation28_spill]] %s7508_s7 }
   0x7   :  { %7527 = sst [smem:[#allocation29_spill]] %s7512_s11 }
   0x8   :  { %7528 = sst [smem:[#allocation30_spill]] %s7514_s13 }
   0x9   :  { %18 = vsyncpa [#allocation3], 0 }
   0xa   :  { %20 = vsyncpa [#allocation3 + $0x1], 0 }
   0xb   :  { %21 = vsyncpa [#allocation5], 0 }
   0xc   :  { %23 = vsyncpa [#allocation5 + $0x1], 0 }
   0xd   :  { %24 = vsyncpa [#allocation8], 0 }
   0xe   :  { %25 = vsyncpa [#allocation11], 0 }
   0xf   :  { %27 = vsyncpa [#allocation11 + $0x1], 0 }
  0x10   :  { %28 = vsyncpa [#allocation14], 0  ;;  %s6463_s25 = smov 0   ;;  %s6465_s26 = smov 0  }
  0x11   :  { %s6467_s27 = smov 0   ;;  %s6469_s28 = smov 0  }
  0x12 LB: > { %s6358_s29 = smov [#allocation6]   ;;  %s6484_s14 = sadd.s32 4294967295, %s6356_s28   ;;  %s6356_s28 = sphi %s6469_s28, %s7559_s28   ;;  %s6352_s27 = sphi %s6467_s27, %s7558_s27   ;;  %s6348_s26 = sphi %s6465_s26, %s7557_s26   ;;  %s6344_s25 = sphi %s6463_s25, %s7556_s25  }
  0x13   : > { %s365_s30 = sshll.u32 %s6358_s29, 4  ;;  %p5213_p0 = scmp.ge.s32.totalorder %s6356_s28, 1  ;;  %s6489_s30 = int_to_ptr.vmem [resolvable:$true] %s365_s30 }
  0x14   : > { %p7517_p1 = scmp.eq.s32.totalorder %s6484_s14, 0  ;;  %p353_p2 = scmp.lt.s32.totalorder %s6356_s28, 3 }
  0x15   : > { %s6359_s16 = smov [#allocation7]   ;;  %s6360_s19 = smov [#allocation12]  }
  0x16   : > { %p6491_p3 = pnand %p5213_p0, %p353_p2  ;;  %s381_s17 = sshll.u32 %s6359_s16, 4  ;;  %s6503_s17 = int_to_ptr.vmem [resolvable:$true] %s381_s17 }
  0x17   : > { %s6505_s20 = sshll.u32 %s6360_s19, 4  ;;  %s7531_s2 = sld [smem:[#allocation24_spill]]  ;;  %s414_s20 = int_to_ptr.vmem [resolvable:$true] %s6505_s20 }
  0x18   : > { %s7529_s15 = scalar_select %p6491_p3, 1, 0 }
  0x19   : > { %p5708_p4 = pneg %p6491_p3 }
  0x1b   : > { %p6499_p5 = pnand %p5708_p4, %p7517_p1 }
  0x1d   : > { %s6040_s23 = scalar_lea.hbm %s7531_s2, 256  ;;  %p6515_p7 = pneg %p6499_p5 }
  0x1e   : > { %p6041_p6 = scmp.ne.s32.totalorder %s7531_s2, %s6040_s23  ;;  %p6047_p10 = scmp.lt.u32.totalorder %s6040_s23, %s7531_s2 }
  0x20   : > { %p6043_p8 = pnand %p6515_p7, %p6041_p6 }
  0x22   : > { %p6044_p9 = pneg %p6043_p8 }
  0x24   : > { %p6049_p11 = pnand %p6047_p10, %p6044_p9 }
  0x26   : > { %6052 = shalt.err (!%p6049_p11)
}
  0x27   : > { %s6053_s21 = scalar_lea.vmem %s6489_s30, 256  ;;  %p6061_p2 = scmp.lt.s32.totalorder %s6489_s30, %s6489_s30 }
  0x28   : > { %p6054_p12 = scmp.ne.s32.totalorder %s6489_s30, %s6053_s21  ;;  %p6062_p4 = scmp.lt.s32.totalorder %s6053_s21, %s6053_s21 }
  0x2a   : > { %p6056_p13 = pnand %p6054_p12, %p6515_p7  ;;  %p6063_p6 = por %p6062_p4, %p6061_p2 }
  0x2c   : > { %p6057_p0 = pneg %p6056_p13 }
  0x2e   : > { %p6064_p8 = pnand %p6063_p6, %p6057_p0 }
  0x30   : > { %6067 = shalt.err (!%p6064_p8)
}
  0x31   : > { %s7516_s22 = smov 64   ;;  %s7519_s13 = smov 4  }
  0x32   : > { %5711 = dma.hbm_to_vmem [thread:$0]  (!%p6499_p5), %s7531_s2, 256, %s6489_s30, [#allocation5], %s7516_s22, %s7516_s22, %s7519_s13  }
  0x33   : > { %s7533_s4 = sld [smem:[#allocation26_spill]] }
  0x39   : > { %s6068_s21 = scalar_lea.hbm %s7533_s4, 768 }
  0x3a   : > { %p6069_p9 = scmp.ne.s32.totalorder %s7533_s4, %s6068_s21  ;;  %p6075_p12 = scmp.lt.u32.totalorder %s6068_s21, %s7533_s4 }
  0x3c   : > { %p6071_p10 = pnand %p6069_p9, %p6515_p7 }
  0x3e   : > { %p6072_p11 = pneg %p6071_p10 }
  0x40   : > { %p6077_p13 = pnand %p6075_p12, %p6072_p11 }
  0x42   : > { %6080 = shalt.err (!%p6077_p13)
}
  0x43   : > { %s6081_s30 = scalar_lea.vmem %s6503_s17, 768  ;;  %p6089_p6 = scmp.lt.s32.totalorder %s6503_s17, %s6503_s17 }
  0x44   : > { %p6082_p0 = scmp.ne.s32.totalorder %s6503_s17, %s6081_s30  ;;  %p6090_p8 = scmp.lt.s32.totalorder %s6081_s30, %s6081_s30 }
  0x46   : > { %p6084_p2 = pnand %p6082_p0, %p6515_p7  ;;  %p6091_p9 = por %p6090_p8, %p6089_p6 }
  0x48   : > { %p6085_p4 = pneg %p6084_p2 }
  0x4a   : > { %p6092_p10 = pnand %p6091_p9, %p6085_p4 }
  0x4c   : > { %6095 = shalt.err (!%p6092_p10)
}
  0x4d   : > { %s6363_s7 = smov 192   ;;  %s6364_s3 = smov 12  }
  0x4e   : > { %5714 = dma.hbm_to_vmem [thread:$0]  (!%p6499_p5), %s7533_s4, 768, %s6503_s17, [#allocation8], %s6363_s7, %s6363_s7, %s6364_s3  }
  0x4f   : > { %s6096_s29 = scalar_lea.hbm %s7510_s9, 6656 }
  0x50   : > { %p6097_p11 = scmp.ne.s32.totalorder %s7510_s9, %s6096_s29  ;;  %p6103_p0 = scmp.lt.u32.totalorder %s6096_s29, %s7510_s9 }
  0x52   : > { %p6099_p12 = pnand %p6097_p11, %p6515_p7 }
  0x54   : > { %p6100_p13 = pneg %p6099_p12 }
  0x56   : > { %p6105_p2 = pnand %p6103_p0, %p6100_p13 }
  0x58   : > { %6108 = shalt.err (!%p6105_p2)
}
  0x59   : > { %s6109_s6 = scalar_lea.vmem %s414_s20, 6656  ;;  %p6117_p9 = scmp.lt.s32.totalorder %s414_s20, %s414_s20 }
  0x5a   : > { %p6110_p4 = scmp.ne.s32.totalorder %s414_s20, %s6109_s6  ;;  %p6118_p10 = scmp.lt.s32.totalorder %s6109_s6, %s6109_s6 }
  0x5c   : > { %p6112_p6 = pnand %p6110_p4, %p6515_p7  ;;  %p6119_p1 = por %p6118_p10, %p6117_p9 }
  0x5e   : > { %p6113_p8 = pneg %p6112_p6 }
  0x60   : > { %p6120_p3 = pnand %p6119_p1, %p6113_p8 }
  0x62   : > { %6123 = shalt.err (!%p6120_p3)
}
  0x63   : > { %s6365_s17 = smov 1664   ;;  %s6366_s7 = smov 104  }
  0x64   : > { %5720 = dma.hbm_to_vmem [thread:$0]  (!%p6499_p5), %s7510_s9, 6656, %s414_s20, [#allocation11], %s6365_s17, %s6365_s17, %s6366_s7  }
  0x65   : > { %s6367_s11 = smov [#allocation13]   ;;  %s6368_s24 = smov [#allocation9]  }
  0x66   : > { %s426_s23 = sshll.u32 %s6367_s11, 4  ;;  %s394_s29 = sshll.u32 %s6368_s24, 4  ;;  %s427_s23 = int_to_ptr.vmem [resolvable:$true] %s426_s23  ;;  %s395_s29 = int_to_ptr.vmem [resolvable:$true] %s394_s29 }
  0x67   : > { %s6124_s30 = scalar_lea.hbm %s7511_s10, 6656 }
  0x68   : > { %p6125_p1 = scmp.ne.s32.totalorder %s7511_s10, %s6124_s30  ;;  %p6131_p12 = scmp.lt.u32.totalorder %s6124_s30, %s7511_s10 }
  0x6a   : > { %p6127_p3 = pnand %p6125_p1, %p6515_p7 }
  0x6c   : > { %p6128_p11 = pneg %p6127_p3 }
  0x6e   : > { %p6133_p13 = pnand %p6131_p12, %p6128_p11 }
  0x70   : > { %6136 = shalt.err (!%p6133_p13)
}
  0x71   : > { %s6137_s20 = scalar_lea.vmem %s427_s23, 6656  ;;  %p6145_p6 = scmp.lt.s32.totalorder %s427_s23, %s427_s23 }
  0x72   : > { %p6138_p0 = scmp.ne.s32.totalorder %s427_s23, %s6137_s20  ;;  %p6146_p8 = scmp.lt.s32.totalorder %s6137_s20, %s6137_s20 }
  0x74   : > { %p6140_p2 = pnand %p6138_p0, %p6515_p7  ;;  %p6147_p9 = por %p6146_p8, %p6145_p6 }
  0x76   : > { %p6141_p4 = pneg %p6140_p2 }
  0x78   : > { %p6148_p10 = pnand %p6147_p9, %p6141_p4 }
  0x7a   : > { %6151 = shalt.err (!%p6148_p10)
}
  0x7b   : > { %5723 = dma.hbm_to_vmem [thread:$0]  (!%p6499_p5), %s7511_s10, 6656, %s427_s23, [#allocation14], %s6365_s17, %s6365_s17, %s6366_s7  }
  0x7c   : > { %s6152_s3 = scalar_lea.hbm %s7506_s5, 768 }
  0x7d   : > { %p6153_p1 = scmp.ne.s32.totalorder %s7506_s5, %s6152_s3  ;;  %p6159_p12 = scmp.lt.u32.totalorder %s6152_s3, %s7506_s5 }
  0x7f   : > { %p6155_p3 = pnand %p6153_p1, %p6515_p7 }
  0x81   : > { %p6156_p11 = pneg %p6155_p3 }
  0x83   : > { %p6161_p13 = pnand %p6159_p12, %p6156_p11 }
  0x85   : > { %6164 = shalt.err (!%p6161_p13)
}
  0x86   : > { %s6165_s30 = scalar_lea.vmem %s395_s29, 768  ;;  %p6173_p6 = scmp.lt.s32.totalorder %s395_s29, %s395_s29 }
  0x87   : > { %p6166_p0 = scmp.ne.s32.totalorder %s395_s29, %s6165_s30  ;;  %p6174_p8 = scmp.lt.s32.totalorder %s6165_s30, %s6165_s30 }
  0x89   : > { %p6168_p2 = pnand %p6166_p0, %p6515_p7  ;;  %p6175_p9 = por %p6174_p8, %p6173_p6 }
  0x8b   : > { %p6169_p4 = pneg %p6168_p2 }
  0x8d   : > { %p6176_p10 = pnand %p6175_p9, %p6169_p4 }
  0x8f   : > { %6179 = shalt.err (!%p6176_p10)
}
  0x90   : > { %s7534_s17 = smov 4   ;;  %s7535_s7 = smov 64  }
  0x91   : > { %5717 = dma.hbm_to_vmem [thread:$0]  (!%p6499_p5), %s7506_s5, 768, %s395_s29, [#allocation8], %s7535_s7, %s7535_s7, %s7534_s17  }
  0x92   : > { %s6369_s20 = smov [#allocation15]   ;;  %s6180_s4 = scalar_lea.hbm %s7513_s12, 416 }
  0x93   : > { %s443_s13 = sshll.u32 %s6369_s20, 4  ;;  %p6181_p1 = scmp.ne.s32.totalorder %s7513_s12, %s6180_s4  ;;  %s444_s13 = int_to_ptr.vmem [resolvable:$true] %s443_s13 }
  0x94   : > { %p6187_p12 = scmp.lt.u32.totalorder %s6180_s4, %s7513_s12 }
  0x95   : > { %p6183_p3 = pnand %p6181_p1, %p6515_p7 }
  0x97   : > { %p6184_p11 = pneg %p6183_p3 }
  0x99   : > { %p6189_p13 = pnand %p6187_p12, %p6184_p11 }
  0x9b   : > { %6192 = shalt.err (!%p6189_p13)
}
  0x9c   : > { %s6193_s29 = scalar_lea.vmem %s444_s13, 416  ;;  %p6201_p6 = scmp.lt.s32.totalorder %s444_s13, %s444_s13 }
  0x9d   : > { %p6194_p0 = scmp.ne.s32.totalorder %s444_s13, %s6193_s29  ;;  %p6202_p8 = scmp.lt.s32.totalorder %s6193_s29, %s6193_s29 }
  0x9f   : > { %p6196_p2 = pnand %p6194_p0, %p6515_p7  ;;  %p6203_p9 = por %p6202_p8, %p6201_p6 }
  0xa1   : > { %p6197_p4 = pneg %p6196_p2 }
  0xa3   : > { %p6204_p10 = pnand %p6203_p9, %p6197_p4 }
  0xa5   : > { %6207 = shalt.err (!%p6204_p10)
}
  0xa6   : > { %5726 = dma.hbm_to_vmem [thread:$0]  (!%p6499_p5), %s7513_s12, 416, %s444_s13, [#allocation14]  }
  0xa7   : > { %s6639_s16 = sadd.s32 1, %s6356_s28   ;;  %s41_s18 = sadd.s32 1, %s6352_s27 }
  0xa8   : > { %s38_s17 = ssub.s32 %s6356_s28, %s6639_s16  ;;  %p48_p7 = scmp.ne.s32.totalorder %s6352_s27, %s6348_s26 }
  0xa9   : > { %p39_p1 = scmp.eq.s32.totalorder %s38_s17, 0  ;;  %p49_p3 = scmp.eq.s32.totalorder %s6356_s28, 0 }
  0xaa   : > { %p54_p11 = scmp.ne.s32.totalorder %s6348_s26, %s6344_s25  ;;  %p5743_p12 = scmp.lt.s32.totalorder %s6356_s28, 2 }
  0xab   : > { %s6651_s7 = scalar_select %p39_p1, %s6352_s27, %s41_s18  }
  0xac   : > { %p50_p13 = por %p49_p3, %p48_p7  ;;  %p7536_p0 = scmp.eq.s32.totalorder %s6484_s14, 0 }
  0xad   : > { %s6660_s6 = sand.u32 1, %s6352_s27   ;;  %s5222_s20 = sshll.u32 %s6356_s28, 7 }
  0xae   : > { %p6655_p2 = por %p7536_p0, %p54_p11  ;;  %s5221_s13 = sshll.u32 %s6660_s6, 3 }
  0xaf   : > { %s7538_s0 = sld [smem:[#allocation23_spill]]  ;;  %s458_s4 = scalar_lea.vmem [#allocation2], %s5221_s13 }
  0xb0   : > { %s7537_s23 = scalar_select %p6655_p2, 1, 0 }
  0xb1   : > { %s465_s3 = sshll.u32 %s458_s4, 4  ;;  %p6671_p5 = pnand %p5743_p12, %p50_p13  ;;  %s6675_s3 = int_to_ptr.vmem [resolvable:$true] %s465_s3 }
  0xb2   : > { %s6680_s29 = scalar_lea.hbm %s7502_s1, %s5222_s20  ;;  %s455_s21 = scalar_lea.sflag [#allocation3], %s6660_s6 }
  0xb3   : > { %p6687_p6 = pneg %p6671_p5 }
  0xb5   : > { %s6667_s25 = scalar_lea.hbm %s7538_s0, %s5222_s20  ;;  %s6213_s2 = scalar_lea.hbm %s7538_s0, 256 }
  0xb6   : > { %s6208_s30 = scalar_lea.hbm %s6667_s25, 128  ;;  %p6214_p10 = scmp.lt.u32.totalorder %s6667_s25, %s7538_s0 }
  0xb7   : > { %p6209_p4 = scmp.ne.s32.totalorder %s6667_s25, %s6208_s30  ;;  %p6215_p7 = scmp.lt.u32.totalorder %s6213_s2, %s6208_s30 }
  0xb8   : > { %p6217_p3 = scmp.lt.u32.totalorder %s6208_s30, %s6667_s25 }
  0xb9   : > { %p6211_p8 = pnand %p6687_p6, %p6209_p4  ;;  %p6216_p1 = por %p6215_p7, %p6214_p10 }
  0xbb   : > { %p6212_p9 = pneg %p6211_p8  ;;  %p6218_p11 = por %p6217_p3, %p6216_p1 }
  0xbd   : > { %p6219_p12 = pnand %p6218_p11, %p6212_p9 }
  0xbf   : > { %6222 = shalt.err (!%p6219_p12)
}
  0xc0   : > { %s6223_s20 = scalar_lea.vmem %s6675_s3, 128  ;;  %s6370_s19 = smov [#allocation2]  }
  0xc1   : > { %p6224_p13 = scmp.ne.s32.totalorder %s6675_s3, %s6223_s20  ;;  %s6228_s17 = sshll.u32 %s6370_s19, 4  ;;  %s6229_s17 = int_to_ptr.vmem [resolvable:$false] %s6228_s17 }
  0xc2   : > { %s6230_s22 = scalar_lea.vmem %s6229_s17, 256  ;;  %p6231_p8 = scmp.lt.s32.totalorder %s6675_s3, %s6229_s17 }
  0xc3   : > { %p6226_p0 = pnand %p6224_p13, %p6687_p6  ;;  %p6232_p2 = scmp.lt.s32.totalorder %s6230_s22, %s6223_s20 }
  0xc5   : > { %p6227_p4 = pneg %p6226_p0  ;;  %p6233_p10 = por %p6232_p2, %p6231_p8 }
  0xc7   : > { %p6234_p7 = pnand %p6233_p10, %p6227_p4 }
  0xc9   : > { %6237 = shalt.err (!%p6234_p7)
}
  0xca   : > { %5730 = dma.hbm_to_vmem [thread:$0]  (!%p6671_p5), %s6667_s25, 128, %s6675_s3, %s455_s21  }
  0xcb   : > { %s5674_s30 = smul.u32 24, %s6660_s6  ;;  %s472_s2 = sand.u32 1, %s6356_s28  }
  0xcc   : > { %s476_s4 = scalar_lea.vmem [#allocation4], %s5221_s13  ;;  %s5675_s17 = smul.u32 384, %s6356_s28 }
  0xcd   : > { %s483_s24 = sshll.u32 %s476_s4, 4  ;;  %s494_s20 = scalar_lea.vmem [#allocation10], %s5674_s30  ;;  %s6714_s24 = int_to_ptr.vmem [resolvable:$true] %s483_s24 }
  0xce   : > { %s501_s19 = sshll.u32 %s494_s20, 4  ;;  %s473_s22 = scalar_lea.sflag [#allocation5], %s472_s2  ;;  %s6716_s19 = int_to_ptr.vmem [resolvable:$true] %s501_s19 }
  0xcf   : > { %s6238_s0 = scalar_lea.hbm %s6680_s29, 128  ;;  %s6243_s6 = scalar_lea.hbm %s7502_s1, 256 }
  0xd0   : > { %p6239_p2 = scmp.ne.s32.totalorder %s6680_s29, %s6238_s0  ;;  %p6244_p3 = scmp.lt.u32.totalorder %s6680_s29, %s7502_s1 }
  0xd1   : > { %p6245_p11 = scmp.lt.u32.totalorder %s6243_s6, %s6238_s0  ;;  %p6247_p13 = scmp.lt.u32.totalorder %s6238_s0, %s6680_s29 }
  0xd2   : > { %p6241_p9 = pnand %p6239_p2, %p6687_p6 }
  0xd3   : > { %p6246_p12 = por %p6245_p11, %p6244_p3 }
  0xd4   : > { %p6242_p1 = pneg %p6241_p9 }
  0xd5   : > { %p6248_p0 = por %p6247_p13, %p6246_p12 }
  0xd7   : > { %p6249_p4 = pnand %p6248_p0, %p6242_p1 }
  0xd9   : > { %6252 = shalt.err (!%p6249_p4)
}
  0xda   : > { %s6253_s30 = scalar_lea.vmem %s6714_s24, 128  ;;  %s6371_s4 = smov [#allocation4]  }
  0xdb   : > { %p6254_p8 = scmp.ne.s32.totalorder %s6714_s24, %s6253_s30  ;;  %s6258_s20 = sshll.u32 %s6371_s4, 4  ;;  %s6259_s20 = int_to_ptr.vmem [resolvable:$false] %s6258_s20 }
  0xdc   : > { %s6260_s25 = scalar_lea.vmem %s6259_s20, 256  ;;  %p6261_p2 = scmp.lt.s32.totalorder %s6714_s24, %s6259_s20 }
  0xdd   : > { %p6256_p10 = pnand %p6254_p8, %p6687_p6  ;;  %p6262_p9 = scmp.lt.s32.totalorder %s6260_s25, %s6253_s30 }
  0xdf   : > { %p6257_p7 = pneg %p6256_p10  ;;  %p6263_p3 = por %p6262_p9, %p6261_p2 }
  0xe1   : > { %p6264_p11 = pnand %p6263_p3, %p6257_p7 }
  0xe3   : > { %6267 = shalt.err (!%p6264_p11)
}
  0xe4   : > { %5733 = dma.hbm_to_vmem [thread:$0]  (!%p6671_p5), %s6680_s29, 128, %s6714_s24, %s473_s22  }
  0xe5   : > { %s6747_s6 = scalar_lea.hbm %s7509_s8, %s5675_s17  ;;  %s6751_s13 = scalar_lea.sflag [#allocation11], %s472_s2 }
  0xe6   : > { %s6268_s21 = scalar_lea.hbm %s6747_s6, 384  ;;  %s6273_s24 = scalar_lea.hbm %s7509_s8, 768 }
  0xe7   : > { %p6269_p1 = scmp.ne.s32.totalorder %s6747_s6, %s6268_s21  ;;  %p6274_p0 = scmp.lt.u32.totalorder %s6747_s6, %s7509_s8 }
  0xe8   : > { %p6275_p4 = scmp.lt.u32.totalorder %s6273_s24, %s6268_s21  ;;  %p6277_p10 = scmp.lt.u32.totalorder %s6268_s21, %s6747_s6 }
  0xe9   : > { %p6271_p12 = pnand %p6269_p1, %p6687_p6 }
  0xea   : > { %p6276_p8 = por %p6275_p4, %p6274_p0 }
  0xeb   : > { %p6272_p13 = pneg %p6271_p12 }
  0xec   : > { %p6278_p7 = por %p6277_p10, %p6276_p8 }
  0xee   : > { %p6279_p2 = pnand %p6278_p7, %p6272_p13 }
  0xf0   : > { %6282 = shalt.err (!%p6279_p2)
}
  0xf1   : > { %s6283_s28 = scalar_lea.vmem %s6716_s19, 384  ;;  %s6372_s2 = smov [#allocation10]  }
  0xf2   : > { %p6284_p9 = scmp.ne.s32.totalorder %s6716_s19, %s6283_s28  ;;  %s6288_s17 = sshll.u32 %s6372_s2, 4  ;;  %s6289_s17 = int_to_ptr.vmem [resolvable:$false] %s6288_s17 }
  0xf3   : > { %s6290_s20 = scalar_lea.vmem %s6289_s17, 768  ;;  %p6291_p1 = scmp.lt.s32.totalorder %s6716_s19, %s6289_s17 }
  0xf4   : > { %p6286_p3 = pnand %p6284_p9, %p6687_p6  ;;  %p6292_p12 = scmp.lt.s32.totalorder %s6290_s20, %s6283_s28 }
  0xf6   : > { %p6287_p11 = pneg %p6286_p3  ;;  %p6293_p0 = por %p6292_p12, %p6291_p1 }
  0xf8   : > { %p6294_p4 = pnand %p6293_p0, %p6287_p11 }
  0xfa   : > { %6297 = shalt.err (!%p6294_p4)
}
  0xfb   : > { %s6373_s25 = smov 128   ;;  %s6374_s0 = smov 8  }
  0xfc   : > { %5736 = dma.hbm_to_vmem [thread:$0]  (!%p6671_p5), %s6747_s6, 384, %s6716_s19, %s6751_s13, %s6373_s25, %s6373_s25, %s6374_s0  }
  0xfd   : > { %p7541_p6 = scmp.ne.s32.totalorder %s7529_s15, 0 }
  0xfe   : > { %s515_s18 = sand.u32 (!%p7541_p6), 1, %s6348_s26   ;;  %p7542_p13 = scmp.ne.s32.totalorder (!%p7541_p6), %s7537_s23, 0 }
  0xff   : > { %513 = sbr.rel (%p7541_p6) target bundleno = 4025 (0xfb9), region = 72  ;;  %s5227_s3 = sshll.u32 (!%p7541_p6), %s515_s18, 3 }
 0x100   : > { %s516_s21 = scalar_lea.sflag (!%p7541_p6), [#allocation3], %s515_s18  ;;  %s6778_s30 = scalar_lea.vmem (!%p7541_p6), [#allocation2], %s5227_s3 }
 0x106   : > { %6315 = dma.done.wait (%p7542_p13), %s516_s21, 128  }
 0x107   : > { %6317 = vsyncadd (%p7542_p13), %s516_s21, 4294967168  ;;  %s524_s29 = sand.u32 1, %s6484_s14   ;;  %s528_s19 = scalar_lea.vmem [#allocation4], %s5227_s3 }
 0x108   : > { %s525_s11 = scalar_lea.sflag [#allocation5], %s524_s29 }
 0x109   : > { %6319 = dma.done.wait (%p7542_p13), %s525_s11, 128  }
 0x10a   : > { %6321 = vsyncadd (%p7542_p13), %s525_s11, 4294967168  ;;  %p7543_p5 = scmp.eq.s32.totalorder %s6484_s14, 0 }
 0x10c   : > { %6323 = dma.done.wait (%p7543_p5), [#allocation5], 256   ;;  %p7544_p8 = pmov %p7543_p5 }
 0x10d   : > { %p7545_p10 = pmov %p7543_p5 }
 0x10e   : > { %6325 = vsyncadd (%p7544_p8), [#allocation5], 4294967040 }
 0x10f   : > { %6327 = dma.done.wait (%p7545_p10), [#allocation8], 1536   ;;  %p7546_p7 = pmov %p7543_p5 }
 0x110   : > { %s5676_s15 = smul.u32 24, %s515_s18  ;;  %s546_s6 = scalar_lea.sflag [#allocation11], %s524_s29 }
 0x111   : > { %6329 = vsyncadd (%p7546_p7), [#allocation8], 4294965760 }
 0x112   : > { %s6797_s13 = scalar_lea.vmem [#allocation10], %s5676_s15 }
 0x113   : > { %6331 = dma.done.wait (%p7542_p13), %s546_s6, 384  }
 0x114   : > { %6333 = vsyncadd (%p7542_p13), %s546_s6, 4294966912  ;;  %p7547_p2 = pmov %p7543_p5 }
 0x116   : > { %6335 = dma.done.wait (%p7547_p2), [#allocation11], 6656   ;;  %p7548_p9 = pmov %p7547_p2 }
 0x117   : > { %p7549_p3 = pmov %p7547_p2 }
 0x118   : > { %6337 = vsyncadd (%p7548_p9), [#allocation11], 4294960640 }
 0x119   : > { %6339 = dma.done.wait (%p7549_p3), [#allocation14], 7072   ;;  %p7550_p11 = pmov %p7547_p2 }
 0x11a   : > { %v6375_v0 = vmov 0.0   ;;  %vm6376_vm0 = vmmov 0   ;;  %v5814_v1 = vld [vmem:[#allocation6] sm:$0xff]   ;;  %v5815_v2 = vld [vmem:[#allocation6 + $0x8] sm:$0xff]   ;;  %v620_v3 = vld [vmem:[%s528_s19] sm:$0xff]  ;;  %vm645_vm1 = vcmask 261120  }
 0x11b   : > { %6341 = vsyncadd (%p7550_p11), [#allocation14], 4294960224  ;;  %5490 = vmatprep.subr.bf16.mxu0 %v6375_v0  ;;  %5494 = vmatprep.mubr.msk.bf16.mxu0 %vm6376_vm0, %v6375_v0  ;;  %v621_v4 = vpack.c.bf16 %v620_v3, %v620_v3  ;;  %v5816_v5 = vld [vmem:[#allocation7 + $0x4] ss:$12 sps:$4 sm:$0xff]   ;;  %v5818_v6 = vld [vmem:[#allocation7] ss:$12 sps:$4 sm:$0xff]  }
 0x11c   : > { %5491 = vmatpush3.bf16.msra.mxu0 %v5814_v1  ;;  %v5819_v7 = vld [vmem:[#allocation7 + $0x8] ss:$12 sps:$4 sm:$0xff]   ;;  %738 = vmatprep.subr.bf16.mxu1 %v5816_v5  ;;  %v5822_v9 = vld [vmem:[#allocation7 + $0x18] ss:$12 sps:$4 sm:$0xff]   ;;  %v5823_v10 = vld [vmem:[#allocation7 + $0x20] ss:$12 sps:$4 sm:$0xff]  }
 0x11d   : > { %5492 = vmatprep.subr.bf16.mxu0 %v6375_v0  ;;  %739 = vmatpush1.bf16.msra.mxu1 %v5818_v6  ;;  %v5820_v8 = vld [vmem:[#allocation7 + $0x1c] ss:$12 sps:$4 sm:$0xff]   ;;  %v6377_v11 = vmov 0   ;;  %s7551_s22 = sld [smem:[#allocation25_spill]]  ;;  %s6378_s4 = smov 120   ;;  %vm826_vm3 = vcmask 64512  }
 0x11e   : > { %740 = vmatprep.subr.bf16.mxu1 %v5820_v8  ;;  %770 = vmatprep.mubr.bf16.mxu1 %v6377_v11  ;;  %v692_v18 = vld [vmem:[%s6778_s30] sm:$0xff]  ;;  %s6379_s28 = smov 96   ;;  %s6380_s2 = smov 80   ;;  %vm893_vm5 = vcmask 1043456   ;;  %vm1286_vm7 = vcmask 130048   ;;  %vm1288_vm8 = vcmask 195584  }
 0x11f   : > { %s6381_s17 = smov 88   ;;  %s6382_s20 = smov 72   ;;  %v821_v43 = vld [vmem:[%s6797_s13] sm:$0xff] }
 0x120   : > { %5493 = vmatpush3.bf16.msra.mxu0 %v5815_v2  ;;  %s6383_s25 = smov 112   ;;  %s6384_s0 = smov 104   ;;  %vm874_vm4 = vcmp.gt.f32.partialorder %v821_v43, 0.0 }
 0x121   : > { %5498 = vmatprep.subr.bf16.mxu0 %v6375_v0  ;;  %741 = vmatpush1.bf16.msra.mxu1 %v5822_v9  ;;  %s6385_s18 = smov 56   ;;  %s6386_s3 = smov 64  }
 0x122   : > { %5506 = vmatprep.subr.bf16.mxu1 %v6375_v0  ;;  %s6387_s21 = smov 48   ;;  %s6388_s30 = smov 32  }
 0x123   : > { %5495 = vmatmul.mubr.msk.bf16.vlgmr.msra.gmra.mrb[0].mxu0 %vm645_vm1, %v621_v4  ;;  %v5236_v12 = vld [vmem:[%s7551_s22] ss:$0 sm:$0xff]  ;;  %s6389_s29 = smov 24   ;;  %s6390_s11 = smov 16  }
 0x124   : > { %5502 = vmatprep.mubr.msk.bf16.mxu0 %vm6376_vm0, %v6375_v0  ;;  %5499 = vmatpush3.bf16.msra.mxu0 %v5819_v7  ;;  %s6391_s19 = smov 8   ;;  %s6392_s15 = smov 40  }
 0x125   : > { %5500 = vmatprep.subr.bf16.mxu0 %v6375_v0  ;;  %s7552_s23 = sld [smem:[#allocation27_spill]]  ;;  %p614_p1 = scmp.lt.s32.totalorder %s6484_s14, 1 }
 0x127   : > { %s7561_s14 = smov (!%p614_p1, %s6484_s14), 1 }
 0x128   : > { %5501 = vmatpush3.bf16.msra.mxu0 %v5823_v10 }
 0x129   : > { %5512 = vmatprep.subr.bf16.mxu0 %v6375_v0 }
 0x1f6   : > { %v683_v13 = vpop.f32.mrb[0].mxu0 }
 0x1f7   : > { %v684_v14 = vadd.f32 %v5236_v12, %v683_v13  ;;  %v5496_v15 = vpop.f32.mrb[1].mxu0 }
 0x1f8   : > { %v686_v16 = vpop.f32.mrb[2].mxu0 }
 0x1f9   : > { %vm689_vm2 = vcmp.gt.f32.partialorder %v684_v14, 0.0  ;;  %v690_v17 = vmul.f32 0.01, %v684_v14  ;;  %v5497_v19 = vpop.f32.mrb[3].mxu0 }
 0x1fb   : > { %v691_v20 = vsel %vm689_vm2, %v684_v14, %v690_v17 }
 0x1fc   : > { %v6827_v21 = vadd.f32 %v692_v18, %v691_v20 }
 0x1fe   : > { %v694_v22 = vpack.c.bf16 %v6827_v21, %v6827_v21 }
 0x200   : > { %5246 = vmatmul.mubr.msk.bf16.vlgmr.msra.gmra.mrb[0].mxu1 %vm645_vm1, %v694_v22  ;;  %5503 = vmatmul.mubr.msk.bf16.vlgmr.msra.gmra.mrb[4].mxu0 %vm645_vm1, %v694_v22 }
 0x201   : > { %5508 = vmatprep.mubr.msk.bf16.mxu1 %vm6376_vm0, %v6375_v0  ;;  %5514 = vmatprep.mubr.msk.bf16.mxu0 %vm6376_vm0, %v6375_v0 }
 0x2d3   : > { %v772_v23 = vpop.f32.mrb[0].mxu1  ;;  %v6837_v24 = vpop.f32.mrb[4].mxu0 }
 0x2d4   : > { %v6839_v25 = vpack.c.bf16 %v772_v23, %v772_v23  ;;  %v6841_v26 = vpop.f32.mrb[1].mxu1  ;;  %v5504_v27 = vpop.f32.mrb[5].mxu0 }
 0x2d5   : > { %v776_v28 = vpop.f32.mrb[2].mxu1  ;;  %v816_v29 = vpop.f32.mrb[6].mxu0 }
 0x2d6   : > { %937 = vrot.lane.b32.xlu1 %v6839_v25, %s6378_s4  ;;  %824 = vrot.lane.b32.xlu0 %v6839_v25, %s6379_s28  ;;  %v777_v30 = vpop.f32.mrb[3].mxu1  ;;  %v5505_v31 = vpop.f32.mrb[7].mxu0 }
 0x2da   : > { %1051 = vrot.lane.b32.xlu1 %v6839_v25, %s6380_s2  ;;  %939 = vrot.lane.b32.xlu0 %v6839_v25, %s6381_s17 }
 0x2de   : > { %1163 = vrot.lane.b32.xlu1 %v6839_v25, %s6382_s20  ;;  %1049 = vrot.lane.b32.xlu0 %v6839_v25, %s6383_s25 }
 0x2e2   : > { %1161 = vrot.lane.b32.xlu0 %v6839_v25, %s6384_s0 }
 0x348   : > { %v825_v32 = vpop.permute.xlu0 %824  ;;  %v938_v35 = vpop.permute.xlu1 %937 }
 0x349   : > { %v831_v33 = vsel %vm826_vm3, %v825_v32, 0 }
 0x34a   : > { %5507 = vmatpush3.bf16.xpose.msra.mxu1 %v831_v33 }
 0x34b   : > { %5518 = vmatprep.subr.bf16.mxu1 %v6375_v0 }
 0x34c   : > { %v940_v34 = vpop.permute.xlu0 %939  ;;  %v1052_v37 = vpop.permute.xlu1 %1051 }
 0x34d   : > { %v945_v36 = vsel %vm826_vm3, %v940_v34, 0  ;;  %v1057_v38 = vsel %vm826_vm3, %v1052_v37, 0  ;;  %v6912_v34 = vpack.c.bf16 %v6841_v26, %v6841_v26 }
 0x350   : > { %v1164_v39 = vpop.permute.xlu1 %1163  ;;  %v1050_v40 = vpop.permute.xlu0 %1049 }
 0x351   : > { %5509 = vmatmul.mubr.msk.bf16.vlgmr.msra.gmra.mrb[4].mxu1 %vm826_vm3, %v6839_v25  ;;  %v1169_v41 = vsel %vm826_vm3, %v1164_v39, 0 }
 0x352   : > { %5519 = vmatpush3.bf16.xpose.msra.mxu1 %v945_v36  ;;  %5520 = vmatprep.mubr.msk.bf16.mxu1 %vm6376_vm0, %v6375_v0 }
 0x353   : > { %5530 = vmatprep.subr.bf16.mxu1 %v6375_v0 }
 0x354   : > { %v1162_v42 = vpop.permute.xlu0 %1161 }
 0x359   : > { %5521 = vmatmul.mubr.msk.bf16.vlgmr.msra.gmra.mrb[8].mxu1 %vm826_vm3, %v938_v35 }
 0x35a   : > { %5531 = vmatpush3.bf16.xpose.msra.mxu1 %v1057_v38  ;;  %5532 = vmatprep.mubr.msk.bf16.mxu1 %vm6376_vm0, %v6375_v0 }
 0x35b   : > { %5542 = vmatprep.subr.bf16.mxu1 %v6375_v0 }
 0x361   : > { %5533 = vmatmul.mubr.msk.bf16.vlgmr.msra.gmra.mrb[12].mxu1 %vm826_vm3, %v1050_v40 }
 0x362   : > { %5543 = vmatpush3.bf16.xpose.msra.mxu1 %v1169_v41  ;;  %5544 = vmatprep.mubr.msk.bf16.mxu1 %vm6376_vm0, %v6375_v0 }
 0x363   : > { %5554 = vmatprep.subr.bf16.mxu1 %v6375_v0 }
 0x369   : > { %5545 = vmatmul.mubr.msk.bf16.vlgmr.msra.gmra.mrb[16].mxu1 %vm826_vm3, %v1162_v42 }
 0x36a   : > { %5558 = vmatprep.mubr.msk.bf16.mxu1 %vm6376_vm0, %v6375_v0 }
 0x424   : > { %v867_v44 = vpop.f32.mrb[4].mxu1 }
 0x425   : > { %v873_v45 = vmul.f32 0.35355338, %v867_v44  ;;  %v5510_v46 = vpop.f32.mrb[5].mxu1 }
 0x426   : > { %v870_v47 = vpop.f32.mrb[6].mxu1 }
 0x427   : > { %v5511_v48 = vpop.f32.mrb[7].mxu1  ;;  %v875_v49 = vsel %vm874_vm4, %v873_v45, -1e+09 }
 0x428   : > { %v876_v50 = vsel %vm826_vm3, %v875_v49, -inf }
 0x429   : > { %877 = vmax.xlane.f32.xlu1 %v876_v50 }
 0x42c   : > { %v981_v51 = vpop.f32.mrb[8].mxu1 }
 0x42d   : > { %v987_v52 = vmul.f32 0.35355338, %v981_v51  ;;  %v5522_v53 = vpop.f32.mrb[9].mxu1 }
 0x42e   : > { %v984_v54 = vpop.f32.mrb[10].mxu1 }
 0x42f   : > { %v5523_v55 = vpop.f32.mrb[11].mxu1  ;;  %v988_v56 = vsel %vm874_vm4, %v987_v52, -1e+09 }
 0x430   : > { %v989_v57 = vsel %vm826_vm3, %v988_v56, -inf }
 0x431   : > { %990 = vmax.xlane.f32.xlu0 %v989_v57  ;;  %v1383_v57 = vsel %vm826_vm3, %v6912_v34, 0 }
 0x434   : > { %v1093_v58 = vpop.f32.mrb[12].mxu1 }
 0x435   : > { %v1099_v59 = vmul.f32 0.35355338, %v1093_v58  ;;  %v5534_v60 = vpop.f32.mrb[13].mxu1 }
 0x436   : > { %v1096_v61 = vpop.f32.mrb[14].mxu1 }
 0x437   : > { %v5535_v62 = vpop.f32.mrb[15].mxu1  ;;  %v1100_v63 = vsel %vm874_vm4, %v1099_v59, -1e+09 }
 0x438   : > { %v1101_v1 = vsel %vm826_vm3, %v1100_v63, -inf }
 0x439   : > { %1102 = vmax.xlane.f32.xlu0 %v1101_v1 }
 0x43c   : > { %v1205_v2 = vpop.f32.mrb[16].mxu1 }
 0x43d   : > { %v1211_v3 = vmul.f32 0.35355338, %v1205_v2  ;;  %v5546_v4 = vpop.f32.mrb[17].mxu1 }
 0x43e   : > { %v1208_v5 = vpop.f32.mrb[18].mxu1 }
 0x43f   : > { %v5547_v6 = vpop.f32.mrb[19].mxu1  ;;  %v1212_v7 = vsel %vm874_vm4, %v1211_v3, -1e+09 }
 0x440   : > { %v1213_v8 = vsel %vm826_vm3, %v1212_v7, -inf }
 0x441   : > { %1214 = vmax.xlane.f32.xlu1 %v1213_v8 }
 0x452   : > { %1001 = vrot.lane.b32.xlu1 %v6839_v25, %s6385_s18 }
 0x4b6   : > { %v878_v9 = vpop.xlane.xlu1 %877 }
 0x4b7   : > { %v879_v10 = vsub.f32 %v875_v49, %v878_v9 }
 0x4b9   : > { %v880_v12 = vmul.f32 1.442695, %v879_v10 }
 0x4bb   : > { %5986 = vpow2.f32 %v880_v12 }
 0x4be   : > { %v991_v13 = vpop.xlane.xlu0 %990 }
 0x4bf   : > { %v992_v14 = vsub.f32 %v988_v56, %v991_v13 }
 0x4c1   : > { %v993_v15 = vmul.f32 1.442695, %v992_v14 }
 0x4c3   : > { %5988 = vpow2.f32 %v993_v15 }
 0x4c5   : > { %v5987_v16 = vpop.eup %5986 }
 0x4c6   : > { %v882_v17 = vsel %vm826_vm3, %v5987_v16, 0.0  ;;  %v1103_v29 = vpop.xlane.xlu0 %1102 }
 0x4c7   : > { %883 = vadd.xlane.f32.xlu0 %v882_v17  ;;  %v1104_v30 = vsub.f32 %v1100_v63, %v1103_v29 }
 0x4c9   : > { %v1105_v31 = vmul.f32 1.442695, %v1104_v30 }
 0x4cd   : > { %v5989_v18 = vpop.eup %5988 }
 0x4ce   : > { %v1215_v19 = vpop.xlane.xlu1 %1214  ;;  %v995_v20 = vsel %vm826_vm3, %v5989_v18, 0.0 }
 0x4cf   : > { %v1216_v22 = vsub.f32 %v1212_v7, %v1215_v19  ;;  %996 = vadd.xlane.f32.xlu1 %v995_v20 }
 0x4d1   : > { %v1217_v23 = vmul.f32 1.442695, %v1216_v22 }
 0x4d2   : > { %v1002_v36 = vpop.permute.xlu1 %1001 }
 0x4d3   : > { %5990 = vpow2.f32 %v1217_v23  ;;  %v1007_v41 = vsel %vm893_vm5, %v1002_v36, 0  ;;  %v5259_v23 = vld [vmem:[%s6797_s13 + $0x8] sm:$0xff] }
 0x4d4   : > { %5992 = vpow2.f32 %v1105_v31  ;;  %vm1426_vm6 = vcmp.gt.f32.partialorder %v5259_v23, 0.0 }
 0x4dd   : > { %v6891_v27 = vpop.eup %5990  ;;  %888 = vrot.lane.b32.xlu0 %v6839_v25, %s6386_s3 }
 0x4de   : > { %v1219_v28 = vsel %vm826_vm3, %v6891_v27, 0.0  ;;  %v5993_v32 = vpop.eup %5992 }
 0x4df   : > { %1220 = vadd.xlane.f32.xlu1 %v1219_v28  ;;  %v1107_v33 = vsel %vm826_vm3, %v5993_v32, 0.0 }
 0x4f0   : > { %1113 = vrot.lane.b32.xlu1 %v6839_v25, %s6387_s21 }
 0x4f4   : > { %1377 = vrot.lane.b32.xlu1 %v6839_v25, %s6388_s30 }
 0x4f8   : > { %1489 = vrot.lane.b32.xlu1 %v6839_v25, %s6389_s29 }
 0x4fc   : > { %1108 = vadd.xlane.f32.xlu0 %v1107_v33  ;;  %1601 = vrot.lane.b32.xlu1 %v6839_v25, %s6390_s11 }
 0x500   : > { %1713 = vrot.lane.b32.xlu1 %v6839_v25, %s6391_s19 }
 0x512   : > { %1225 = vrot.lane.b32.xlu0 %v6839_v25, %s6392_s15 }
 0x516   : > { %1491 = vrot.lane.b32.xlu0 %v6912_v34, %s6378_s4 }
 0x51a   : > { %1603 = vrot.lane.b32.xlu0 %v6912_v34, %s6383_s25 }
 0x51e   : > { %1715 = vrot.lane.b32.xlu0 %v6912_v34, %s6384_s0 }
 0x554   : > { %v884_v35 = vpop.xlane.xlu0 %883 }
 0x555   : > { %5994 = vrcp.f32 %v884_v35 }
 0x558   : > { %v889_v37 = vpop.permute.xlu0 %888 }
 0x559   : > { %v895_v25 = vsel %vm893_vm5, %v889_v37, 0 }
 0x55a   : > { %5513 = vmatpush3.bf16.msra.mxu0 %v895_v25 }
 0x55b   : > { %5524 = vmatprep.subr.bf16.mxu0 %v6375_v0 }
 0x55c   : > { %v997_v26 = vpop.xlane.xlu1 %996 }
 0x55d   : > { %5996 = vrcp.f32 %v997_v26 }
 0x55f   : > { %v5995_v38 = vpop.eup %5994 }
 0x560   : > { %v886_v39 = vmul.f32 %v5995_v38, %v5987_v16 }
 0x562   : > { %v887_v40 = vpack.c.bf16 %v886_v39, %v886_v39 }
 0x564   : > { %5515 = vmatmul.mubr.msk.bf16.vlgmr.msra.gmra.mrb[8].mxu0 %vm826_vm3, %v887_v40 }
 0x565   : > { %5525 = vmatpush3.bf16.msra.mxu0 %v1007_v41  ;;  %5526 = vmatprep.mubr.msk.bf16.mxu0 %vm6376_vm0, %v6375_v0 }
 0x566   : > { %5536 = vmatprep.subr.bf16.mxu0 %v6375_v0 }
 0x567   : > { %v5997_v42 = vpop.eup %5996 }
 0x568   : > { %v999_v43 = vmul.f32 %v5997_v42, %v5989_v18 }
 0x56a   : > { %v1000_v44 = vpack.c.bf16 %v999_v43, %v999_v43 }
 0x56c   : > { %5527 = vmatmul.mubr.msk.bf16.vlgmr.msra.gmra.mrb[12].mxu0 %vm826_vm3, %v1000_v44  ;;  %v1221_v45 = vpop.xlane.xlu1 %1220 }
 0x56d   : > { %5538 = vmatprep.mubr.msk.bf16.mxu0 %vm6376_vm0, %v6375_v0 }
 0x570   : > { %v1114_v46 = vpop.permute.xlu1 %1113 }
 0x571   : > { %v1119_v47 = vsel %vm893_vm5, %v1114_v46, 0 }
 0x572   : > { %5537 = vmatpush3.bf16.msra.mxu0 %v1119_v47 }
 0x573   : > { %5548 = vmatprep.subr.bf16.mxu0 %v6375_v0 }
 0x574   : > { %v1378_v59 = vpop.permute.xlu1 %1377 }
 0x578   : > { %v1490_v62 = vpop.permute.xlu1 %1489 }
 0x57c   : > { %v1602_v2 = vpop.permute.xlu1 %1601 }
 0x580   : > { %v1714_v4 = vpop.permute.xlu1 %1713 }
 0x589   : > { %v1109_v48 = vpop.xlane.xlu0 %1108 }
 0x58a   : > { %5998 = vrcp.f32 %v1109_v48 }
 0x58b   : > { %6000 = vrcp.f32 %v1221_v45 }
 0x58d   : > { %v1226_v51 = vpop.permute.xlu0 %1225 }
 0x58e   : > { %v1231_v54 = vsel %vm893_vm5, %v1226_v51, 0 }
 0x591   : > { %v1492_v58 = vpop.permute.xlu0 %1491 }
 0x592   : > { %v1497_v60 = vsel %vm826_vm3, %v1492_v58, 0 }
 0x594   : > { %v5999_v49 = vpop.eup %5998 }
 0x595   : > { %v1111_v50 = vmul.f32 %v5999_v49, %v5993_v32  ;;  %v6001_v53 = vpop.eup %6000  ;;  %v1604_v61 = vpop.permute.xlu0 %1603 }
 0x596   : > { %v1223_v55 = vmul.f32 %v6001_v53, %v6891_v27  ;;  %v1609_v63 = vsel %vm826_vm3, %v1604_v61, 0 }
 0x597   : > { %v1112_v52 = vpack.c.bf16 %v1111_v50, %v1111_v50 }
 0x598   : > { %v1224_v56 = vpack.c.bf16 %v1223_v55, %v1223_v55 }
 0x599   : > { %5539 = vmatmul.mubr.msk.bf16.vlgmr.msra.gmra.mrb[16].mxu0 %vm826_vm3, %v1112_v52  ;;  %v1716_v1 = vpop.permute.xlu0 %1715 }
 0x59a   : > { %5549 = vmatpush3.bf16.msra.mxu0 %v1231_v54  ;;  %5550 = vmatprep.mubr.msk.bf16.mxu0 %vm6376_vm0, %v6375_v0  ;;  %v1721_v3 = vsel %vm826_vm3, %v1716_v1, 0 }
 0x59b   : > { %5562 = vmatprep.subr.bf16.mxu0 %v6375_v0 }
 0x5a1   : > { %5551 = vmatmul.mubr.msk.bf16.vlgmr.msra.gmra.mrb[20].mxu0 %vm826_vm3, %v1224_v56 }
 0x5a2   : > { %5564 = vmatprep.mubr.msk.bf16.mxu0 %vm6376_vm0, %v6375_v0 }
 0x5a3   : > { %5563 = vmatpush3.bf16.xpose.msra.mxu0 %v1383_v57 }
 0x5a4   : > { %5574 = vmatprep.subr.bf16.mxu0 %v6375_v0 }
 0x5aa   : > { %5565 = vmatmul.mubr.msk.bf16.vlgmr.msra.gmra.mrb[24].mxu0 %vm826_vm3, %v1378_v59 }
 0x5ab   : > { %5575 = vmatpush3.bf16.xpose.msra.mxu0 %v1497_v60  ;;  %5576 = vmatprep.mubr.msk.bf16.mxu0 %vm6376_vm0, %v6375_v0 }
 0x5ac   : > { %5586 = vmatprep.subr.bf16.mxu0 %v6375_v0 }
 0x5b2   : > { %5577 = vmatmul.mubr.msk.bf16.vlgmr.msra.gmra.mrb[28].mxu0 %vm826_vm3, %v1490_v62 }
 0x5b3   : > { %5587 = vmatpush3.bf16.xpose.msra.mxu0 %v1609_v63  ;;  %5588 = vmatprep.mubr.msk.bf16.mxu0 %vm6376_vm0, %v6375_v0 }
 0x5b4   : > { %5598 = vmatprep.subr.bf16.mxu0 %v6375_v0 }
 0x5ba   : > { %5589 = vmatmul.mubr.msk.bf16.vlgmr.msra.gmra.mrb[32].mxu0 %vm826_vm3, %v1602_v2 }
 0x5bb   : > { %5599 = vmatpush3.bf16.xpose.msra.mxu0 %v1721_v3  ;;  %5600 = vmatprep.mubr.msk.bf16.mxu0 %vm6376_vm0, %v6375_v0 }
 0x5bc   : > { %5610 = vmatprep.subr.bf16.mxu0 %v6375_v0 }
 0x5c2   : > { %5601 = vmatmul.mubr.msk.bf16.vlgmr.msra.gmra.mrb[36].mxu0 %vm826_vm3, %v1714_v4  ;;  %v5824_v4 = vld [vmem:[#allocation9] sm:$0xff]  }
 0x5c3   : > { %5614 = vmatprep.mubr.msk.bf16.mxu0 %vm6376_vm0, %v6375_v0  ;;  %5555 = vmatpush3.bf16.msra.mxu1 %v5824_v4 }
 0x5c4   : > { %5556 = vmatprep.subr.bf16.mxu1 %v6375_v0 }
 0x637   : > { %v6962_v5 = vpop.f32.mrb[8].mxu0 }
 0x638   : > { %v5516_v6 = vpop.f32.mrb[9].mxu0 }
 0x639   : > { %v934_v7 = vpop.f32.mrb[10].mxu0 }
 0x63a   : > { %v5517_v8 = vpop.f32.mrb[11].mxu0 }
 0x63b   : > { %v5825_v8 = vld [vmem:[#allocation9 + $0x8] sm:$0xff]  }
 0x63c   : > { %5557 = vmatpush3.bf16.msra.mxu1 %v5825_v8 }
 0x63d   : > { %5568 = vmatprep.subr.bf16.mxu1 %v6375_v0 }
 0x63f   : > { %v1043_v9 = vpop.f32.mrb[12].mxu0 }
 0x640   : > { %v5528_v10 = vpop.f32.mrb[13].mxu0 }
 0x641   : > { %v1046_v12 = vpop.f32.mrb[14].mxu0 }
 0x642   : > { %v5529_v13 = vpop.f32.mrb[15].mxu0 }
 0x66c   : > { %v1155_v14 = vpop.f32.mrb[16].mxu0 }
 0x66d   : > { %v5540_v15 = vpop.f32.mrb[17].mxu0 }
 0x66e   : > { %v1158_v16 = vpop.f32.mrb[18].mxu0 }
 0x66f   : > { %v5541_v17 = vpop.f32.mrb[19].mxu0 }
 0x674   : > { %v6964_v18 = vpop.f32.mrb[20].mxu0 }
 0x675   : > { %v5552_v19 = vpop.f32.mrb[21].mxu0 }
 0x676   : > { %v1270_v20 = vpop.f32.mrb[22].mxu0 }
 0x677   : > { %v5553_v22 = vpop.f32.mrb[23].mxu0 }
 0x67d   : > { %v1419_v27 = vpop.f32.mrb[24].mxu0 }
 0x67e   : > { %v1425_v28 = vmul.f32 0.35355338, %v1419_v27  ;;  %v5566_v29 = vpop.f32.mrb[25].mxu0 }
 0x67f   : > { %v1422_v30 = vpop.f32.mrb[26].mxu0 }
 0x680   : > { %v5567_v31 = vpop.f32.mrb[27].mxu0  ;;  %v1427_v32 = vsel %vm1426_vm6, %v1425_v28, -1e+09 }
 0x681   : > { %v1428_v33 = vsel %vm826_vm3, %v1427_v32, -inf }
 0x682   : > { %1429 = vmax.xlane.f32.xlu0 %v1428_v33 }
 0x685   : > { %v1533_v35 = vpop.f32.mrb[28].mxu0 }
 0x686   : > { %v1539_v36 = vmul.f32 0.35355338, %v1533_v35  ;;  %v5578_v37 = vpop.f32.mrb[29].mxu0 }
 0x687   : > { %v1536_v25 = vpop.f32.mrb[30].mxu0 }
 0x688   : > { %v5579_v26 = vpop.f32.mrb[31].mxu0  ;;  %v1540_v38 = vsel %vm1426_vm6, %v1539_v36, -1e+09 }
 0x689   : > { %v1541_v39 = vsel %vm826_vm3, %v1540_v38, -inf }
 0x68a   : > { %1542 = vmax.xlane.f32.xlu1 %v1541_v39 }
 0x68d   : > { %v1645_v40 = vpop.f32.mrb[32].mxu0 }
 0x68e   : > { %v1651_v41 = vmul.f32 0.35355338, %v1645_v40  ;;  %v5590_v42 = vpop.f32.mrb[33].mxu0 }
 0x68f   : > { %v1648_v43 = vpop.f32.mrb[34].mxu0 }
 0x690   : > { %v5591_v44 = vpop.f32.mrb[35].mxu0  ;;  %v1652_v45 = vsel %vm1426_vm6, %v1651_v41, -1e+09 }
 0x691   : > { %v1653_v46 = vsel %vm826_vm3, %v1652_v45, -inf }
 0x692   : > { %1654 = vmax.xlane.f32.xlu0 %v1653_v46 }
 0x695   : > { %v1757_v47 = vpop.f32.mrb[36].mxu0 }
 0x696   : > { %v1763_v48 = vmul.f32 0.35355338, %v1757_v47  ;;  %v5602_v49 = vpop.f32.mrb[37].mxu0 }
 0x697   : > { %v1760_v50 = vpop.f32.mrb[38].mxu0 }
 0x698   : > { %v5603_v51 = vpop.f32.mrb[39].mxu0  ;;  %v1764_v52 = vsel %vm1426_vm6, %v1763_v48, -1e+09 }
 0x699   : > { %v1765_v53 = vsel %vm826_vm3, %v1764_v52, -inf }
 0x69a   : > { %1766 = vmax.xlane.f32.xlu0 %v1765_v53 }
 0x69b   : > { %1274 = vrot.lane.b32.xlu1 %v1043_v9, %s6391_s19 }
 0x6b0   : > { %1278 = vrot.lane.b32.xlu0 %v1155_v14, %s6390_s11 }
 0x70f   : > { %v1430_v54 = vpop.xlane.xlu0 %1429 }
 0x710   : > { %v1431_v55 = vsub.f32 %v1427_v32, %v1430_v54 }
 0x712   : > { %v1432_v56 = vmul.f32 1.442695, %v1431_v55 }
 0x714   : > { %6002 = vpow2.f32 %v1432_v56 }
 0x717   : > { %v1543_v57 = vpop.xlane.xlu1 %1542 }
 0x718   : > { %v1544_v58 = vsub.f32 %v1540_v38, %v1543_v57 }
 0x71a   : > { %v1545_v59 = vmul.f32 1.442695, %v1544_v58 }
 0x71b   : > { %v1275_v15 = vpop.permute.xlu1 %1274 }
 0x71c   : > { %6004 = vpow2.f32 %v1545_v59 }
 0x71e   : > { %v6003_v60 = vpop.eup %6002 }
 0x71f   : > { %v1655_v61 = vpop.xlane.xlu0 %1654  ;;  %v1434_v62 = vsel %vm826_vm3, %v6003_v60, 0.0 }
 0x720   : > { %v1656_v63 = vsub.f32 %v1652_v45, %v1655_v61  ;;  %1435 = vadd.xlane.f32.xlu1 %v1434_v62 }
 0x722   : > { %v1657_v1 = vmul.f32 1.442695, %v1656_v63 }
 0x724   : > { %6006 = vpow2.f32 %v1657_v1 }
 0x726   : > { %v6005_v2 = vpop.eup %6004 }
 0x727   : > { %v1547_v3 = vsel %vm826_vm3, %v6005_v2, 0.0  ;;  %v1767_v9 = vpop.xlane.xlu0 %1766 }
 0x728   : > { %1548 = vadd.xlane.f32.xlu0 %v1547_v3  ;;  %v1768_v10 = vsub.f32 %v1764_v52, %v1767_v9 }
 0x72a   : > { %v1769_v12 = vmul.f32 1.442695, %v1768_v10 }
 0x72b   : > { %v1279_v17 = vpop.permute.xlu0 %1278 }
 0x72c   : > { %6008 = vpow2.f32 %v1769_v12 }
 0x72e   : > { %v6979_v6 = vpop.eup %6006 }
 0x72f   : > { %v1659_v7 = vsel %vm826_vm3, %v6979_v6, 0.0 }
 0x730   : > { %1660 = vadd.xlane.f32.xlu0 %v1659_v7 }
 0x731   : > { %1282 = vrot.lane.b32.xlu1 %v6964_v18, %s6389_s29  ;;  %v1285_v18 = vsel %vm826_vm3, %v6962_v5, %v1275_v15 }
 0x732   : > { %v1287_v19 = vsel %vm1286_vm7, %v1285_v18, %v1279_v17  ;;  %v5271_v18 = vld [vmem:[%s6797_s13 + $0x10] sm:$0xff] }
 0x733   : > { %vm1978_vm9 = vcmp.gt.f32.partialorder %v5271_v18, 0.0 }
 0x736   : > { %v6993_v13 = vpop.eup %6008 }
 0x737   : > { %v1771_v14 = vsel %vm826_vm3, %v6993_v13, 0.0 }
 0x746   : > { %1441 = vrot.lane.b32.xlu0 %v6912_v34, %s6379_s28 }
 0x74a   : > { %1553 = vrot.lane.b32.xlu0 %v6912_v34, %s6381_s17  ;;  %s7554_s17 = sld [smem:[#allocation29_spill]] }
 0x74e   : > { %1665 = vrot.lane.b32.xlu0 %v6912_v34, %s6380_s2 }
 0x752   : > { %1777 = vrot.lane.b32.xlu0 %v6912_v34, %s6382_s20 }
 0x755   : > { %1772 = vadd.xlane.f32.xlu1 %v1771_v14 }
 0x756   : > { %1929 = vrot.lane.b32.xlu0 %v6912_v34, %s6388_s30  ;;  %s5677_s30 = smul.u32 104, %s7561_s14 }
 0x75a   : > { %1927 = vrot.lane.b32.xlu0 %v6912_v34, %s6386_s3 }
 0x75e   : > { %2040 = vrot.lane.b32.xlu0 %v6912_v34, %s6389_s29 }
 0x762   : > { %2038 = vrot.lane.b32.xlu0 %v6912_v34, %s6385_s18 }
 0x766   : > { %2151 = vrot.lane.b32.xlu0 %v6912_v34, %s6387_s21  ;;  %2153 = vrot.lane.b32.xlu1 %v6912_v34, %s6390_s11 }
 0x76a   : > { %2265 = vrot.lane.b32.xlu0 %v6912_v34, %s6391_s19 }
 0x76e   : > { %2263 = vrot.lane.b32.xlu0 %v6912_v34, %s6392_s15 }
 0x7ad   : > { %v1436_v16 = vpop.xlane.xlu1 %1435 }
 0x7ae   : > { %6010 = vrcp.f32 %v1436_v16 }
 0x7b1   : > { %v1283_v20 = vpop.permute.xlu1 %1282 }
 0x7b2   : > { %v1289_v22 = vsel %vm1288_vm8, %v1287_v19, %v1283_v20 }
 0x7b3   : > { %v1290_v23 = vpack.c.bf16 %v1289_v22, %v1289_v22 }
 0x7b5   : > { %5559 = vmatmul.mubr.msk.bf16.vlgmr.msra.gmra.mrb[20].mxu1 %vm645_vm1, %v1290_v23  ;;  %v1549_v34 = vpop.xlane.xlu0 %1548 }
 0x7b6   : > { %5570 = vmatprep.mubr.msk.bf16.mxu1 %vm6376_vm0, %v6375_v0  ;;  %6012 = vrcp.f32 %v1549_v34 }
 0x7b8   : > { %v6011_v27 = vpop.eup %6010 }
 0x7b9   : > { %v1438_v29 = vmul.f32 %v6011_v27, %v6003_v60 }
 0x7bb   : > { %v1439_v31 = vpack.c.bf16 %v1438_v29, %v1438_v29 }
 0x7bd   : > { %v1661_v28 = vpop.xlane.xlu0 %1660 }
 0x7be   : > { %6014 = vrcp.f32 %v1661_v28 }
 0x7c0   : > { %v6013_v32 = vpop.eup %6012 }
 0x7c1   : > { %v1442_v30 = vpop.permute.xlu0 %1441  ;;  %v1551_v36 = vmul.f32 %v6013_v32, %v6005_v2 }
 0x7c2   : > { %v1447_v5 = vsel %vm893_vm5, %v1442_v30, 0 }
 0x7c3   : > { %5569 = vmatpush3.bf16.msra.mxu1 %v1447_v5  ;;  %v1552_v25 = vpack.c.bf16 %v1551_v36, %v1551_v36 }
 0x7c4   : > { %5580 = vmatprep.subr.bf16.mxu1 %v6375_v0 }
 0x7c5   : > { %v1554_v33 = vpop.permute.xlu0 %1553 }
 0x7c6   : > { %v1559_v35 = vsel %vm893_vm5, %v1554_v33, 0  ;;  %5571 = vmatmul.mubr.msk.bf16.vlgmr.msra.gmra.mrb[24].mxu1 %vm826_vm3, %v1439_v31 }
 0x7c7   : > { %5581 = vmatpush3.bf16.msra.mxu1 %v1559_v35  ;;  %5582 = vmatprep.mubr.msk.bf16.mxu1 %vm6376_vm0, %v6375_v0 }
 0x7c8   : > { %5592 = vmatprep.subr.bf16.mxu1 %v6375_v0  ;;  %v6015_v26 = vpop.eup %6014 }
 0x7c9   : > { %v1666_v37 = vpop.permute.xlu0 %1665  ;;  %v1663_v39 = vmul.f32 %v6015_v26, %v6979_v6 }
 0x7ca   : > { %v1671_v38 = vsel %vm893_vm5, %v1666_v37, 0 }
 0x7cb   : > { %v1664_v41 = vpack.c.bf16 %v1663_v39, %v1663_v39 }
 0x7cd   : > { %v1778_v40 = vpop.permute.xlu0 %1777 }
 0x7ce   : > { %5583 = vmatmul.mubr.msk.bf16.vlgmr.msra.gmra.mrb[28].mxu1 %vm826_vm3, %v1552_v25  ;;  %v1783_v42 = vsel %vm893_vm5, %v1778_v40, 0 }
 0x7cf   : > { %5593 = vmatpush3.bf16.msra.mxu1 %v1671_v38  ;;  %5594 = vmatprep.mubr.msk.bf16.mxu1 %vm6376_vm0, %v6375_v0 }
 0x7d0   : > { %5604 = vmatprep.subr.bf16.mxu1 %v6375_v0 }
 0x7d1   : > { %v1930_v44 = vpop.permute.xlu0 %1929 }
 0x7d2   : > { %v1935_v49 = vsel %vm826_vm3, %v1930_v44, 0 }
 0x7d5   : > { %v1928_v47 = vpop.permute.xlu0 %1927 }
 0x7d6   : > { %5595 = vmatmul.mubr.msk.bf16.vlgmr.msra.gmra.mrb[32].mxu1 %vm826_vm3, %v1664_v41 }
 0x7d7   : > { %5605 = vmatpush3.bf16.msra.mxu1 %v1783_v42  ;;  %5606 = vmatprep.mubr.msk.bf16.mxu1 %vm6376_vm0, %v6375_v0 }
 0x7d8   : > { %5618 = vmatprep.subr.bf16.mxu1 %v6375_v0 }
 0x7d9   : > { %v2041_v50 = vpop.permute.xlu0 %2040 }
 0x7da   : > { %v2046_v51 = vsel %vm826_vm3, %v2041_v50, 0 }
 0x7dd   : > { %v2039_v52 = vpop.permute.xlu0 %2038 }
 0x7e1   : > { %v2152_v54 = vpop.permute.xlu0 %2151 }
 0x7e2   : > { %v1773_v43 = vpop.xlane.xlu1 %1772 }
 0x7e3   : > { %6016 = vrcp.f32 %v1773_v43 }
 0x7e5   : > { %v2266_v56 = vpop.permute.xlu0 %2265 }
 0x7e6   : > { %v2154_v53 = vpop.permute.xlu1 %2153  ;;  %v2271_v57 = vsel %vm826_vm3, %v2266_v56, 0 }
 0x7e7   : > { %v2159_v55 = vsel %vm826_vm3, %v2154_v53, 0 }
 0x7e9   : > { %v2264_v58 = vpop.permute.xlu0 %2263 }
 0x7ed   : > { %v6017_v45 = vpop.eup %6016 }
 0x7ee   : > { %v1775_v46 = vmul.f32 %v6017_v45, %v6993_v13 }
 0x7f0   : > { %v1776_v48 = vpack.c.bf16 %v1775_v46, %v1775_v46 }
 0x7f2   : > { %5607 = vmatmul.mubr.msk.bf16.vlgmr.msra.gmra.mrb[36].mxu1 %vm826_vm3, %v1776_v48  ;;  %v5826_v48 = vld [vmem:[#allocation9 + $0x10] sm:$0xff]  }
 0x7f3   : > { %5619 = vmatpush3.bf16.xpose.msra.mxu1 %v1935_v49  ;;  %5620 = vmatprep.mubr.msk.bf16.mxu1 %vm6376_vm0, %v6375_v0 }
 0x7f4   : > { %5630 = vmatprep.subr.bf16.mxu1 %v6375_v0  ;;  %5611 = vmatpush3.bf16.msra.mxu0 %v5826_v48 }
 0x7f5   : > { %5612 = vmatprep.subr.bf16.mxu0 %v6375_v0 }
 0x7fa   : > { %5621 = vmatmul.mubr.msk.bf16.vlgmr.msra.gmra.mrb[40].mxu1 %vm826_vm3, %v1928_v47 }
 0x7fb   : > { %5631 = vmatpush3.bf16.xpose.msra.mxu1 %v2046_v51  ;;  %5632 = vmatprep.mubr.msk.bf16.mxu1 %vm6376_vm0, %v6375_v0 }
 0x7fc   : > { %5642 = vmatprep.subr.bf16.mxu1 %v6375_v0 }
 0x802   : > { %5633 = vmatmul.mubr.msk.bf16.vlgmr.msra.gmra.mrb[44].mxu1 %vm826_vm3, %v2039_v52 }
 0x803   : > { %5643 = vmatpush3.bf16.xpose.msra.mxu1 %v2159_v55  ;;  %5644 = vmatprep.mubr.msk.bf16.mxu1 %vm6376_vm0, %v6375_v0 }
 0x804   : > { %5654 = vmatprep.subr.bf16.mxu1 %v6375_v0 }
 0x80a   : > { %5645 = vmatmul.mubr.msk.bf16.vlgmr.msra.gmra.mrb[48].mxu1 %vm826_vm3, %v2152_v54 }
 0x80b   : > { %5655 = vmatpush3.bf16.xpose.msra.mxu1 %v2271_v57  ;;  %5656 = vmatprep.mubr.msk.bf16.mxu1 %vm6376_vm0, %v6375_v0 }
 0x80c   : > { %5666 = vmatprep.subr.bf16.mxu1 %v6375_v0 }
 0x812   : > { %5657 = vmatmul.mubr.msk.bf16.vlgmr.msra.gmra.mrb[52].mxu1 %vm826_vm3, %v2264_v58 }
 0x813   : > { %5670 = vmatprep.mubr.msk.bf16.mxu1 %vm6376_vm0, %v6375_v0 }
 0x888   : > { %v7064_v59 = vpop.f32.mrb[20].mxu1 }
 0x889   : > { %v5560_v60 = vpop.f32.mrb[21].mxu1 }
 0x88a   : > { %v1347_v61 = vpop.f32.mrb[22].mxu1 }
 0x88b   : > { %v5561_v62 = vpop.f32.mrb[23].mxu1 }
 0x899   : > { %v7066_v63 = vpop.f32.mrb[24].mxu1 }
 0x89a   : > { %v5572_v1 = vpop.f32.mrb[25].mxu1 }
 0x89b   : > { %v1486_v2 = vpop.f32.mrb[26].mxu1 }
 0x89c   : > { %v5573_v3 = vpop.f32.mrb[27].mxu1 }
 0x89d   : > { %v5827_v3 = vld [vmem:[#allocation9 + $0x18] sm:$0xff]  }
 0x89e   : > { %5613 = vmatpush3.bf16.msra.mxu0 %v5827_v3 }
 0x89f   : > { %5624 = vmatprep.subr.bf16.mxu0 %v6375_v0 }
 0x8a1   : > { %v1595_v4 = vpop.f32.mrb[28].mxu1 }
 0x8a2   : > { %v5584_v6 = vpop.f32.mrb[29].mxu1 }
 0x8a3   : > { %v1598_v7 = vpop.f32.mrb[30].mxu1 }
 0x8a4   : > { %v5585_v8 = vpop.f32.mrb[31].mxu1 }
 0x8a5   : > { %v1926_v8 = vpack.c.bf16 %v6837_v24, %v6837_v24 }
 0x8a9   : > { %v1707_v9 = vpop.f32.mrb[32].mxu1 }
 0x8aa   : > { %v5596_v10 = vpop.f32.mrb[33].mxu1 }
 0x8ab   : > { %v1710_v12 = vpop.f32.mrb[34].mxu1 }
 0x8ac   : > { %v5597_v13 = vpop.f32.mrb[35].mxu1 }
 0x8c5   : > { %v7068_v14 = vpop.f32.mrb[36].mxu1 }
 0x8c6   : > { %v5608_v15 = vpop.f32.mrb[37].mxu1 }
 0x8c7   : > { %v1822_v16 = vpop.f32.mrb[38].mxu1 }
 0x8c8   : > { %v5609_v17 = vpop.f32.mrb[39].mxu1 }
 0x8cd   : > { %v1971_v19 = vpop.f32.mrb[40].mxu1 }
 0x8ce   : > { %v1977_v20 = vmul.f32 0.35355338, %v1971_v19  ;;  %v5622_v22 = vpop.f32.mrb[41].mxu1  ;;  %v1996_v19 = vsel %vm893_vm5, %v1926_v8, 0 }
 0x8cf   : > { %v1974_v23 = vpop.f32.mrb[42].mxu1 }
 0x8d0   : > { %v5623_v34 = vpop.f32.mrb[43].mxu1  ;;  %v1979_v27 = vsel %vm1978_vm9, %v1977_v20, -1e+09 }
 0x8d1   : > { %v1980_v28 = vsel %vm826_vm3, %v1979_v27, -inf }
 0x8d2   : > { %1981 = vmax.xlane.f32.xlu0 %v1980_v28 }
 0x8d5   : > { %v2082_v29 = vpop.f32.mrb[44].mxu1 }
 0x8d6   : > { %v2088_v30 = vmul.f32 0.35355338, %v2082_v29  ;;  %v5634_v5 = vpop.f32.mrb[45].mxu1 }
 0x8d7   : > { %v2085_v31 = vpop.f32.mrb[46].mxu1 }
 0x8d8   : > { %v5635_v32 = vpop.f32.mrb[47].mxu1  ;;  %v2089_v33 = vsel %vm1978_vm9, %v2088_v30, -1e+09 }
 0x8d9   : > { %v2090_v35 = vsel %vm826_vm3, %v2089_v33, -inf }
 0x8da   : > { %2091 = vmax.xlane.f32.xlu1 %v2090_v35 }
 0x8dd   : > { %v2195_v36 = vpop.f32.mrb[48].mxu1 }
 0x8de   : > { %v2201_v37 = vmul.f32 0.35355338, %v2195_v36  ;;  %v5646_v25 = vpop.f32.mrb[49].mxu1 }
 0x8df   : > { %v2198_v26 = vpop.f32.mrb[50].mxu1 }
 0x8e0   : > { %v5647_v38 = vpop.f32.mrb[51].mxu1  ;;  %v2202_v39 = vsel %vm1978_vm9, %v2201_v37, -1e+09 }
 0x8e1   : > { %v2203_v40 = vsel %vm826_vm3, %v2202_v39, -inf }
 0x8e2   : > { %2204 = vmax.xlane.f32.xlu0 %v2203_v40 }
 0x8e5   : > { %v2307_v41 = vpop.f32.mrb[52].mxu1 }
 0x8e6   : > { %v2313_v42 = vmul.f32 0.35355338, %v2307_v41  ;;  %v5658_v43 = vpop.f32.mrb[53].mxu1 }
 0x8e7   : > { %v2310_v44 = vpop.f32.mrb[54].mxu1 }
 0x8e8   : > { %v5659_v45 = vpop.f32.mrb[55].mxu1  ;;  %v2314_v46 = vsel %vm1978_vm9, %v2313_v42, -1e+09 }
 0x8e9   : > { %v2315_v47 = vsel %vm826_vm3, %v2314_v46, -inf }
 0x8ea   : > { %2316 = vmax.xlane.f32.xlu0 %v2315_v47 }
 0x8eb   : > { %1826 = vrot.lane.b32.xlu1 %v1595_v4, %s6391_s19 }
 0x900   : > { %1830 = vrot.lane.b32.xlu0 %v1707_v9, %s6390_s11 }
 0x95f   : > { %v1982_v49 = vpop.xlane.xlu0 %1981 }
 0x960   : > { %v1983_v50 = vsub.f32 %v1979_v27, %v1982_v49 }
 0x962   : > { %v1984_v51 = vmul.f32 1.442695, %v1983_v50 }
 0x964   : > { %6018 = vpow2.f32 %v1984_v51 }
 0x967   : > { %v2092_v52 = vpop.xlane.xlu1 %2091 }
 0x968   : > { %v2093_v53 = vsub.f32 %v2089_v33, %v2092_v52 }
 0x96a   : > { %v2094_v54 = vmul.f32 1.442695, %v2093_v53 }
 0x96b   : > { %v1827_v12 = vpop.permute.xlu1 %1826 }
 0x96c   : > { %6020 = vpow2.f32 %v2094_v54  ;;  %v1837_v15 = vsel %vm826_vm3, %v7066_v63, %v1827_v12 }
 0x96e   : > { %v6019_v55 = vpop.eup %6018 }
 0x96f   : > { %v2205_v56 = vpop.xlane.xlu0 %2204  ;;  %v1986_v57 = vsel %vm826_vm3, %v6019_v55, 0.0 }
 0x970   : > { %v2206_v58 = vsub.f32 %v2202_v39, %v2205_v56  ;;  %1987 = vadd.xlane.f32.xlu1 %v1986_v57 }
 0x972   : > { %v2207_v60 = vmul.f32 1.442695, %v2206_v58 }
 0x974   : > { %6022 = vpow2.f32 %v2207_v60 }
 0x976   : > { %v6021_v61 = vpop.eup %6020 }
 0x977   : > { %v2096_v62 = vsel %vm826_vm3, %v6021_v61, 0.0  ;;  %v2317_v4 = vpop.xlane.xlu0 %2316 }
 0x978   : > { %2097 = vadd.xlane.f32.xlu0 %v2096_v62  ;;  %v2318_v6 = vsub.f32 %v2314_v46, %v2317_v4  ;;  %v1345_v4 = vadd.f32 %v7064_v59, %v6827_v21 }
 0x97a   : > { %v2319_v7 = vmul.f32 1.442695, %v2318_v6  ;;  %v1350_v6 = vsel %vm645_vm1, %v1345_v4, 0.0 }
 0x97c   : > { %6024 = vpow2.f32 %v2319_v7 }
 0x97e   : > { %v6023_v1 = vpop.eup %6022 }
 0x97f   : > { %v2209_v2 = vsel %vm826_vm3, %v6023_v1, 0.0 }
 0x980   : > { %2210 = vadd.xlane.f32.xlu0 %v2209_v2 }
 0x981   : > { %1834 = vrot.lane.b32.xlu1 %v7068_v14, %s6389_s29  ;;  %v1831_v14 = vpop.permute.xlu0 %1830 }
 0x982   : > { %v1838_v24 = vsel %vm1286_vm7, %v1837_v15, %v1831_v14 }
 0x986   : > { %v6025_v9 = vpop.eup %6024 }
 0x987   : > { %v2321_v10 = vsel %vm826_vm3, %v6025_v9, 0.0 }
 0x996   : > { %2103 = vrot.lane.b32.xlu0 %v1926_v8, %s6378_s4  ;;  %s7553_s4 = sld [smem:[#allocation28_spill]] }
 0x99a   : > { %2215 = vrot.lane.b32.xlu0 %v1926_v8, %s6383_s25 }
 0x99e   : > { %2327 = vrot.lane.b32.xlu0 %v1926_v8, %s6384_s0 }
 0x9a5   : > { %2322 = vadd.xlane.f32.xlu1 %v2321_v10 }
 0x9fd   : > { %v1988_v13 = vpop.xlane.xlu1 %1987 }
 0x9fe   : > { %6026 = vrcp.f32 %v1988_v13 }
 0xa01   : > { %v1835_v16 = vpop.permute.xlu1 %1834 }
 0xa02   : > { %v1839_v17 = vsel %vm1288_vm8, %v1838_v24, %v1835_v16 }
 0xa03   : > { %v1840_v18 = vpack.c.bf16 %v1839_v17, %v1839_v17 }
 0xa05   : > { %5615 = vmatmul.mubr.msk.bf16.vlgmr.msra.gmra.mrb[40].mxu0 %vm645_vm1, %v1840_v18  ;;  %v2098_v20 = vpop.xlane.xlu0 %2097 }
 0xa06   : > { %5625 = vmatpush3.bf16.msra.mxu0 %v1996_v19  ;;  %6028 = vrcp.f32 %v2098_v20  ;;  %5626 = vmatprep.mubr.msk.bf16.mxu0 %vm6376_vm0, %v6375_v0 }
 0xa07   : > { %5636 = vmatprep.subr.bf16.mxu0 %v6375_v0 }
 0xa08   : > { %v6027_v22 = vpop.eup %6026 }
 0xa09   : > { %v1990_v63 = vmul.f32 %v6027_v22, %v6019_v55  ;;  %v5828_v55 = vld [vmem:[#allocation9 + $0x20] sm:$0xff]  }
 0xa0a   : > { %5667 = vmatpush3.bf16.msra.mxu1 %v5828_v55 }
 0xa0b   : > { %v1991_v23 = vpack.c.bf16 %v1990_v63, %v1990_v63  ;;  %5668 = vmatprep.subr.bf16.mxu1 %v6375_v0 }
 0xa0d   : > { %5627 = vmatmul.mubr.msk.bf16.vlgmr.msra.gmra.mrb[44].mxu0 %vm826_vm3, %v1991_v23  ;;  %v2211_v34 = vpop.xlane.xlu0 %2210 }
 0xa0e   : > { %6030 = vrcp.f32 %v2211_v34  ;;  %5638 = vmatprep.mubr.msk.bf16.mxu0 %vm6376_vm0, %v6375_v0 }
 0xa10   : > { %v6029_v27 = vpop.eup %6028 }
 0xa11   : > { %v2100_v28 = vmul.f32 %v6029_v27, %v6021_v61  ;;  %v2104_v29 = vpop.permute.xlu0 %2103  ;;  %v5829_v61 = vld [vmem:[#allocation9 + $0x28] sm:$0xff]  }
 0xa12   : > { %v2109_v30 = vsel %vm893_vm5, %v2104_v29, 0  ;;  %5669 = vmatpush3.bf16.msra.mxu1 %v5829_v61 }
 0xa13   : > { %5637 = vmatpush3.bf16.msra.mxu0 %v2109_v30  ;;  %v2101_v5 = vpack.c.bf16 %v2100_v28, %v2100_v28 }
 0xa14   : > { %5648 = vmatprep.subr.bf16.mxu0 %v6375_v0 }
 0xa15   : > { %v2216_v31 = vpop.permute.xlu0 %2215 }
 0xa16   : > { %v2221_v32 = vsel %vm893_vm5, %v2216_v31, 0  ;;  %5639 = vmatmul.mubr.msk.bf16.vlgmr.msra.gmra.mrb[48].mxu0 %vm826_vm3, %v2101_v5 }
 0xa17   : > { %5649 = vmatpush3.bf16.msra.mxu0 %v2221_v32  ;;  %5650 = vmatprep.mubr.msk.bf16.mxu0 %vm6376_vm0, %v6375_v0 }
 0xa18   : > { %v6031_v33 = vpop.eup %6030  ;;  %5660 = vmatprep.subr.bf16.mxu0 %v6375_v0 }
 0xa19   : > { %v2213_v35 = vmul.f32 %v6031_v33, %v6023_v1  ;;  %v2328_v36 = vpop.permute.xlu0 %2327  ;;  %v5832_v33 = vld [vmem:[#allocation12 + $0x4] ss:$104 sps:$4 sm:$0xff]  }
 0xa1a   : > { %v2333_v25 = vsel %vm893_vm5, %v2328_v36, 0  ;;  %v5830_v36 = vld [vmem:[#allocation12] ss:$104 sps:$4 sm:$0xff]  }
 0xa1b   : > { %v2214_v37 = vpack.c.bf16 %v2213_v35, %v2213_v35  ;;  %v5835_v35 = vld [vmem:[#allocation12 + $0xc] ss:$104 sps:$4 sm:$0xff]  }
 0xa1c   : > { %2971 = vmatprep.subr.bf16.mxu1 %v5835_v35  ;;  %v5869_v35 = vld [vmem:[#allocation12 + $0x38] ss:$104 sps:$4 sm:$0xff]  }
 0xa1e   : > { %5651 = vmatmul.mubr.msk.bf16.vlgmr.msra.gmra.mrb[52].mxu0 %vm826_vm3, %v2214_v37  ;;  %v5833_v37 = vld [vmem:[#allocation12 + $0x8] ss:$104 sps:$4 sm:$0xff]  }
 0xa1f   : > { %5661 = vmatpush3.bf16.msra.mxu0 %v2333_v25  ;;  %5662 = vmatprep.mubr.msk.bf16.mxu0 %vm6376_vm0, %v6375_v0  ;;  %v5838_v25 = vld [vmem:[#allocation12 + $0xd4] ss:$104 sps:$4 sm:$0xff]  }
 0xa20   : > { %2930 = vmatprep.subr.bf16.mxu0 %v5832_v33  ;;  %v5866_v33 = vld [vmem:[#allocation12 + $0x30] ss:$104 sps:$4 sm:$0xff]  }
 0xa32   : > { %v2323_v26 = vpop.xlane.xlu1 %2322 }
 0xa33   : > { %6032 = vrcp.f32 %v2323_v26  ;;  %v5841_v26 = vld [vmem:[#allocation12 + $0xdc] ss:$104 sps:$4 sm:$0xff]  }
 0xa3d   : > { %v6033_v38 = vpop.eup %6032 }
 0xa3e   : > { %v2325_v39 = vmul.f32 %v6033_v38, %v6025_v9  ;;  %v5836_v38 = vld [vmem:[#allocation12 + $0xd0] ss:$104 sps:$4 sm:$0xff]  }
 0xa40   : > { %v2326_v40 = vpack.c.bf16 %v2325_v39, %v2325_v39  ;;  %v5839_v39 = vld [vmem:[#allocation12 + $0xd8] ss:$104 sps:$4 sm:$0xff]  }
 0xa42   : > { %5663 = vmatmul.mubr.msk.bf16.vlgmr.msra.gmra.mrb[56].mxu0 %vm826_vm3, %v2326_v40  ;;  %v5844_v40 = vld [vmem:[#allocation12 + $0x14] ss:$104 sps:$4 sm:$0xff]  }
 0xa43   : > { %2962 = vmatprep.mubr.bf16.mxu0 %v6377_v11  ;;  %2931 = vmatpush1.bf16.msra.mxu0 %v5830_v36  ;;  %v5874_v36 = vld [vmem:[#allocation12 + $0x104] ss:$104 sps:$4 sm:$0xff]  }
 0xa44   : > { %2932 = vmatprep.subr.bf16.mxu0 %v5838_v25  ;;  %v5872_v25 = vld [vmem:[#allocation12 + $0x100] ss:$104 sps:$4 sm:$0xff]  }
 0xa47   : > { %2933 = vmatpush1.bf16.msra.mxu0 %v5836_v38  ;;  %v5880_v38 = vld [vmem:[#allocation12 + $0x44] ss:$104 sps:$4 sm:$0xff]  }
 0xa48   : > { %3012 = vmatprep.subr.bf16.mxu0 %v5844_v40  ;;  %v5878_v40 = vld [vmem:[#allocation12 + $0x40] ss:$104 sps:$4 sm:$0xff]  }
 0xad8   : > { %v1895_v41 = vpop.f32.mrb[40].mxu0 }
 0xad9   : > { %v1896_v42 = vadd.f32 %v1895_v41, %v6827_v21  ;;  %v5616_v43 = vpop.f32.mrb[41].mxu0  ;;  %v5847_v41 = vld [vmem:[#allocation12 + $0x1c] ss:$104 sps:$4 sm:$0xff]  }
 0xada   : > { %v1898_v44 = vpop.f32.mrb[42].mxu0 }
 0xadb   : > { %v5617_v45 = vpop.f32.mrb[43].mxu0  ;;  %v1901_v46 = vsel %vm645_vm1, %v1896_v42, 0.0 }
 0xadc   : > { %1902 = vadd.xlane.f32.xlu1 %v1901_v46 }
 0xae0   : > { %v2032_v47 = vpop.f32.mrb[44].mxu0 }
 0xae1   : > { %v5628_v48 = vpop.f32.mrb[45].mxu0 }
 0xae2   : > { %v2035_v49 = vpop.f32.mrb[46].mxu0  ;;  %v1364_v48 = vlaneseq }
 0xae3   : > { %v5629_v50 = vpop.f32.mrb[47].mxu0 }
 0xae9   : > { %v2145_v51 = vpop.f32.mrb[48].mxu0 }
 0xaea   : > { %2376 = vrot.lane.b32.xlu0 %v2145_v51, %s6391_s19  ;;  %v5640_v52 = vpop.f32.mrb[49].mxu0  ;;  %v7142_v51 = vshrl.u32 %v1364_v48, 7  ;;  %v5890_v48 = vld [vmem:[#allocation12 + $0x50] ss:$104 sps:$4 sm:$0xff]   ;;  %s7555_s19 = sld [smem:[#allocation30_spill]] }
 0xaeb   : > { %v2148_v53 = vpop.f32.mrb[50].mxu0 }
 0xaec   : > { %v5641_v54 = vpop.f32.mrb[51].mxu0  ;;  %v7145_v53 = vsub.s32 1, %v7142_v51  ;;  %v7148_v55 = vsub.s32 0, %v7142_v51 }
 0xaf0   : > { %s7460_s15 = scalar_lea.vmem %s7555_s19, %s5677_s30 }
 0xaf1   : > { %v2257_v56 = vpop.f32.mrb[52].mxu0 }
 0xaf2   : > { %2380 = vrot.lane.b32.xlu0 %v2257_v56, %s6390_s11  ;;  %v5652_v57 = vpop.f32.mrb[53].mxu0 }
 0xaf3   : > { %v2260_v58 = vpop.f32.mrb[54].mxu0  ;;  %v819_v57 = vld [vmem:[%s7552_s23] sm:$0x7] }
 0xaf4   : > { %v5653_v60 = vpop.f32.mrb[55].mxu0  ;;  %v1917_v58 = vrot.slane %v819_v57, %v7145_v53  ;;  %v1367_v61 = vrot.slane %v819_v57, %v7148_v55 }
 0xb15   : > { %v2369_v62 = vpop.f32.mrb[56].mxu0 }
 0xb16   : > { %2384 = vrot.lane.b32.xlu0 %v2369_v62, %s6389_s29  ;;  %v5664_v1 = vpop.f32.mrb[57].mxu0 }
 0xb17   : > { %v2372_v2 = vpop.f32.mrb[58].mxu0  ;;  %v7157_v1 = vsub.s32 2, %v7142_v51 }
 0xb18   : > { %v5665_v3 = vpop.f32.mrb[59].mxu0  ;;  %v820_v2 = vld [vmem:[%s7553_s4] sm:$0x7] }
 0xb19   : > { %v1922_v3 = vrot.slane %v820_v2, %v7145_v53 }
 0xb35   : > { %1351 = vadd.xlane.f32.xlu0 %v1350_v6  ;;  %v1372_v6 = vrot.slane %v820_v2, %v7148_v55 }
 0xb5c   : > { %v2377_v0 = vpop.permute.xlu0 %2376 }
 0xb5d   : > { %v2387_v8 = vsel %vm826_vm3, %v2032_v47, %v2377_v0 }
 0xb64   : > { %v2381_v7 = vpop.permute.xlu0 %2380 }
 0xb65   : > { %v2388_v9 = vsel %vm1286_vm7, %v2387_v8, %v2381_v7  ;;  %v2467_v7 = vrot.slane %v819_v57, %v7157_v1  ;;  %v5904_v57 = vld [vmem:[#allocation12 + $0x64] ss:$104 sps:$4 sm:$0xff]  }
 0xb69   : > { %v1903_v59 = vpop.xlane.xlu1 %1902 }
 0xb6a   : > { %v1904_v24 = vmul.f32 0.03125, %v1903_v59 }
 0xb6c   : > { %v1905_v22 = vsub.f32 %v1896_v42, %v1904_v24 }
 0xb6e   : > { %v1906_v28 = vmul.f32 %v1905_v22, %v1905_v22 }
 0xb70   : > { %v1907_v29 = vsel %vm645_vm1, %v1906_v28, 0.0  ;;  %v5857_v28 = vld [vmem:[#allocation12 + $0x28] ss:$104 sps:$4 sm:$0xff]  }
 0xb88   : > { %v2385_v10 = vpop.permute.xlu0 %2384 }
 0xb89   : > { %v2389_v12 = vsel %vm1288_vm8, %v2388_v9, %v2385_v10  ;;  %v2472_v10 = vrot.slane %v820_v2, %v7157_v1  ;;  %v5913_v2 = vld [vmem:[#allocation13 + $0xd4] ss:$104 sps:$4 sm:$0xff]  }
 0xb8a   : > { %v2390_v13 = vpack.c.bf16 %v2389_v12, %v2389_v12 }
 0xb8c   : > { %5671 = vmatmul.mubr.msk.bf16.vlgmr.msra.gmra.mrb[56].mxu1 %vm645_vm1, %v2390_v13 }
 0xb8d   : > { %3003 = vmatprep.mubr.bf16.mxu1 %v6377_v11  ;;  %2972 = vmatpush1.bf16.msra.mxu1 %v5833_v37  ;;  %v5877_v37 = vld [vmem:[#allocation12 + $0x10c] ss:$104 sps:$4 sm:$0xff]  }
 0xb8e   : > { %2973 = vmatprep.subr.bf16.mxu1 %v5841_v26  ;;  %v5875_v26 = vld [vmem:[#allocation12 + $0x108] ss:$104 sps:$4 sm:$0xff]  }
 0xb91   : > { %2974 = vmatpush1.bf16.msra.mxu1 %v5839_v39  ;;  %v5883_v39 = vld [vmem:[#allocation12 + $0x4c] ss:$104 sps:$4 sm:$0xff]  }
 0xb92   : > { %3053 = vmatprep.subr.bf16.mxu1 %v5847_v41  ;;  %v5881_v41 = vld [vmem:[#allocation12 + $0x48] ss:$104 sps:$4 sm:$0xff]  }
 0xbc2   : > { %v1352_v14 = vpop.xlane.xlu0 %1351 }
 0xbc3   : > { %v1354_v15 = vmul.f32 0.03125, %v1352_v14 }
 0xbc5   : > { %v7133_v16 = vsub.f32 %v1345_v4, %v1354_v15 }
 0xbc7   : > { %v1356_v34 = vmul.f32 %v7133_v16, %v7133_v16 }
 0xbc9   : > { %v1357_v27 = vsel %vm645_vm1, %v1356_v34, 0.0  ;;  %v5859_v34 = vld [vmem:[#allocation12 + $0x2c] ss:$104 sps:$4 sm:$0xff]  }
 0xc5f   : > { %v2445_v17 = vpop.f32.mrb[56].mxu1 }
 0xc60   : > { %v2446_v18 = vadd.f32 %v2445_v17, %v6827_v21  ;;  %v5672_v19 = vpop.f32.mrb[57].mxu1  ;;  %v5845_v17 = vld [vmem:[#allocation12 + $0x18] ss:$104 sps:$4 sm:$0xff]  }
 0xc61   : > { %v2448_v20 = vpop.f32.mrb[58].mxu1  ;;  %v5850_v19 = vld [vmem:[#allocation12 + $0xe4] ss:$104 sps:$4 sm:$0xff]  }
 0xc62   : > { %v5673_v63 = vpop.f32.mrb[59].mxu1  ;;  %v2451_v23 = vsel %vm645_vm1, %v2446_v18, 0.0  ;;  %v5853_v20 = vld [vmem:[#allocation12 + $0xec] ss:$104 sps:$4 sm:$0xff]  }
 0xc63   : > { %2452 = vadd.xlane.f32.xlu1 %v2451_v23  ;;  %v5851_v63 = vld [vmem:[#allocation12 + $0xe8] ss:$104 sps:$4 sm:$0xff]   ;;  %v5856_v23 = vld [vmem:[#allocation12 + $0x24] ss:$104 sps:$4 sm:$0xff]  }
 0xc67   : > { %1358 = vadd.xlane.f32.xlu1 %v1357_v27  ;;  %v5854_v27 = vld [vmem:[#allocation12 + $0x20] ss:$104 sps:$4 sm:$0xff]  }
 0xc6b   : > { %1908 = vadd.xlane.f32.xlu1 %v1907_v29  ;;  %v5862_v29 = vld [vmem:[#allocation12 + $0xf4] ss:$104 sps:$4 sm:$0xff]  }
 0xcf0   : > { %v2453_v30 = vpop.xlane.xlu1 %2452 }
 0xcf1   : > { %v2454_v5 = vmul.f32 0.03125, %v2453_v30  ;;  %v5865_v30 = vld [vmem:[#allocation12 + $0xfc] ss:$104 sps:$4 sm:$0xff]  }
 0xcf3   : > { %v2455_v21 = vsub.f32 %v2446_v18, %v2454_v5  ;;  %v5860_v5 = vld [vmem:[#allocation12 + $0xf0] ss:$104 sps:$4 sm:$0xff]  }
 0xcf4   : > { %v1359_v42 = vpop.xlane.xlu1 %1358 }
 0xcf5   : > { %v2456_v31 = vmul.f32 %v2455_v21, %v2455_v21  ;;  %v1360_v45 = vmul.f32 0.03125, %v1359_v42  ;;  %v5886_v42 = vld [vmem:[#allocation12 + $0x114] ss:$104 sps:$4 sm:$0xff]  }
 0xcf7   : > { %v2457_v32 = vsel %vm645_vm1, %v2456_v31, 0.0  ;;  %v1361_v47 = vadd.f32 1e-06, %v1360_v45  ;;  %v5868_v31 = vld [vmem:[#allocation12 + $0x34] ss:$104 sps:$4 sm:$0xff]  }
 0xcf8   : > { %2458 = vadd.xlane.f32.xlu1 %v2457_v32  ;;  %v1909_v43 = vpop.xlane.xlu1 %1908  ;;  %v5871_v32 = vld [vmem:[#allocation12 + $0x3c] ss:$104 sps:$4 sm:$0xff]   ;;  %v5887_v45 = vld [vmem:[#allocation12 + $0x118] ss:$104 sps:$4 sm:$0xff]  }
 0xcf9   : > { %v1910_v44 = vmul.f32 0.03125, %v1909_v43  ;;  %v5889_v43 = vld [vmem:[#allocation12 + $0x11c] ss:$104 sps:$4 sm:$0xff]  }
 0xcfb   : > { %v1911_v46 = vadd.f32 1e-06, %v1910_v44  ;;  %v5884_v44 = vld [vmem:[#allocation12 + $0x110] ss:$104 sps:$4 sm:$0xff]  }
 0xcfd   : > { %6034 = vrsqrt.f32 %v1911_v46  ;;  %v5892_v46 = vld [vmem:[#allocation12 + $0x54] ss:$104 sps:$4 sm:$0xff]  }
 0xcfe   : > { %6036 = vrsqrt.f32 %v1361_v47  ;;  %v5895_v47 = vld [vmem:[#allocation12 + $0x5c] ss:$104 sps:$4 sm:$0xff]  }
 0xd07   : > { %v6035_v54 = vpop.eup %6034 }
 0xd08   : > { %v6037_v56 = vpop.eup %6036  ;;  %v1913_v60 = vmul.f32 %v6035_v54, %v1905_v22  ;;  %v5848_v22 = vld [vmem:[#allocation12 + $0xe0] ss:$104 sps:$4 sm:$0xff]  }
 0xd09   : > { %v1363_v62 = vmul.f32 %v6037_v56, %v7133_v16  ;;  %v5842_v16 = vld [vmem:[#allocation12 + $0x10] ss:$104 sps:$4 sm:$0xff]   ;;  %v5896_v54 = vld [vmem:[#allocation12 + $0x120] ss:$104 sps:$4 sm:$0xff]  }
 0xd0a   : > { %v1918_v4 = vmul.f32 %v1917_v58, %v1913_v60  ;;  %v5899_v56 = vld [vmem:[#allocation12 + $0x128] ss:$104 sps:$4 sm:$0xff]   ;;  %v5907_v58 = vld [vmem:[#allocation13 + $0x4] ss:$104 sps:$4 sm:$0xff]  }
 0xd0b   : > { %v1368_v0 = vmul.f32 %v1367_v61, %v1363_v62  ;;  %v5902_v60 = vld [vmem:[#allocation12 + $0x60] ss:$104 sps:$4 sm:$0xff]   ;;  %v5910_v62 = vld [vmem:[#allocation12 + $0x134] ss:$104 sps:$4 sm:$0xff]  }
 0xd0c   : > { %v1923_v9 = vadd.f32 %v1922_v3, %v1918_v4  ;;  %v5905_v61 = vld [vmem:[#allocation13] ss:$104 sps:$4 sm:$0xff]   ;;  %v5908_v3 = vld [vmem:[#allocation12 + $0x130] ss:$104 sps:$4 sm:$0xff]  }
 0xd0d   : > { %v1373_v13 = vadd.f32 %v1372_v6, %v1368_v0  ;;  %v5911_v4 = vld [vmem:[#allocation13 + $0xd0] ss:$104 sps:$4 sm:$0xff]   ;;  %v5916_v6 = vld [vmem:[#allocation13 + $0xc] ss:$104 sps:$4 sm:$0xff]  }
 0xd0e   : > { %v5919_v0 = vld [vmem:[#allocation13 + $0x14] ss:$104 sps:$4 sm:$0xff]  }
 0xd0f   : > { %v2474_v15 = vmax.f32 %v1373_v13, %v1923_v9  ;;  %v5922_v9 = vld [vmem:[#allocation13 + $0xdc] ss:$104 sps:$4 sm:$0xff]   ;;  %v5923_v13 = vld [vmem:[#allocation13 + $0xe0] ss:$104 sps:$4 sm:$0xff]  }
 0xd85   : > { %v2459_v49 = vpop.xlane.xlu1 %2458 }
 0xd86   : > { %v2460_v50 = vmul.f32 0.03125, %v2459_v49  ;;  %v5893_v49 = vld [vmem:[#allocation12 + $0x58] ss:$104 sps:$4 sm:$0xff]  }
 0xd88   : > { %v2461_v52 = vadd.f32 1e-06, %v2460_v50  ;;  %v5898_v50 = vld [vmem:[#allocation12 + $0x124] ss:$104 sps:$4 sm:$0xff]  }
 0xd8a   : > { %6038 = vrsqrt.f32 %v2461_v52  ;;  %v5901_v52 = vld [vmem:[#allocation12 + $0x12c] ss:$104 sps:$4 sm:$0xff]  }
 0xd94   : > { %v6039_v8 = vpop.eup %6038 }
 0xd95   : > { %v2463_v12 = vmul.f32 %v6039_v8, %v2455_v21  ;;  %v5863_v21 = vld [vmem:[#allocation12 + $0xf8] ss:$104 sps:$4 sm:$0xff]  }
 0xd96   : > { %v5917_v8 = vld [vmem:[#allocation13 + $0x10] ss:$104 sps:$4 sm:$0xff]  }
 0xd97   : > { %v2468_v14 = vmul.f32 %v2467_v7, %v2463_v12  ;;  %v5914_v7 = vld [vmem:[#allocation13 + $0x8] ss:$104 sps:$4 sm:$0xff]   ;;  %v5920_v12 = vld [vmem:[#allocation13 + $0xd8] ss:$104 sps:$4 sm:$0xff]  }
 0xd99   : > { %v2473_v59 = vadd.f32 %v2472_v10, %v2468_v14  ;;  %v5925_v10 = vld [vmem:[#allocation13 + $0xe4] ss:$104 sps:$4 sm:$0xff]  }
 0xd9a   : > { %v5928_v14 = vld [vmem:[#allocation13 + $0x1c] ss:$104 sps:$4 sm:$0xff]  }
 0xd9b   : > { %v2475_v24 = vmax.f32 %v2474_v15, %v2473_v59  ;;  %v5931_v15 = vld [vmem:[#allocation13 + $0x24] ss:$104 sps:$4 sm:$0xff]   ;;  %v5926_v59 = vld [vmem:[#allocation13 + $0x18] ss:$104 sps:$4 sm:$0xff]  }
 0xd9d   : > { %v7166_v18 = vpack.c.bf16 %v2475_v24, %v2475_v24  ;;  %v5929_v24 = vld [vmem:[#allocation13 + $0x20] ss:$104 sps:$4 sm:$0xff]  }
 0xd9f   : > { %5335 = vmatmul.mubr.msk.bf16.vlgmr.msra.gmra.mrb[60].mxu0 %vm645_vm1, %v7166_v18  ;;  %5336 = vmatmul.mubr.msk.bf16.vlgmr.msra.gmra.mrb[60].mxu1 %vm645_vm1, %v7166_v18 }
 0xda0   : > { %3013 = vmatpush1.bf16.msra.mxu0 %v5842_v16  ;;  %3054 = vmatpush1.bf16.msra.mxu1 %v5845_v17  ;;  %v5934_v16 = vld [vmem:[#allocation13 + $0xec] ss:$104 sps:$4 sm:$0xff]  }
 0xda1   : > { %3014 = vmatprep.subr.bf16.mxu0 %v5850_v19  ;;  %3055 = vmatprep.subr.bf16.mxu1 %v5853_v20  ;;  %v5937_v17 = vld [vmem:[#allocation13 + $0xf4] ss:$104 sps:$4 sm:$0xff]   ;;  %v5932_v19 = vld [vmem:[#allocation13 + $0xe8] ss:$104 sps:$4 sm:$0xff]  }
 0xda2   : > { %3044 = vmatprep.mubr.bf16.mxu0 %v6377_v11  ;;  %3085 = vmatprep.mubr.bf16.mxu1 %v6377_v11  ;;  %v5935_v20 = vld [vmem:[#allocation13 + $0xf0] ss:$104 sps:$4 sm:$0xff]  }
 0xda4   : > { %3015 = vmatpush1.bf16.msra.mxu0 %v5848_v22  ;;  %3056 = vmatpush1.bf16.msra.mxu1 %v5851_v63  ;;  %v5940_v22 = vld [vmem:[#allocation13 + $0x2c] ss:$104 sps:$4 sm:$0xff]  }
 0xda5   : > { %3094 = vmatprep.subr.bf16.mxu0 %v5856_v23  ;;  %3135 = vmatprep.subr.bf16.mxu1 %v5859_v34  ;;  %v5943_v63 = vld [vmem:[#allocation13 + $0x34] ss:$104 sps:$4 sm:$0xff]   ;;  %v5938_v23 = vld [vmem:[#allocation13 + $0x28] ss:$104 sps:$4 sm:$0xff]  }
 0xda6   : > { %v5941_v34 = vld [vmem:[#allocation13 + $0x30] ss:$104 sps:$4 sm:$0xff]  }
 0xda7   : > { %5337 = vmatmul.mubr.msk.bf16.vlgmr.msra.gmra.mrb[64].mxu0 %vm645_vm1, %v7166_v18  ;;  %5338 = vmatmul.mubr.msk.bf16.vlgmr.msra.gmra.mrb[64].mxu1 %vm645_vm1, %v7166_v18 }
 0xda8   : > { %3095 = vmatpush1.bf16.msra.mxu0 %v5854_v27  ;;  %3136 = vmatpush1.bf16.msra.mxu1 %v5857_v28  ;;  %v5946_v27 = vld [vmem:[#allocation13 + $0xfc] ss:$104 sps:$4 sm:$0xff]  }
 0xda9   : > { %3096 = vmatprep.subr.bf16.mxu0 %v5862_v29  ;;  %3137 = vmatprep.subr.bf16.mxu1 %v5865_v30  ;;  %v5949_v28 = vld [vmem:[#allocation13 + $0x104] ss:$104 sps:$4 sm:$0xff]   ;;  %v5944_v29 = vld [vmem:[#allocation13 + $0xf8] ss:$104 sps:$4 sm:$0xff]  }
 0xdaa   : > { %3126 = vmatprep.mubr.bf16.mxu0 %v6377_v11  ;;  %3167 = vmatprep.mubr.bf16.mxu1 %v6377_v11  ;;  %v5947_v30 = vld [vmem:[#allocation13 + $0x100] ss:$104 sps:$4 sm:$0xff]  }
 0xdac   : > { %3097 = vmatpush1.bf16.msra.mxu0 %v5860_v5  ;;  %3138 = vmatpush1.bf16.msra.mxu1 %v5863_v21  ;;  %v5952_v5 = vld [vmem:[#allocation13 + $0x3c] ss:$104 sps:$4 sm:$0xff]  }
 0xdad   : > { %3176 = vmatprep.subr.bf16.mxu0 %v5868_v31  ;;  %3217 = vmatprep.subr.bf16.mxu1 %v5871_v32  ;;  %v5955_v21 = vld [vmem:[#allocation13 + $0x44] ss:$104 sps:$4 sm:$0xff]   ;;  %v5950_v31 = vld [vmem:[#allocation13 + $0x38] ss:$104 sps:$4 sm:$0xff]  }
 0xdae   : > { %v5953_v32 = vld [vmem:[#allocation13 + $0x40] ss:$104 sps:$4 sm:$0xff]  }
 0xdaf   : > { %5339 = vmatmul.mubr.msk.bf16.vlgmr.msra.gmra.mrb[68].mxu0 %vm645_vm1, %v7166_v18  ;;  %5340 = vmatmul.mubr.msk.bf16.vlgmr.msra.gmra.mrb[68].mxu1 %vm645_vm1, %v7166_v18 }
 0xdb0   : > { %3177 = vmatpush1.bf16.msra.mxu0 %v5866_v33  ;;  %3218 = vmatpush1.bf16.msra.mxu1 %v5869_v35  ;;  %v5958_v33 = vld [vmem:[#allocation13 + $0x10c] ss:$104 sps:$4 sm:$0xff]  }
 0xdb1   : > { %3178 = vmatprep.subr.bf16.mxu0 %v5874_v36  ;;  %3219 = vmatprep.subr.bf16.mxu1 %v5877_v37  ;;  %v5961_v35 = vld [vmem:[#allocation13 + $0x114] ss:$104 sps:$4 sm:$0xff]   ;;  %v5956_v36 = vld [vmem:[#allocation13 + $0x108] ss:$104 sps:$4 sm:$0xff]  }
 0xdb2   : > { %3208 = vmatprep.mubr.bf16.mxu0 %v6377_v11  ;;  %3249 = vmatprep.mubr.bf16.mxu1 %v6377_v11  ;;  %v5959_v37 = vld [vmem:[#allocation13 + $0x110] ss:$104 sps:$4 sm:$0xff]  }
 0xdb4   : > { %3179 = vmatpush1.bf16.msra.mxu0 %v5872_v25  ;;  %3220 = vmatpush1.bf16.msra.mxu1 %v5875_v26  ;;  %v5964_v25 = vld [vmem:[#allocation13 + $0x4c] ss:$104 sps:$4 sm:$0xff]  }
 0xdb5   : > { %3258 = vmatprep.subr.bf16.mxu0 %v5880_v38  ;;  %3299 = vmatprep.subr.bf16.mxu1 %v5883_v39  ;;  %v5967_v26 = vld [vmem:[#allocation13 + $0x54] ss:$104 sps:$4 sm:$0xff]   ;;  %v5962_v38 = vld [vmem:[#allocation13 + $0x48] ss:$104 sps:$4 sm:$0xff]  }
 0xdb6   : > { %v5965_v39 = vld [vmem:[#allocation13 + $0x50] ss:$104 sps:$4 sm:$0xff]  }
 0xdb7   : > { %5341 = vmatmul.mubr.msk.bf16.vlgmr.msra.gmra.mrb[72].mxu0 %vm645_vm1, %v7166_v18  ;;  %5342 = vmatmul.mubr.msk.bf16.vlgmr.msra.gmra.mrb[72].mxu1 %vm645_vm1, %v7166_v18 }
 0xdb8   : > { %3259 = vmatpush1.bf16.msra.mxu0 %v5878_v40  ;;  %3300 = vmatpush1.bf16.msra.mxu1 %v5881_v41  ;;  %v5970_v40 = vld [vmem:[#allocation13 + $0x11c] ss:$104 sps:$4 sm:$0xff]  }
 0xdb9   : > { %3260 = vmatprep.subr.bf16.mxu0 %v5886_v42  ;;  %3301 = vmatprep.subr.bf16.mxu1 %v5889_v43  ;;  %v5973_v41 = vld [vmem:[#allocation13 + $0x124] ss:$104 sps:$4 sm:$0xff]   ;;  %v5968_v42 = vld [vmem:[#allocation13 + $0x118] ss:$104 sps:$4 sm:$0xff]  }
 0xdba   : > { %3290 = vmatprep.mubr.bf16.mxu0 %v6377_v11  ;;  %3331 = vmatprep.mubr.bf16.mxu1 %v6377_v11  ;;  %v5971_v43 = vld [vmem:[#allocation13 + $0x120] ss:$104 sps:$4 sm:$0xff]  }
 0xdbc   : > { %3261 = vmatpush1.bf16.msra.mxu0 %v5884_v44  ;;  %3302 = vmatpush1.bf16.msra.mxu1 %v5887_v45  ;;  %v5976_v44 = vld [vmem:[#allocation13 + $0x5c] ss:$104 sps:$4 sm:$0xff]  }
 0xdbd   : > { %3340 = vmatprep.subr.bf16.mxu0 %v5892_v46  ;;  %3381 = vmatprep.subr.bf16.mxu1 %v5895_v47  ;;  %v5979_v45 = vld [vmem:[#allocation13 + $0x64] ss:$104 sps:$4 sm:$0xff]   ;;  %v5974_v46 = vld [vmem:[#allocation13 + $0x58] ss:$104 sps:$4 sm:$0xff]  }
 0xdbe   : > { %v5977_v47 = vld [vmem:[#allocation13 + $0x60] ss:$104 sps:$4 sm:$0xff]  }
 0xdbf   : > { %5343 = vmatmul.mubr.msk.bf16.vlgmr.msra.gmra.mrb[76].mxu0 %vm645_vm1, %v7166_v18  ;;  %5344 = vmatmul.mubr.msk.bf16.vlgmr.msra.gmra.mrb[76].mxu1 %vm645_vm1, %v7166_v18 }
 0xdc0   : > { %3341 = vmatpush1.bf16.msra.mxu0 %v5890_v48  ;;  %3382 = vmatpush1.bf16.msra.mxu1 %v5893_v49  ;;  %v5982_v48 = vld [vmem:[#allocation13 + $0x12c] ss:$104 sps:$4 sm:$0xff]  }
 0xdc1   : > { %3342 = vmatprep.subr.bf16.mxu0 %v5898_v50  ;;  %3383 = vmatprep.subr.bf16.mxu1 %v5901_v52  ;;  %v5985_v49 = vld [vmem:[#allocation13 + $0x134] ss:$104 sps:$4 sm:$0xff]   ;;  %v5980_v50 = vld [vmem:[#allocation13 + $0x128] ss:$104 sps:$4 sm:$0xff]  }
 0xdc2   : > { %3372 = vmatprep.mubr.bf16.mxu0 %v6377_v11  ;;  %3413 = vmatprep.mubr.bf16.mxu1 %v6377_v11  ;;  %v5983_v52 = vld [vmem:[#allocation13 + $0x130] ss:$104 sps:$4 sm:$0xff]  }
 0xdc4   : > { %3343 = vmatpush1.bf16.msra.mxu0 %v5896_v54  ;;  %3384 = vmatpush1.bf16.msra.mxu1 %v5899_v56  ;;  %v7245_v54 = vsub.s32 3, %v7142_v51  ;;  %v7250_v56 = vld [vmem:[%s7554_s17] sm:$0xff] }
 0xdc5   : > { %3422 = vmatprep.subr.bf16.mxu0 %v5904_v57  ;;  %3913 = vmatprep.subr.bf16.mxu1 %v5907_v58  ;;  %v2544_v57 = vrot.slane %v7250_v56, %v7145_v53 }
 0xdc7   : > { %5345 = vmatmul.mubr.msk.bf16.vlgmr.msra.gmra.mrb[80].mxu0 %vm645_vm1, %v7166_v18  ;;  %5346 = vmatmul.mubr.msk.bf16.vlgmr.msra.gmra.mrb[80].mxu1 %vm645_vm1, %v7166_v18 }
 0xdc8   : > { %3423 = vmatpush1.bf16.msra.mxu0 %v5902_v60  ;;  %3914 = vmatpush1.bf16.msra.mxu1 %v5905_v61 }
 0xdc9   : > { %3424 = vmatprep.subr.bf16.mxu0 %v5910_v62  ;;  %3915 = vmatprep.subr.bf16.mxu1 %v5913_v2 }
 0xdca   : > { %3454 = vmatprep.mubr.bf16.mxu0 %v6377_v11  ;;  %3945 = vmatprep.mubr.bf16.mxu1 %v6377_v11 }
 0xdcc   : > { %3425 = vmatpush1.bf16.msra.mxu0 %v5908_v3  ;;  %3916 = vmatpush1.bf16.msra.mxu1 %v5911_v4 }
 0xdcd   : > { %3954 = vmatprep.subr.bf16.mxu0 %v5916_v6  ;;  %3995 = vmatprep.subr.bf16.mxu1 %v5919_v0 }
 0xdcf   : > { %5347 = vmatmul.mubr.msk.bf16.vlgmr.msra.gmra.mrb[84].mxu0 %vm645_vm1, %v7166_v18  ;;  %5400 = vmatmul.mubr.msk.bf16.vlgmr.msra.gmra.mrb[84].mxu1 %vm645_vm1, %v7166_v18 }
 0xdd0   : > { %3955 = vmatpush1.bf16.msra.mxu0 %v5914_v7  ;;  %3996 = vmatpush1.bf16.msra.mxu1 %v5917_v8 }
 0xdd1   : > { %3956 = vmatprep.subr.bf16.mxu0 %v5922_v9  ;;  %3997 = vmatprep.subr.bf16.mxu1 %v5925_v10 }
 0xdd2   : > { %3986 = vmatprep.mubr.bf16.mxu0 %v6377_v11  ;;  %4027 = vmatprep.mubr.bf16.mxu1 %v6377_v11 }
 0xdd4   : > { %3957 = vmatpush1.bf16.msra.mxu0 %v5920_v12  ;;  %3998 = vmatpush1.bf16.msra.mxu1 %v5923_v13 }
 0xdd5   : > { %4036 = vmatprep.subr.bf16.mxu0 %v5928_v14  ;;  %4077 = vmatprep.subr.bf16.mxu1 %v5931_v15 }
 0xdd7   : > { %5401 = vmatmul.mubr.msk.bf16.vlgmr.msra.gmra.mrb[88].mxu0 %vm645_vm1, %v7166_v18  ;;  %5402 = vmatmul.mubr.msk.bf16.vlgmr.msra.gmra.mrb[88].mxu1 %vm645_vm1, %v7166_v18 }
 0xdd8   : > { %4037 = vmatpush1.bf16.msra.mxu0 %v5926_v59  ;;  %4078 = vmatpush1.bf16.msra.mxu1 %v5929_v24 }
 0xdd9   : > { %4038 = vmatprep.subr.bf16.mxu0 %v5934_v16  ;;  %4079 = vmatprep.subr.bf16.mxu1 %v5937_v17 }
 0xdda   : > { %4068 = vmatprep.mubr.bf16.mxu0 %v6377_v11  ;;  %4109 = vmatprep.mubr.bf16.mxu1 %v6377_v11 }
 0xddc   : > { %4039 = vmatpush1.bf16.msra.mxu0 %v5932_v19  ;;  %4080 = vmatpush1.bf16.msra.mxu1 %v5935_v20 }
 0xddd   : > { %4118 = vmatprep.subr.bf16.mxu0 %v5940_v22  ;;  %4159 = vmatprep.subr.bf16.mxu1 %v5943_v63 }
 0xddf   : > { %5403 = vmatmul.mubr.msk.bf16.vlgmr.msra.gmra.mrb[92].mxu0 %vm645_vm1, %v7166_v18  ;;  %5404 = vmatmul.mubr.msk.bf16.vlgmr.msra.gmra.mrb[92].mxu1 %vm645_vm1, %v7166_v18 }
 0xde0   : > { %4119 = vmatpush1.bf16.msra.mxu0 %v5938_v23  ;;  %4160 = vmatpush1.bf16.msra.mxu1 %v5941_v34 }
 0xde1   : > { %4120 = vmatprep.subr.bf16.mxu0 %v5946_v27  ;;  %4161 = vmatprep.subr.bf16.mxu1 %v5949_v28 }
 0xde2   : > { %4150 = vmatprep.mubr.bf16.mxu0 %v6377_v11  ;;  %4191 = vmatprep.mubr.bf16.mxu1 %v6377_v11 }
 0xde4   : > { %4121 = vmatpush1.bf16.msra.mxu0 %v5944_v29  ;;  %4162 = vmatpush1.bf16.msra.mxu1 %v5947_v30 }
 0xde5   : > { %4200 = vmatprep.subr.bf16.mxu0 %v5952_v5  ;;  %4241 = vmatprep.subr.bf16.mxu1 %v5955_v21 }
 0xde7   : > { %5405 = vmatmul.mubr.msk.bf16.vlgmr.msra.gmra.mrb[96].mxu0 %vm645_vm1, %v7166_v18  ;;  %5406 = vmatmul.mubr.msk.bf16.vlgmr.msra.gmra.mrb[96].mxu1 %vm645_vm1, %v7166_v18 }
 0xde8   : > { %4201 = vmatpush1.bf16.msra.mxu0 %v5950_v31  ;;  %4242 = vmatpush1.bf16.msra.mxu1 %v5953_v32 }
 0xde9   : > { %4202 = vmatprep.subr.bf16.mxu0 %v5958_v33  ;;  %4243 = vmatprep.subr.bf16.mxu1 %v5961_v35 }
 0xdea   : > { %4232 = vmatprep.mubr.bf16.mxu0 %v6377_v11  ;;  %4273 = vmatprep.mubr.bf16.mxu1 %v6377_v11 }
 0xdec   : > { %4203 = vmatpush1.bf16.msra.mxu0 %v5956_v36  ;;  %4244 = vmatpush1.bf16.msra.mxu1 %v5959_v37 }
 0xded   : > { %4282 = vmatprep.subr.bf16.mxu0 %v5964_v25  ;;  %4323 = vmatprep.subr.bf16.mxu1 %v5967_v26 }
 0xdef   : > { %5407 = vmatmul.mubr.msk.bf16.vlgmr.msra.gmra.mrb[100].mxu0 %vm645_vm1, %v7166_v18  ;;  %5408 = vmatmul.mubr.msk.bf16.vlgmr.msra.gmra.mrb[100].mxu1 %vm645_vm1, %v7166_v18 }
 0xdf0   : > { %4283 = vmatpush1.bf16.msra.mxu0 %v5962_v38  ;;  %4324 = vmatpush1.bf16.msra.mxu1 %v5965_v39 }
 0xdf1   : > { %4284 = vmatprep.subr.bf16.mxu0 %v5970_v40  ;;  %4325 = vmatprep.subr.bf16.mxu1 %v5973_v41 }
 0xdf2   : > { %4314 = vmatprep.mubr.bf16.mxu0 %v6377_v11  ;;  %4355 = vmatprep.mubr.bf16.mxu1 %v6377_v11 }
 0xdf4   : > { %4285 = vmatpush1.bf16.msra.mxu0 %v5968_v42  ;;  %4326 = vmatpush1.bf16.msra.mxu1 %v5971_v43 }
 0xdf5   : > { %4364 = vmatprep.subr.bf16.mxu0 %v5976_v44  ;;  %4405 = vmatprep.subr.bf16.mxu1 %v5979_v45 }
 0xdf7   : > { %5409 = vmatmul.mubr.msk.bf16.vlgmr.msra.gmra.mrb[104].mxu0 %vm645_vm1, %v7166_v18  ;;  %5410 = vmatmul.mubr.msk.bf16.vlgmr.msra.gmra.mrb[104].mxu1 %vm645_vm1, %v7166_v18 }
 0xdf8   : > { %4365 = vmatpush1.bf16.msra.mxu0 %v5974_v46  ;;  %4406 = vmatpush1.bf16.msra.mxu1 %v5977_v47  ;;  %v7300_v46 = vld [vmem:[#allocation15] sm:$0xff] }
 0xdf9   : > { %4366 = vmatprep.subr.bf16.mxu0 %v5982_v48  ;;  %4407 = vmatprep.subr.bf16.mxu1 %v5985_v49  ;;  %v3526_v49 = vrot.slane %v7300_v46, %v7148_v55 }
 0xdfa   : > { %4396 = vmatprep.mubr.bf16.mxu0 %v6377_v11  ;;  %4437 = vmatprep.mubr.bf16.mxu1 %v6377_v11  ;;  %v2552_v11 = vrot.slane %v7250_v56, %v7245_v54 }
 0xdfc   : > { %4367 = vmatpush1.bf16.msra.mxu0 %v5980_v50  ;;  %4408 = vmatpush1.bf16.msra.mxu1 %v5983_v52  ;;  %v3530_v50 = vrot.slane %v7300_v46, %v7145_v53 }
 0xdff   : > { %5411 = vmatmul.mubr.msk.bf16.vlgmr.msra.gmra.mrb[108].mxu0 %vm645_vm1, %v7166_v18  ;;  %5412 = vmatmul.mubr.msk.bf16.vlgmr.msra.gmra.mrb[108].mxu1 %vm645_vm1, %v7166_v18 }
 0xe72   : > { %v7256_v58 = vpop.f32.mrb[60].mxu0  ;;  %v7258_v60 = vpop.f32.mrb[60].mxu1 }
 0xe73   : > { %v2966_v61 = vpop.f32.mrb[61].mxu0  ;;  %v3007_v18 = vpop.f32.mrb[61].mxu1 }
 0xe74   : > { %v2967_v62 = vadd.f32 %v2966_v61, %v2544_v57  ;;  %v3008_v2 = vadd.f32 %v3007_v18, %v2552_v11  ;;  %v2968_v3 = vpop.f32.mrb[62].mxu0  ;;  %v3009_v4 = vpop.f32.mrb[62].mxu1 }
 0xe75   : > { %v2969_v6 = vpop.f32.mrb[63].mxu0  ;;  %v3010_v0 = vpop.f32.mrb[63].mxu1 }
 0xe76   : > { %v4447_v7 = vpack.c.bf16 %v2967_v62, %v2967_v62  ;;  %v4492_v8 = vpack.c.bf16 %v3008_v2, %v3008_v2  ;;  %v7311_v62 = vsub.s32 5, %v7142_v51 }
 0xe78   : > { %4482 = vmatprep.mubr.bf16.mxu0 %v4447_v7  ;;  %4527 = vmatprep.mubr.bf16.mxu1 %v4492_v8  ;;  %v2540_v7 = vrot.slane %v7250_v56, %v7148_v55  ;;  %v7316_v8 = vsub.s32 4, %v7142_v51 }
 0xe7a   : > { %v7260_v9 = vpop.f32.mrb[64].mxu0  ;;  %v7262_v10 = vpop.f32.mrb[64].mxu1 }
 0xe7b   : > { %v7264_v12 = vpop.f32.mrb[65].mxu0  ;;  %v7266_v13 = vpop.f32.mrb[65].mxu1 }
 0xe7c   : > { %v3050_v14 = vpop.f32.mrb[66].mxu0  ;;  %v3091_v15 = vpop.f32.mrb[66].mxu1 }
 0xe7d   : > { %v3051_v59 = vpop.f32.mrb[67].mxu0  ;;  %v3092_v24 = vpop.f32.mrb[67].mxu1 }
 0xe7e   : > { %v3534_v59 = vrot.slane %v7300_v46, %v7157_v1  ;;  %v2560_v24 = vrot.slane %v7250_v56, %v7311_v62 }
 0xe82   : > { %v7268_v16 = vpop.f32.mrb[68].mxu0  ;;  %v7270_v17 = vpop.f32.mrb[68].mxu1 }
 0xe83   : > { %v7272_v19 = vpop.f32.mrb[69].mxu0  ;;  %v7274_v20 = vpop.f32.mrb[69].mxu1 }
 0xe84   : > { %v3132_v22 = vpop.f32.mrb[70].mxu0  ;;  %v3173_v63 = vpop.f32.mrb[70].mxu1 }
 0xe85   : > { %v3133_v23 = vpop.f32.mrb[71].mxu0  ;;  %v3174_v34 = vpop.f32.mrb[71].mxu1  ;;  %v3542_v22 = vrot.slane %v7300_v46, %v7316_v8  ;;  %v3538_v63 = vrot.slane %v7300_v46, %v7245_v54 }
 0xe86   : > { %v3546_v23 = vrot.slane %v7300_v46, %v7311_v62  ;;  %v2965_v34 = vadd.f32 %v7256_v58, %v2540_v7  ;;  %v7336_v58 = vsub.s32 6, %v7142_v51 }
 0xe8a   : > { %v7276_v27 = vpop.f32.mrb[72].mxu0  ;;  %v7278_v28 = vpop.f32.mrb[72].mxu1 }
 0xe8b   : > { %v7280_v29 = vpop.f32.mrb[73].mxu0  ;;  %v7282_v30 = vpop.f32.mrb[73].mxu1 }
 0xe8c   : > { %v3214_v5 = vpop.f32.mrb[74].mxu0  ;;  %v3255_v21 = vpop.f32.mrb[74].mxu1 }
 0xe8d   : > { %v3215_v31 = vpop.f32.mrb[75].mxu0  ;;  %v3256_v32 = vpop.f32.mrb[75].mxu1 }
 0xe8e   : > { %v7330_v31 = vsub.s32 7, %v7142_v51 }
 0xe90   : > { %v3554_v7 = vrot.slane %v7300_v46, %v7330_v31 }
 0xe92   : > { %v7284_v33 = vpop.f32.mrb[76].mxu0  ;;  %v7286_v35 = vpop.f32.mrb[76].mxu1 }
 0xe93   : > { %v7288_v36 = vpop.f32.mrb[77].mxu0  ;;  %v7290_v37 = vpop.f32.mrb[77].mxu1 }
 0xe94   : > { %v3296_v25 = vpop.f32.mrb[78].mxu0  ;;  %v3337_v26 = vpop.f32.mrb[78].mxu1 }
 0xe95   : > { %v3297_v38 = vpop.f32.mrb[79].mxu0  ;;  %v3338_v39 = vpop.f32.mrb[79].mxu1 }
 0xe96   : > { %v3049_v38 = vadd.f32 %v7264_v12, %v2560_v24  ;;  %v7345_v12 = vld [vmem:[%s7554_s17 + $0x8] sm:$0xff] }
 0xe97   : > { %v2576_v24 = vrot.slane %v7345_v12, %v7145_v53 }
 0xe9a   : > { %v7292_v40 = vpop.f32.mrb[80].mxu0  ;;  %v7294_v41 = vpop.f32.mrb[80].mxu1 }
 0xe9b   : > { %v7296_v42 = vpop.f32.mrb[81].mxu0  ;;  %v7298_v43 = vpop.f32.mrb[81].mxu1 }
 0xe9c   : > { %v3378_v44 = vpop.f32.mrb[82].mxu0  ;;  %v3419_v45 = vpop.f32.mrb[82].mxu1 }
 0xe9d   : > { %v3379_v47 = vpop.f32.mrb[83].mxu0  ;;  %v3420_v48 = vpop.f32.mrb[83].mxu1 }
 0xea2   : > { %v7306_v52 = vpop.f32.mrb[84].mxu0  ;;  %v3947_v57 = vpop.f32.mrb[84].mxu1 }
 0xea3   : > { %v3948_v11 = vadd.f32 %v3947_v57, %v3526_v49  ;;  %v7308_v61 = vpop.f32.mrb[85].mxu0  ;;  %v3949_v18 = vpop.f32.mrb[85].mxu1  ;;  %v2548_v49 = vrot.slane %v7250_v56, %v7157_v1 }
 0xea4   : > { %v3950_v2 = vadd.f32 %v3949_v18, %v3530_v50  ;;  %v3460_v3 = vpop.f32.mrb[86].mxu0  ;;  %v3951_v4 = vpop.f32.mrb[86].mxu1  ;;  %v4446_v18 = vpack.c.bf16 %v2965_v34, %v2965_v34 }
 0xea5   : > { %v3461_v6 = vpop.f32.mrb[87].mxu0  ;;  %v3952_v0 = vpop.f32.mrb[87].mxu1  ;;  %v4448_v15 = vpack.c.bf16 %v3948_v11, %v3948_v11  ;;  %v7338_v11 = vld [vmem:[#allocation15 + $0x8] sm:$0xff] }
 0xea6   : > { %v4449_v14 = vpack.c.bf16 %v3950_v2, %v3950_v2  ;;  %v2556_v2 = vrot.slane %v7250_v56, %v7316_v8  ;;  %v2568_v6 = vrot.slane %v7250_v56, %v7330_v31  ;;  %v3550_v0 = vrot.slane %v7300_v46, %v7336_v58 }
 0xea8   : > { %4450 = vmatprep.subr.bf16.mxu0 %v4449_v14  ;;  %v4538_v14 = vpack.c.bf16 %v3049_v38, %v3049_v38  ;;  %v3047_v34 = vadd.f32 %v7260_v9, %v2556_v2  ;;  %v2572_v9 = vrot.slane %v7345_v12, %v7148_v55  ;;  %v2584_v2 = vrot.slane %v7345_v12, %v7245_v54 }
 0xea9   : > { %4451 = vmatpush1.bf16.xpose.msra.mxu0 %v4448_v15 }
 0xeaa   : > { %v3988_v5 = vpop.f32.mrb[88].mxu0  ;;  %v4029_v21 = vpop.f32.mrb[88].mxu1 }
 0xeab   : > { %v3989_v32 = vadd.f32 %v3988_v5, %v3534_v59  ;;  %v3990_v25 = vpop.f32.mrb[89].mxu0  ;;  %v4031_v26 = vpop.f32.mrb[89].mxu1  ;;  %v4030_v39 = vadd.f32 %v4029_v21, %v3542_v22  ;;  %v3562_v59 = vrot.slane %v7338_v11, %v7145_v53  ;;  %v3558_v22 = vrot.slane %v7338_v11, %v7148_v55 }
 0xeac   : > { %v3991_v44 = vadd.f32 %v3990_v25, %v3538_v63  ;;  %v4032_v45 = vadd.f32 %v4031_v26, %v3546_v23  ;;  %v3992_v47 = vpop.f32.mrb[90].mxu0  ;;  %v4033_v48 = vpop.f32.mrb[90].mxu1  ;;  %v3006_v63 = vadd.f32 %v7258_v60, %v2548_v49  ;;  %v3131_v60 = vadd.f32 %v7272_v19, %v2576_v24 }
 0xead   : > { %v3993_v50 = vpop.f32.mrb[91].mxu0  ;;  %v4034_v57 = vpop.f32.mrb[91].mxu1  ;;  %v4493_v51 = vpack.c.bf16 %v3989_v32, %v3989_v32  ;;  %v4539_v15 = vpack.c.bf16 %v4030_v39, %v4030_v39  ;;  %v3090_v32 = vadd.f32 %v7266_v13, %v2568_v6  ;;  %v4537_v13 = vpack.c.bf16 %v3047_v34, %v3047_v34 }
 0xeae   : > { %v4494_v3 = vpack.c.bf16 %v3991_v44, %v3991_v44  ;;  %v4540_v4 = vpack.c.bf16 %v4032_v45, %v4032_v45  ;;  %v2564_v45 = vrot.slane %v7250_v56, %v7336_v58  ;;  %v4491_v50 = vpack.c.bf16 %v3006_v63, %v3006_v63 }
 0xeaf   : > { %v3570_v56 = vrot.slane %v7338_v11, %v7245_v54  ;;  %v4584_v19 = vpack.c.bf16 %v3090_v32, %v3090_v32  ;;  %v3578_v6 = vrot.slane %v7338_v11, %v7311_v62 }
 0xeb0   : > { %4483 = vmatmul.mubr.bf16.vlgmr.msra.gmra.mrb[112].mxu0 %v4446_v18  ;;  %4495 = vmatprep.subr.bf16.mxu1 %v4494_v3  ;;  %v3566_v3 = vrot.slane %v7338_v11, %v7157_v1  ;;  %v3088_v24 = vadd.f32 %v7262_v10, %v2564_v45  ;;  %v2580_v10 = vrot.slane %v7345_v12, %v7157_v1 }
 0xeb1   : > { %4541 = vmatprep.subr.bf16.mxu0 %v4540_v4  ;;  %4496 = vmatpush1.bf16.xpose.msra.mxu1 %v4493_v51  ;;  %v4630_v51 = vpack.c.bf16 %v3131_v60, %v3131_v60 }
 0xeb2   : > { %4542 = vmatpush1.bf16.xpose.msra.mxu0 %v4539_v15  ;;  %4573 = vmatprep.mubr.bf16.mxu0 %v4538_v14  ;;  %v4070_v46 = vpop.f32.mrb[92].mxu0  ;;  %v4111_v23 = vpop.f32.mrb[92].mxu1  ;;  %v2592_v14 = vrot.slane %v7345_v12, %v7311_v62 }
 0xeb3   : > { %v4072_v5 = vpop.f32.mrb[93].mxu0  ;;  %v4113_v21 = vpop.f32.mrb[93].mxu1  ;;  %v4071_v25 = vadd.f32 %v4070_v46, %v3550_v0  ;;  %v4112_v47 = vadd.f32 %v4111_v23, %v3558_v22  ;;  %v3129_v46 = vadd.f32 %v7268_v16, %v2572_v9  ;;  %v4583_v16 = vpack.c.bf16 %v3088_v24, %v3088_v24 }
 0xeb4   : > { %v4073_v26 = vadd.f32 %v4072_v5, %v3554_v7  ;;  %v4114_v38 = vadd.f32 %v4113_v21, %v3562_v59  ;;  %v4074_v39 = vpop.f32.mrb[94].mxu0  ;;  %v4115_v44 = vpop.f32.mrb[94].mxu1  ;;  %v3574_v7 = vrot.slane %v7338_v11, %v7316_v8  ;;  %v3213_v45 = vadd.f32 %v7280_v29, %v2592_v14 }
 0xeb5   : > { %v4075_v48 = vpop.f32.mrb[95].mxu0  ;;  %v4116_v49 = vpop.f32.mrb[95].mxu1  ;;  %v4585_v4 = vpack.c.bf16 %v4071_v25, %v4071_v25  ;;  %v4631_v0 = vpack.c.bf16 %v4112_v47, %v4112_v47  ;;  %v3172_v25 = vadd.f32 %v7274_v20, %v2584_v2  ;;  %v7382_v44 = vld [vmem:[#allocation15 + $0x10] sm:$0xff]  ;;  %v4629_v9 = vpack.c.bf16 %v3129_v46, %v3129_v46 }
 0xeb6   : > { %v4586_v57 = vpack.c.bf16 %v4073_v26, %v4073_v26  ;;  %v4632_v18 = vpack.c.bf16 %v4114_v38, %v4114_v38  ;;  %v2588_v48 = vrot.slane %v7345_v12, %v7316_v8  ;;  %v7392_v20 = vld [vmem:[%s7554_s17 + $0x10] sm:$0xff]  ;;  %v3582_v49 = vrot.slane %v7338_v11, %v7336_v58 }
 0xeb7   : > { %v3594_v29 = vrot.slane %v7382_v44, %v7145_v53 }
 0xeb8   : > { %4528 = vmatmul.mubr.bf16.vlgmr.msra.gmra.mrb[112].mxu1 %v4491_v50  ;;  %4587 = vmatprep.subr.bf16.mxu1 %v4586_v57  ;;  %v3586_v50 = vrot.slane %v7338_v11, %v7330_v31  ;;  %v2608_v11 = vrot.slane %v7392_v20, %v7145_v53 }
 0xeb9   : > { %4574 = vmatmul.mubr.bf16.vlgmr.msra.gmra.mrb[116].mxu0 %v4537_v13  ;;  %4633 = vmatprep.subr.bf16.mxu0 %v4632_v18  ;;  %v4676_v18 = vpack.c.bf16 %v3172_v25, %v3172_v25  ;;  %v2600_v13 = vrot.slane %v7345_v12, %v7330_v31 }
 0xeba   : > { %4588 = vmatpush1.bf16.xpose.msra.mxu1 %v4585_v4  ;;  %4619 = vmatprep.mubr.bf16.mxu1 %v4584_v19  ;;  %v4152_v15 = vpop.f32.mrb[96].mxu0  ;;  %v4193_v59 = vpop.f32.mrb[96].mxu1 }
 0xebb   : > { %4634 = vmatpush1.bf16.xpose.msra.mxu0 %v4631_v0  ;;  %4665 = vmatprep.mubr.bf16.mxu0 %v4630_v51  ;;  %v4154_v22 = vpop.f32.mrb[97].mxu0  ;;  %v4195_v63 = vpop.f32.mrb[97].mxu1  ;;  %v4153_v23 = vadd.f32 %v4152_v15, %v3566_v3  ;;  %v4194_v26 = vadd.f32 %v4193_v59, %v3574_v7  ;;  %v3590_v3 = vrot.slane %v7382_v44, %v7148_v55 }
 0xebc   : > { %v4155_v34 = vadd.f32 %v4154_v22, %v3570_v56  ;;  %v4196_v5 = vadd.f32 %v4195_v63, %v3578_v6  ;;  %v4156_v21 = vpop.f32.mrb[98].mxu0  ;;  %v4197_v32 = vpop.f32.mrb[98].mxu1  ;;  %v4722_v56 = vpack.c.bf16 %v3213_v45, %v3213_v45  ;;  %v3170_v6 = vadd.f32 %v7270_v17, %v2580_v10 }
 0xebd   : > { %v4157_v38 = vpop.f32.mrb[99].mxu0  ;;  %v4198_v39 = vpop.f32.mrb[99].mxu1  ;;  %v4677_v57 = vpack.c.bf16 %v4153_v23, %v4153_v23  ;;  %v4723_v2 = vpack.c.bf16 %v4194_v26, %v4194_v26  ;;  %v3211_v7 = vadd.f32 %v7276_v27, %v2588_v48  ;;  %v3254_v63 = vadd.f32 %v7282_v30, %v2600_v13 }
 0xebe   : > { %v4678_v60 = vpack.c.bf16 %v4155_v34, %v4155_v34  ;;  %v4724_v47 = vpack.c.bf16 %v4196_v5, %v4196_v5  ;;  %v2596_v17 = vrot.slane %v7345_v12, %v7336_v58  ;;  %v3295_v5 = vadd.f32 %v7288_v36, %v2608_v11 }
 0xebf   : > { %v4675_v25 = vpack.c.bf16 %v3170_v6, %v3170_v6  ;;  %v2604_v27 = vrot.slane %v7392_v20, %v7148_v55  ;;  %v3598_v26 = vrot.slane %v7382_v44, %v7157_v1  ;;  %v3602_v30 = vrot.slane %v7382_v44, %v7245_v54 }
 0xec0   : > { %4679 = vmatprep.subr.bf16.mxu1 %v4678_v60  ;;  %4725 = vmatprep.subr.bf16.mxu0 %v4724_v47  ;;  %v4721_v38 = vpack.c.bf16 %v3211_v7, %v3211_v7  ;;  %v3610_v12 = vrot.slane %v7382_v44, %v7311_v62  ;;  %v4768_v36 = vpack.c.bf16 %v3254_v63, %v3254_v63 }
 0xec1   : > { %4620 = vmatmul.mubr.bf16.vlgmr.msra.gmra.mrb[116].mxu1 %v4583_v16  ;;  %v2616_v10 = vrot.slane %v7392_v20, %v7245_v54  ;;  %v3606_v60 = vrot.slane %v7382_v44, %v7316_v8  ;;  %v4814_v47 = vpack.c.bf16 %v3295_v5, %v3295_v5  ;;  %v2624_v16 = vrot.slane %v7392_v20, %v7311_v62 }
 0xec2   : > { %4666 = vmatmul.mubr.bf16.vlgmr.msra.gmra.mrb[120].mxu0 %v4629_v9  ;;  %4680 = vmatpush1.bf16.xpose.msra.mxu1 %v4677_v57  ;;  %v4234_v19 = vpop.f32.mrb[100].mxu0  ;;  %v4275_v4 = vpop.f32.mrb[100].mxu1  ;;  %v3293_v54 = vadd.f32 %v7284_v33, %v2604_v27  ;;  %v2620_v7 = vrot.slane %v7392_v20, %v7316_v8  ;;  %v2632_v8 = vrot.slane %v7392_v20, %v7330_v31 }
 0xec3   : > { %4711 = vmatprep.mubr.bf16.mxu1 %v4676_v18  ;;  %4726 = vmatpush1.bf16.xpose.msra.mxu0 %v4723_v2  ;;  %v4236_v51 = vpop.f32.mrb[101].mxu0  ;;  %v4277_v0 = vpop.f32.mrb[101].mxu1  ;;  %v4235_v14 = vadd.f32 %v4234_v19, %v3582_v49  ;;  %v4276_v46 = vadd.f32 %v4275_v4, %v3590_v3  ;;  %v3336_v62 = vadd.f32 %v7290_v37, %v2616_v10  ;;  %v3518_v4 = vld [vmem:[#allocation15 + $0x18] sm:$0x3] }
 0xec4   : > { %4757 = vmatprep.mubr.bf16.mxu0 %v4722_v56  ;;  %v4237_v15 = vadd.f32 %v4236_v51, %v3586_v50  ;;  %v4278_v59 = vadd.f32 %v4277_v0, %v3594_v29  ;;  %v4238_v24 = vpop.f32.mrb[102].mxu0  ;;  %v4279_v22 = vpop.f32.mrb[102].mxu1  ;;  %v3252_v50 = vadd.f32 %v7278_v28, %v2596_v17  ;;  %v2612_v28 = vrot.slane %v7392_v20, %v7157_v1 }
 0xec5   : > { %v4239_v23 = vpop.f32.mrb[103].mxu0  ;;  %v4280_v34 = vpop.f32.mrb[103].mxu1  ;;  %v4769_v39 = vpack.c.bf16 %v4235_v14, %v4235_v14  ;;  %v4815_v45 = vpack.c.bf16 %v4276_v46, %v4276_v46  ;;  %v3377_v6 = vadd.f32 %v7296_v42, %v2624_v16  ;;  %v2532_v14 = vld [vmem:[%s7554_s17 + $0x18] sm:$0x3]  ;;  %v3614_v37 = vrot.slane %v7382_v44, %v7336_v58 }
 0xec6   : > { %v4770_v21 = vpack.c.bf16 %v4237_v15, %v4237_v15  ;;  %v4816_v32 = vpack.c.bf16 %v4278_v59, %v4278_v59  ;;  %v4767_v33 = vpack.c.bf16 %v3252_v50, %v3252_v50  ;;  %v3618_v15 = vrot.slane %v7382_v44, %v7330_v31 }
 0xec7   : > { %v4813_v59 = vpack.c.bf16 %v3293_v54, %v3293_v54  ;;  %v3626_v42 = vrot.slane %v3518_v4, %v7145_v53  ;;  %v4860_v24 = vpack.c.bf16 %v3336_v62, %v3336_v62  ;;  %v3622_v63 = vrot.slane %v3518_v4, %v7148_v55 }
 0xec8   : > { %4771 = vmatprep.subr.bf16.mxu1 %v4770_v21  ;;  %4817 = vmatprep.subr.bf16.mxu0 %v4816_v32  ;;  %v4906_v46 = vpack.c.bf16 %v3377_v6, %v3377_v6  ;;  %v2640_v23 = vrot.slane %v2532_v14, %v7145_v53  ;;  %v3334_v17 = vadd.f32 %v7286_v35, %v2612_v28 }
 0xec9   : > { %4712 = vmatmul.mubr.bf16.vlgmr.msra.gmra.mrb[120].mxu1 %v4675_v25  ;;  %v3375_v32 = vadd.f32 %v7292_v40, %v2620_v7  ;;  %v3418_v53 = vadd.f32 %v7298_v43, %v2632_v8 }
 0xeca   : > { %4758 = vmatmul.mubr.bf16.vlgmr.msra.gmra.mrb[124].mxu0 %v4721_v38  ;;  %4772 = vmatpush1.bf16.xpose.msra.mxu1 %v4769_v39  ;;  %v4316_v48 = vpop.f32.mrb[104].mxu0  ;;  %v4357_v49 = vpop.f32.mrb[104].mxu1 }
 0xecb   : > { %4803 = vmatprep.mubr.bf16.mxu1 %v4768_v36  ;;  %4818 = vmatpush1.bf16.xpose.msra.mxu0 %v4815_v45  ;;  %v4318_v9 = vpop.f32.mrb[105].mxu0  ;;  %v4359_v57 = vpop.f32.mrb[105].mxu1  ;;  %v4317_v29 = vadd.f32 %v4316_v48, %v3598_v26  ;;  %v4358_v56 = vadd.f32 %v4357_v49, %v3606_v60  ;;  %v3459_v36 = vadd.f32 %v7308_v61, %v2640_v23 }
 0xecc   : > { %4849 = vmatprep.mubr.bf16.mxu0 %v4814_v47  ;;  %v4319_v18 = vadd.f32 %v4318_v9, %v3602_v30  ;;  %v4360_v13 = vadd.f32 %v4359_v57, %v3610_v12  ;;  %v4320_v2 = vpop.f32.mrb[106].mxu0  ;;  %v4361_v3 = vpop.f32.mrb[106].mxu1  ;;  %v4859_v45 = vpack.c.bf16 %v3334_v17, %v3334_v17  ;;  %v2628_v60 = vrot.slane %v7392_v20, %v7336_v58 }
 0xecd   : > { %v4321_v11 = vpop.f32.mrb[107].mxu0  ;;  %v4362_v19 = vpop.f32.mrb[107].mxu1  ;;  %v4861_v1 = vpack.c.bf16 %v4317_v29, %v4317_v29  ;;  %v4907_v22 = vpack.c.bf16 %v4358_v56, %v4358_v56  ;;  %v4905_v40 = vpack.c.bf16 %v3375_v32, %v3375_v32  ;;  %v2636_v47 = vrot.slane %v2532_v14, %v7148_v55 }
 0xece   : > { %v4862_v51 = vpack.c.bf16 %v4319_v18, %v4319_v18  ;;  %v4908_v0 = vpack.c.bf16 %v4360_v13, %v4360_v13  ;;  %v4952_v48 = vpack.c.bf16 %v3418_v53, %v3418_v53  ;;  %v4998_v49 = vpack.c.bf16 %v3459_v36, %v3459_v36 }
 0xecf   : > { %v3416_v61 = vadd.f32 %v7294_v41, %v2628_v60  ;;  %v3457_v58 = vadd.f32 %v7306_v52, %v2636_v47 }
 0xed0   : > { %4863 = vmatprep.subr.bf16.mxu1 %v4862_v51  ;;  %4909 = vmatprep.subr.bf16.mxu0 %v4908_v0 }
 0xed1   : > { %4804 = vmatmul.mubr.bf16.vlgmr.msra.gmra.mrb[124].mxu1 %v4767_v33  ;;  %v4951_v20 = vpack.c.bf16 %v3416_v61, %v3416_v61  ;;  %v4997_v55 = vpack.c.bf16 %v3457_v58, %v3457_v58 }
 0xed2   : > { %4850 = vmatmul.mubr.bf16.vlgmr.msra.gmra.mrb[128].mxu0 %v4813_v59  ;;  %4864 = vmatpush1.bf16.xpose.msra.mxu1 %v4861_v1  ;;  %v4398_v44 = vpop.f32.mrb[108].mxu0  ;;  %v4439_v34 = vpop.f32.mrb[108].mxu1 }
 0xed3   : > { %4895 = vmatprep.mubr.bf16.mxu1 %v4860_v24  ;;  %4910 = vmatpush1.bf16.xpose.msra.mxu0 %v4907_v22  ;;  %v4400_v5 = vpop.f32.mrb[109].mxu0  ;;  %v4441_v21 = vpop.f32.mrb[109].mxu1  ;;  %v4399_v31 = vadd.f32 %v4398_v44, %v3614_v37  ;;  %v4440_v38 = vadd.f32 %v4439_v34, %v3622_v63 }
 0xed4   : > { %4941 = vmatprep.mubr.bf16.mxu0 %v4906_v46  ;;  %v4401_v25 = vadd.f32 %v4400_v5, %v3618_v15  ;;  %v4442_v27 = vadd.f32 %v4441_v21, %v3626_v42  ;;  %v4402_v26 = vpop.f32.mrb[110].mxu0  ;;  %v4443_v30 = vpop.f32.mrb[110].mxu1 }
 0xed5   : > { %v4403_v39 = vpop.f32.mrb[111].mxu0  ;;  %v4444_v12 = vpop.f32.mrb[111].mxu1  ;;  %v4953_v16 = vpack.c.bf16 %v4399_v31, %v4399_v31  ;;  %v4999_v43 = vpack.c.bf16 %v4440_v38, %v4440_v38 }
 0xed6   : > { %v4954_v35 = vpack.c.bf16 %v4401_v25, %v4401_v25  ;;  %v5000_v10 = vpack.c.bf16 %v4442_v27, %v4442_v27 }
 0xed8   : > { %4955 = vmatprep.subr.bf16.mxu1 %v4954_v35  ;;  %5001 = vmatprep.subr.bf16.mxu0 %v5000_v10 }
 0xed9   : > { %4896 = vmatmul.mubr.bf16.vlgmr.msra.gmra.mrb[128].mxu1 %v4859_v45 }
 0xeda   : > { %4942 = vmatmul.mubr.bf16.vlgmr.msra.gmra.mrb[132].mxu0 %v4905_v40  ;;  %4956 = vmatpush1.bf16.xpose.msra.mxu1 %v4953_v16 }
 0xedb   : > { %4987 = vmatprep.mubr.bf16.mxu1 %v4952_v48  ;;  %5002 = vmatpush1.bf16.xpose.msra.mxu0 %v4999_v43 }
 0xedc   : > { %5033 = vmatprep.mubr.bf16.mxu0 %v4998_v49 }
 0xee1   : > { %4988 = vmatmul.mubr.bf16.vlgmr.msra.gmra.mrb[132].mxu1 %v4951_v20 }
 0xee2   : > { %5034 = vmatmul.mubr.bf16.vlgmr.msra.gmra.mrb[136].mxu0 %v4997_v55 }
 0xf83   : > { %v4484_v41 = vpop.f32.mrb[112].mxu0 }
 0xf84   : > { %4490 = vst.msk [vmem:[%s7460_s15] sm:$0xff] %vm826_vm3, %v4484_v41  ;;  %v4486_v52 = vpop.f32.mrb[113].mxu0 }
 0xf85   : > { %v4487_v50 = vpop.f32.mrb[114].mxu0 }
 0xf86   : > { %v4488_v9 = vpop.f32.mrb[115].mxu0 }
 0xf8b   : > { %v4529_v57 = vpop.f32.mrb[112].mxu1 }
 0xf8c   : > { %5413 = vst.msk [vmem:[%s7460_s15 + $0x8] sm:$0xff] %vm826_vm3, %v4529_v57  ;;  %v4575_v54 = vpop.f32.mrb[116].mxu0  ;;  %v4531_v29 = vpop.f32.mrb[113].mxu1 }
 0xf8d   : > { %5414 = vst.msk [vmem:[%s7460_s15 + $0x10] sm:$0xff] %vm826_vm3, %v4575_v54  ;;  %v4577_v18 = vpop.f32.mrb[117].mxu0  ;;  %v4532_v13 = vpop.f32.mrb[114].mxu1 }
 0xf8e   : > { %v4578_v2 = vpop.f32.mrb[118].mxu0  ;;  %v4533_v3 = vpop.f32.mrb[115].mxu1 }
 0xf8f   : > { %v4579_v62 = vpop.f32.mrb[119].mxu0 }
 0xf94   : > { %v4621_v56 = vpop.f32.mrb[116].mxu1 }
 0xf95   : > { %5415 = vst.msk [vmem:[%s7460_s15 + $0x18] sm:$0xff] %vm826_vm3, %v4621_v56  ;;  %v4667_v11 = vpop.f32.mrb[120].mxu0  ;;  %v4623_v19 = vpop.f32.mrb[117].mxu1 }
 0xf96   : > { %5416 = vst.msk [vmem:[%s7460_s15 + $0x20] sm:$0xff] %vm826_vm3, %v4667_v11  ;;  %v4669_v4 = vpop.f32.mrb[121].mxu0  ;;  %v4624_v28 = vpop.f32.mrb[118].mxu1 }
 0xf97   : > { %v4670_v6 = vpop.f32.mrb[122].mxu0  ;;  %v4625_v51 = vpop.f32.mrb[119].mxu1 }
 0xf98   : > { %v4671_v0 = vpop.f32.mrb[123].mxu0 }
 0xf9c   : > { %v4713_v33 = vpop.f32.mrb[120].mxu1 }
 0xf9d   : > { %5417 = vst.msk [vmem:[%s7460_s15 + $0x28] sm:$0xff] %vm826_vm3, %v4713_v33  ;;  %v4759_v7 = vpop.f32.mrb[124].mxu0  ;;  %v4715_v14 = vpop.f32.mrb[121].mxu1 }
 0xf9e   : > { %5418 = vst.msk [vmem:[%s7460_s15 + $0x30] sm:$0xff] %vm826_vm3, %v4759_v7  ;;  %v4761_v37 = vpop.f32.mrb[125].mxu0  ;;  %v4716_v15 = vpop.f32.mrb[122].mxu1 }
 0xf9f   : > { %v4762_v59 = vpop.f32.mrb[126].mxu0  ;;  %v4717_v1 = vpop.f32.mrb[123].mxu1 }
 0xfa0   : > { %v4763_v42 = vpop.f32.mrb[127].mxu0 }
 0xfa4   : > { %v4805_v24 = vpop.f32.mrb[124].mxu1 }
 0xfa5   : > { %5419 = vst.msk [vmem:[%s7460_s15 + $0x38] sm:$0xff] %vm826_vm3, %v4805_v24  ;;  %v4851_v8 = vpop.f32.mrb[128].mxu0  ;;  %v4807_v22 = vpop.f32.mrb[125].mxu1 }
 0xfa6   : > { %5420 = vst.msk [vmem:[%s7460_s15 + $0x40] sm:$0xff] %vm826_vm3, %v4851_v8  ;;  %v4853_v63 = vpop.f32.mrb[129].mxu0  ;;  %v4808_v46 = vpop.f32.mrb[126].mxu1 }
 0xfa7   : > { %v4854_v23 = vpop.f32.mrb[130].mxu0  ;;  %v4809_v44 = vpop.f32.mrb[127].mxu1 }
 0xfa8   : > { %v4855_v34 = vpop.f32.mrb[131].mxu0 }
 0xfac   : > { %v4897_v17 = vpop.f32.mrb[128].mxu1 }
 0xfad   : > { %5421 = vst.msk [vmem:[%s7460_s15 + $0x48] sm:$0xff] %vm826_vm3, %v4897_v17  ;;  %v4943_v5 = vpop.f32.mrb[132].mxu0  ;;  %v4899_v21 = vpop.f32.mrb[129].mxu1 }
 0xfae   : > { %5422 = vst.msk [vmem:[%s7460_s15 + $0x50] sm:$0xff] %vm826_vm3, %v4943_v5  ;;  %v4945_v32 = vpop.f32.mrb[133].mxu0  ;;  %v4900_v31 = vpop.f32.mrb[130].mxu1 }
 0xfaf   : > { %v4946_v25 = vpop.f32.mrb[134].mxu0  ;;  %v4901_v27 = vpop.f32.mrb[131].mxu1 }
 0xfb0   : > { %v4947_v26 = vpop.f32.mrb[135].mxu0 }
 0xfb4   : > { %v4989_v30 = vpop.f32.mrb[132].mxu1 }
 0xfb5   : > { %5423 = vst.msk [vmem:[%s7460_s15 + $0x58] sm:$0xff] %vm826_vm3, %v4989_v30  ;;  %v5035_v53 = vpop.f32.mrb[136].mxu0  ;;  %v4991_v38 = vpop.f32.mrb[133].mxu1 }
 0xfb6   : > { %5424 = vst.msk [vmem:[%s7460_s15 + $0x60] sm:$0xff] %vm826_vm3, %v5035_v53  ;;  %v5037_v39 = vpop.f32.mrb[137].mxu0  ;;  %v4992_v12 = vpop.f32.mrb[134].mxu1 }
 0xfb7   : > { %v5038_v36 = vpop.f32.mrb[138].mxu0  ;;  %v4993_v35 = vpop.f32.mrb[135].mxu1 }
 0xfb8   : > { %v5039_v10 = vpop.f32.mrb[139].mxu0 }
 0xfb9 PF: > { %p31_p12 = scmp.ge.s32.totalorder %s6639_s16, 4   ;;  %s7556_s25 = smov %s6348_s26 }
 0xfba   : > { %s7557_s26 = smov %s6352_s27  ;;  %s7558_s27 = smov %s6651_s7 }
 0xfbb   : > { %s7559_s28 = smov %s6639_s16  ;;  %33 = sbr.rel (!%p31_p12) target bundleno = 18 (0x12), region = 178 }
 0xfc2   :  { %5064 = vsyncpa [#allocation3], 1 }
 0xfc3   :  { %5066 = vsyncpa [#allocation3 + $0x1], 1 }
 0xfc4   :  { %5067 = vsyncpa [#allocation5], 1 }
 0xfc5   :  { %5069 = vsyncpa [#allocation5 + $0x1], 1 }
 0xfc6   :  { %5070 = vsyncpa [#allocation8], 1 }
 0xfc7   :  { %5071 = vsyncpa [#allocation11], 1 }
 0xfc8   :  { %5073 = vsyncpa [#allocation11 + $0x1], 1 }
 0xfc9   :  { %5074 = vsyncpa [#allocation14], 1 }

</bundles_post_ra>
